<compile_context>
chip_gen: v7x
topology: tpu7x:2x2x1
jax: 0.10.0
libtpu: 0.0.40
codegen_flags: <defaults>
</compile_context>

<pallas_src>
import functools

import numpy as np

import jax
import jax.numpy as jnp
from jax import lax
from jax.experimental import pallas as pl
from jax.experimental.pallas import tpu as pltpu

DEPTH = 2                      # depth of DeepResidualConv
MIN_ATTENTION_SIZE = 1024      # larger than any spatial size used here -> attention disabled
ATTENTION_EVERY_NTH_LAYER = 2
EPS = 1e-5

_HIGHEST = lax.Precision.HIGHEST
_LANE = 128
_SUBLANE = 8


# ----------------------------- fused Pallas kernel ---------------------------

def _dot(a, b):
    return jnp.dot(a, b, precision=_HIGHEST, preferred_element_type=jnp.float32)


def _fused_blockblock_kernel(block_specs, x_ref, p_ref, o_ref):
    """One grid step = Nb samples; the whole multi-block network runs here.

    Layout: activations are (C, Nb*H*W) slabs (channels on sublanes, batch x
    spatial on lanes).  Per-(n, c) InstanceNorm statistics are computed with
    0/1 indicator matmuls ('gsum' sums each sample's spatial positions,
    'bcast' broadcasts the per-sample scalars back onto the subsampled slab);
    the stride-s subsample is a block-diagonal 0/1 selection matmul; the 1x1
    convs are (Cout, Cin) @ (Cin, Nb*P) MXU matmuls.  No in-kernel reshapes.
    """
    def piece(info):
        ofs, rows, cols = info               # static python ints
        return p_ref[ofs:ofs + rows, :cols]

    x = x_ref[...].astype(jnp.float32)                       # (C0, Nb*HW0)
    for spec in block_specs:
        inv_hw = 1.0 / spec["hw_in"]
        gsum = piece(spec["gsum"])                           # (Nb*HWi, Nb)
        sel = piece(spec["sel"])                             # (Nb*HWi, Nb*HWo)
        bcast = piece(spec["bcast"])                         # (Nb, Nb*HWo)
        gamma = piece(spec["gamma"])                         # (C_in, 1)
        beta = piece(spec["beta"])                           # (C_in, 1)

        # Per-(n, c) InstanceNorm statistics at FULL input resolution (f32).
        mean = _dot(x, gsum) * inv_hw                        # (C_in, Nb)
        msq = _dot(x * x, gsum) * inv_hw                     # (C_in, Nb)
        inv = lax.rsqrt(msq - mean * mean + EPS)
        a = inv * gamma                                      # (C_in, Nb)
        c = beta - mean * a                                  # (C_in, Nb)

        # Stride-s subsample via an exact 0/1 selection matmul.  Norm is a
        # per-(n, c) affine map so it commutes with the subsample.
        x_s = _dot(x, sel)                                   # (C_in, Nb*HWo)
        h = _dot(a, bcast) * x_s + _dot(c, bcast)            # normalized, subsampled

        # DeepResidualConv stack (first layer consumes the strided input).
        for d in range(spec["depth"]):
            w = piece(spec[f"w{d}"])                         # (C_out, C_prev)
            b = piece(spec[f"b{d}"])                         # (C_out, 1); last one already includes b_scale
            h = _dot(w, h) + b
            if d < spec["depth"] - 1:
                h = jnp.maximum(h, 0.0)

        # Folded Scale branch + ResModule residual add.
        x = h + _dot(piece(spec["w_scale"]), x_s)            # (C_out, Nb*HWo)

    o_ref[...] = x.astype(o_ref.dtype)


# ----------------------------- operand packing --------------------------------

def _round_up(v, m):
    return -(-v // m) * m


def _subsample_matrix_np(h, w, stride):
    """0/1 matrix S (H*W, Hs*Ws) s.t. (x_flat @ S) == x[..., ::stride, ::stride]."""
    hs = -(-h // stride)
    ws = -(-w // stride)
    sel = np.zeros((h * w, hs * ws), np.float32)
    rows = ((np.arange(hs) * stride)[:, None] * w
            + (np.arange(ws) * stride)[None, :]).ravel()
    sel[rows, np.arange(hs * ws)] = 1.0
    return sel


class _Packer:
    """Packs many small 2-D operands into one lane-padded (R, width) array."""

    def __init__(self, width):
        self.width = width
        self.parts = []
        self.offset = 0

    def add(self, arr):
        arr = jnp.asarray(arr, jnp.float32)
        rows, cols = arr.shape
        pad_rows = _round_up(rows, _SUBLANE)
        self.parts.append(jnp.pad(arr, ((0, pad_rows - rows), (0, self.width - cols))))
        info = (self.offset, rows, cols)       # static slice descriptor
        self.offset += pad_rows
        return info

    def finish(self):
        return jnp.concatenate(self.parts, axis=0)


def _build_operands(params, strides, h0, w0, nb):
    """Pack every per-block operand into one array + static slice offsets."""
    # Static bookkeeping first so we can size the packed array's lane width.
    h, w = h0, w0
    max_cols = _LANE
    shapes = []
    for p, s in zip(params, strides):
        hs, ws = -(-h // s), -(-w // s)
        max_cols = max(max_cols, nb * hs * ws,
                       p["w_scale"].shape[0], p["w_scale"].shape[1])
        shapes.append((h, w, hs, ws))
        h, w = hs, ws
    width = _round_up(max_cols, _LANE)

    packer = _Packer(width)
    block_specs = []
    for p, s, (h, w, hs, ws) in zip(params, strides, shapes):
        c_in = p["gamma"].shape[0]
        hw_in, hw_out = h * w, hs * ws
        eye = np.eye(nb, dtype=np.float32)
        spec = {
            "hw_in": hw_in,
            "hw_out": hw_out,
            "depth": DEPTH,
            # 0/1 constants: block-diagonal subsample selection, per-sample
            # spatial-sum indicator, per-sample broadcast indicator.
            "sel": packer.add(np.kron(eye, _subsample_matrix_np(h, w, s))),
            "gsum": packer.add(np.kron(eye, np.ones((hw_in, 1), np.float32))),
            "bcast": packer.add(np.kron(eye, np.ones((1, hw_out), np.float32))),
            # Learned parameters (vectors stored as column pieces).
            "gamma": packer.add(p["gamma"].reshape(c_in, 1)),
            "beta": packer.add(p["beta"].reshape(c_in, 1)),
            "w_scale": packer.add(p["w_scale"]),
        }
        for d in range(DEPTH):
            b = p["b_conv"][d]
            if d == DEPTH - 1:
                b = b + p["b_scale"]          # fold Scale bias into the last conv bias
            spec[f"w{d}"] = packer.add(p["w_conv"][d])
            spec[f"b{d}"] = packer.add(b.reshape(-1, 1))
        block_specs.append(spec)
    return packer.finish(), block_specs


# ----------------------------- parameter setup ------------------------------

def _init_linear(key, cin, cout):
    kw, kb = jax.random.split(key)
    w = jax.random.normal(kw, (cout, cin), jnp.float32) / jnp.sqrt(jnp.float32(cin))
    b = 0.01 * jax.random.normal(kb, (cout,), jnp.float32)
    return w, b


def init_block_params(key, in_f, out_f):
    assert DEPTH >= 1
    keys = jax.random.split(key, DEPTH + 1)
    w_s, b_s = _init_linear(keys[0], in_f, out_f)         # Scale layer
    w_conv, b_conv = [], []
    cin = in_f
    for d in range(DEPTH):                                # DeepResidualConv stack
        w, b = _init_linear(keys[1 + d], cin, out_f)
        w_conv.append(w)
        b_conv.append(b)
        cin = out_f
    return {
        "w_scale": w_s, "b_scale": b_s,
        "gamma": jnp.ones((in_f,), jnp.float32),          # Norm affine params
        "beta": jnp.zeros((in_f,), jnp.float32),
        "w_conv": w_conv, "b_conv": b_conv,
    }


def init_blockblock_params(key, features, strides):
    block_count = len(strides)
    keys = jax.random.split(key, block_count)
    return [init_block_params(keys[i], features[i], features[i + 1])
            for i in range(block_count)]


# ----------------------------- forward pass ----------------------------------

def _default_batch_block(n):
    if n <= 4:
        return n                           # tiny batch: one fully lane-dense step
    # Larger batches: keep >=2 grid steps so v7x's two TensorCores both get
    # work, and cap the block so the block-diagonal selection constants and the
    # (C, Nb*H*W) activation slab stay well under the v7x 64 MiB VMEM ceiling.
    for nb in range(min(8, n // 2), 0, -1):
        if n % nb == 0:
            return nb
    return 1


def blockblock_forward(x_nchw, params, *, strides, batch_block=None):
    """Fused forward: one pallas_call for the whole BlockBlock."""
    n, c0, h0, w0 = x_nchw.shape
    nb = batch_block if batch_block is not None else _default_batch_block(n)
    assert n % nb == 0, (n, nb)
    steps = n // nb

    h, w = h0, w0
    for s in strides:
        h, w = -(-h // s), -(-w // s)
    hw_last = h * w
    c_out = params[-1]["w_scale"].shape[0]

    packed, block_specs = _build_operands(params, strides, h0, w0, nb)

    # Lane-dense activation layout: (C, N*H*W) with batch*spatial on lanes.
    x = jnp.transpose(x_nchw, (1, 0, 2, 3)).reshape(c0, n * h0 * w0)

    out = pl.pallas_call(
        functools.partial(_fused_blockblock_kernel, block_specs),
        grid=(steps,),
        in_specs=[
            pl.BlockSpec((c0, nb * h0 * w0), lambda g: (0, g)),
            # Same packed-parameter block every step: fetched once, stays in VMEM.
            pl.BlockSpec(packed.shape, lambda g: (0, 0)),
        ],
        out_specs=pl.BlockSpec((c_out, nb * hw_last), lambda g: (0, g)),
        out_shape=jax.ShapeDtypeStruct((c_out, n * hw_last), x_nchw.dtype),
        compiler_params=pltpu.CompilerParams(dimension_semantics=("parallel",)),
    )(x, packed)

    # Free wrapper-side layout plumbing back to NCHW.
    return jnp.transpose(out.reshape(c_out, n, h, w), (1, 0, 2, 3))


# ----------------------------- pure-JAX reference ----------------------------

def _reference_forward(x, params, strides):
    for p, s in zip(params, strides):
        mean = jnp.mean(x, axis=(2, 3), keepdims=True)
        var = jnp.mean((x - mean) ** 2, axis=(2, 3), keepdims=True)
        nx = ((x - mean) * lax.rsqrt(var + EPS)
              * p["gamma"][None, :, None, None] + p["beta"][None, :, None, None])
        xs = x[:, :, ::s, ::s]
        nxs = nx[:, :, ::s, ::s]
        scaled = (jnp.einsum("oi,nihw->nohw", p["w_scale"], xs, precision="highest")
                  + p["b_scale"][None, :, None, None])
        h = nxs
        for d in range(DEPTH):
            h = (jnp.einsum("oi,nihw->nohw", p["w_conv"][d], h, precision="highest")
                 + p["b_conv"][d][None, :, None, None])
            if d < DEPTH - 1:
                h = jnp.maximum(h, 0.0)
        x = h + scaled
    return x


# ----------------------------- main -------------------------------------------

if __name__ == "__main__":
    key = jax.random.PRNGKey(0)
    k_param, k_x = jax.random.split(key)

    # BlockBlock(block_count=2, in_size=16, features=[4, 8, 16],
    #            strides=[2, 2], transpose=False, mul_channel=False, dim=2)
    features = [4, 8, 16]
    strides = [2, 2]
    params = init_blockblock_params(k_param, features, strides)

    # PyTorch-style NCHW input
    x_nchw = jax.random.normal(k_x, (2, 4, 16, 16), jnp.float32)

    fwd = jax.jit(functools.partial(blockblock_forward, strides=strides))
    y = fwd(x_nchw, params)                               # (2, 16, 4, 4)
    jax.block_until_ready(y)
    assert y.shape == (2, 16, 4, 4), y.shape

    y_ref = _reference_forward(x_nchw, params, strides)
    err = float(jnp.max(jnp.abs(y - y_ref)))
    assert err < 1e-3, f"max abs err vs reference: {err}"

    print("KERNEL_OK")
</pallas_src>

<mosaic_0001>
module attributes {stable_mosaic.version = 11 : i64} {
  func.func @_fused_blockblock_kernel(%arg0: i32, %arg1: memref<4x512xf32, #tpu.memory_space<vmem>>, %arg2: memref<1448x128xf32, #tpu.memory_space<vmem>>, %arg3: memref<16x32xf32, #tpu.memory_space<vmem>>) attributes {dimension_semantics = [#tpu.dimension_semantics<parallel>], iteration_bounds = array<i64: 1>, scalar_prefetch = 0 : i64, scratch_operands = 0 : i64, tpu.core_type = #tpu.core_type<tc>, window_params = [{transform_indices = @transform_0, window_bounds = array<i64: 4, 512>}, {pipeline_mode = #tpu.pipeline_mode<synchronous>, transform_indices = @transform_1, window_bounds = array<i64: 1448, 128>}, {transform_indices = @transform_2, window_bounds = array<i64: 16, 32>}]} {
    %c0 = arith.constant 0 : index
    %c0_0 = arith.constant 0 : index
    %0 = vector.load %arg1[%c0, %c0_0] : memref<4x512xf32, #tpu.memory_space<vmem>>, vector<4x512xf32>
    %c512 = arith.constant 512 : index
    %c0_1 = arith.constant 0 : index
    %1 = vector.load %arg2[%c512, %c0_1] : memref<1448x128xf32, #tpu.memory_space<vmem>>, vector<512x2xf32>
    %c0_2 = arith.constant 0 : index
    %c0_3 = arith.constant 0 : index
    %2 = vector.load %arg2[%c0_2, %c0_3] : memref<1448x128xf32, #tpu.memory_space<vmem>>, vector<512x128xf32>
    %c1024 = arith.constant 1024 : index
    %c0_4 = arith.constant 0 : index
    %3 = vector.load %arg2[%c1024, %c0_4] : memref<1448x128xf32, #tpu.memory_space<vmem>>, vector<2x128xf32>
    %c1032 = arith.constant 1032 : index
    %c0_5 = arith.constant 0 : index
    %4 = vector.load %arg2[%c1032, %c0_5] : memref<1448x128xf32, #tpu.memory_space<vmem>>, vector<4x1xf32>
    %c1040 = arith.constant 1040 : index
    %c0_6 = arith.constant 0 : index
    %5 = vector.load %arg2[%c1040, %c0_6] : memref<1448x128xf32, #tpu.memory_space<vmem>>, vector<4x1xf32>
    %cst = arith.constant dense<0.000000e+00> : vector<4x2xf32>
    %6 = tpu.matmul %0, %1, %cst {dimension_numbers = #tpu.dot_dimension_numbers<[1], [0], [0], [1], [0, 0, 1, 1], [], []>, precision = #tpu.contract_precision<fp32>} : vector<4x512xf32>, vector<512x2xf32>, vector<4x2xf32> -> vector<4x2xf32>
    %cst_7 = arith.constant 3.906250e-03 : f32
    %7 = vector.broadcast %cst_7 : f32 to vector<4x2xf32>
    %8 = arith.mulf %6, %7 : vector<4x2xf32>
    %9 = arith.mulf %0, %0 : vector<4x512xf32>
    %cst_8 = arith.constant dense<0.000000e+00> : vector<4x2xf32>
    %10 = tpu.matmul %9, %1, %cst_8 {dimension_numbers = #tpu.dot_dimension_numbers<[1], [0], [0], [1], [0, 0, 1, 1], [], []>, precision = #tpu.contract_precision<fp32>} : vector<4x512xf32>, vector<512x2xf32>, vector<4x2xf32> -> vector<4x2xf32>
    %cst_9 = arith.constant 3.906250e-03 : f32
    %11 = vector.broadcast %cst_9 : f32 to vector<4x2xf32>
    %12 = arith.mulf %10, %11 : vector<4x2xf32>
    %13 = arith.mulf %8, %8 : vector<4x2xf32>
    %14 = arith.subf %12, %13 : vector<4x2xf32>
    %cst_10 = arith.constant 9.99999974E-6 : f32
    %15 = vector.broadcast %cst_10 : f32 to vector<4x2xf32>
    %16 = arith.addf %14, %15 : vector<4x2xf32>
    %17 = math.rsqrt %16 : vector<4x2xf32>
    %18 = vector.broadcast %4 : vector<4x1xf32> to vector<4x2xf32>
    %19 = arith.mulf %17, %18 : vector<4x2xf32>
    %20 = arith.mulf %8, %19 : vector<4x2xf32>
    %21 = vector.broadcast %5 : vector<4x1xf32> to vector<4x2xf32>
    %22 = arith.subf %21, %20 : vector<4x2xf32>
    %cst_11 = arith.constant dense<0.000000e+00> : vector<4x128xf32>
    %23 = tpu.matmul %0, %2, %cst_11 {dimension_numbers = #tpu.dot_dimension_numbers<[1], [0], [0], [1], [0, 0, 1, 1], [], []>, precision = #tpu.contract_precision<fp32>} : vector<4x512xf32>, vector<512x128xf32>, vector<4x128xf32> -> vector<4x128xf32>
    %cst_12 = arith.constant dense<0.000000e+00> : vector<4x128xf32>
    %24 = tpu.matmul %19, %3, %cst_12 {dimension_numbers = #tpu.dot_dimension_numbers<[1], [0], [0], [1], [0, 0, 1, 1], [], []>, precision = #tpu.contract_precision<fp32>} : vector<4x2xf32>, vector<2x128xf32>, vector<4x128xf32> -> vector<4x128xf32>
    %25 = arith.mulf %24, %23 : vector<4x128xf32>
    %cst_13 = arith.constant dense<0.000000e+00> : vector<4x128xf32>
    %26 = tpu.matmul %22, %3, %cst_13 {dimension_numbers = #tpu.dot_dimension_numbers<[1], [0], [0], [1], [0, 0, 1, 1], [], []>, precision = #tpu.contract_precision<fp32>} : vector<4x2xf32>, vector<2x128xf32>, vector<4x128xf32> -> vector<4x128xf32>
    %27 = arith.addf %25, %26 : vector<4x128xf32>
    %c1056 = arith.constant 1056 : index
    %c0_14 = arith.constant 0 : index
    %28 = vector.load %arg2[%c1056, %c0_14] : memref<1448x128xf32, #tpu.memory_space<vmem>>, vector<8x4xf32>
    %c1064 = arith.constant 1064 : index
    %c0_15 = arith.constant 0 : index
    %29 = vector.load %arg2[%c1064, %c0_15] : memref<1448x128xf32, #tpu.memory_space<vmem>>, vector<8x1xf32>
    %cst_16 = arith.constant dense<0.000000e+00> : vector<8x128xf32>
    %30 = tpu.matmul %28, %27, %cst_16 {dimension_numbers = #tpu.dot_dimension_numbers<[1], [0], [0], [1], [0, 0, 1, 1], [], []>, precision = #tpu.contract_precision<fp32>} : vector<8x4xf32>, vector<4x128xf32>, vector<8x128xf32> -> vector<8x128xf32>
    %31 = vector.broadcast %29 : vector<8x1xf32> to vector<8x128xf32>
    %32 = arith.addf %30, %31 : vector<8x128xf32>
    %cst_17 = arith.constant 0.000000e+00 : f32
    %33 = vector.broadcast %cst_17 : f32 to vector<8x128xf32>
    %34 = arith.maximumf %32, %33 : vector<8x128xf32>
    %c1072 = arith.constant 1072 : index
    %c0_18 = arith.constant 0 : index
    %35 = vector.load %arg2[%c1072, %c0_18] : memref<1448x128xf32, #tpu.memory_space<vmem>>, vector<8x8xf32>
    %c1080 = arith.constant 1080 : index
    %c0_19 = arith.constant 0 : index
    %36 = vector.load %arg2[%c1080, %c0_19] : memref<1448x128xf32, #tpu.memory_space<vmem>>, vector<8x1xf32>
    %cst_20 = arith.constant dense<0.000000e+00> : vector<8x128xf32>
    %37 = tpu.matmul %35, %34, %cst_20 {dimension_numbers = #tpu.dot_dimension_numbers<[1], [0], [0], [1], [0, 0, 1, 1], [], []>, precision = #tpu.contract_precision<fp32>} : vector<8x8xf32>, vector<8x128xf32>, vector<8x128xf32> -> vector<8x128xf32>
    %38 = vector.broadcast %36 : vector<8x1xf32> to vector<8x128xf32>
    %39 = arith.addf %37, %38 : vector<8x128xf32>
    %c1048 = arith.constant 1048 : index
    %c0_21 = arith.constant 0 : index
    %40 = vector.load %arg2[%c1048, %c0_21] : memref<1448x128xf32, #tpu.memory_space<vmem>>, vector<8x4xf32>
    %cst_22 = arith.constant dense<0.000000e+00> : vector<8x128xf32>
    %41 = tpu.matmul %40, %23, %cst_22 {dimension_numbers = #tpu.dot_dimension_numbers<[1], [0], [0], [1], [0, 0, 1, 1], [], []>, precision = #tpu.contract_precision<fp32>} : vector<8x4xf32>, vector<4x128xf32>, vector<8x128xf32> -> vector<8x128xf32>
    %42 = arith.addf %39, %41 : vector<8x128xf32>
    %c1216 = arith.constant 1216 : index
    %c0_23 = arith.constant 0 : index
    %43 = vector.load %arg2[%c1216, %c0_23] : memref<1448x128xf32, #tpu.memory_space<vmem>>, vector<128x2xf32>
    %c1088 = arith.constant 1088 : index
    %c0_24 = arith.constant 0 : index
    %44 = vector.load %arg2[%c1088, %c0_24] : memref<1448x128xf32, #tpu.memory_space<vmem>>, vector<128x32xf32>
    %c1344 = arith.constant 1344 : index
    %c0_25 = arith.constant 0 : index
    %45 = vector.load %arg2[%c1344, %c0_25] : memref<1448x128xf32, #tpu.memory_space<vmem>>, vector<2x32xf32>
    %c1352 = arith.constant 1352 : index
    %c0_26 = arith.constant 0 : index
    %46 = vector.load %arg2[%c1352, %c0_26] : memref<1448x128xf32, #tpu.memory_space<vmem>>, vector<8x1xf32>
    %c1360 = arith.constant 1360 : index
    %c0_27 = arith.constant 0 : index
    %47 = vector.load %arg2[%c1360, %c0_27] : memref<1448x128xf32, #tpu.memory_space<vmem>>, vector<8x1xf32>
    %cst_28 = arith.constant dense<0.000000e+00> : vector<8x2xf32>
    %48 = tpu.matmul %42, %43, %cst_28 {dimension_numbers = #tpu.dot_dimension_numbers<[1], [0], [0], [1], [0, 0, 1, 1], [], []>, precision = #tpu.contract_precision<fp32>} : vector<8x128xf32>, vector<128x2xf32>, vector<8x2xf32> -> vector<8x2xf32>
    %cst_29 = arith.constant 1.562500e-02 : f32
    %49 = vector.broadcast %cst_29 : f32 to vector<8x2xf32>
    %50 = arith.mulf %48, %49 : vector<8x2xf32>
    %51 = arith.mulf %42, %42 : vector<8x128xf32>
    %cst_30 = arith.constant dense<0.000000e+00> : vector<8x2xf32>
    %52 = tpu.matmul %51, %43, %cst_30 {dimension_numbers = #tpu.dot_dimension_numbers<[1], [0], [0], [1], [0, 0, 1, 1], [], []>, precision = #tpu.contract_precision<fp32>} : vector<8x128xf32>, vector<128x2xf32>, vector<8x2xf32> -> vector<8x2xf32>
    %cst_31 = arith.constant 1.562500e-02 : f32
    %53 = vector.broadcast %cst_31 : f32 to vector<8x2xf32>
    %54 = arith.mulf %52, %53 : vector<8x2xf32>
    %55 = arith.mulf %50, %50 : vector<8x2xf32>
    %56 = arith.subf %54, %55 : vector<8x2xf32>
    %cst_32 = arith.constant 9.99999974E-6 : f32
    %57 = vector.broadcast %cst_32 : f32 to vector<8x2xf32>
    %58 = arith.addf %56, %57 : vector<8x2xf32>
    %59 = math.rsqrt %58 : vector<8x2xf32>
    %60 = vector.broadcast %46 : vector<8x1xf32> to vector<8x2xf32>
    %61 = arith.mulf %59, %60 : vector<8x2xf32>
    %62 = arith.mulf %50, %61 : vector<8x2xf32>
    %63 = vector.broadcast %47 : vector<8x1xf32> to vector<8x2xf32>
    %64 = arith.subf %63, %62 : vector<8x2xf32>
    %cst_33 = arith.constant dense<0.000000e+00> : vector<8x32xf32>
    %65 = tpu.matmul %42, %44, %cst_33 {dimension_numbers = #tpu.dot_dimension_numbers<[1], [0], [0], [1], [0, 0, 1, 1], [], []>, precision = #tpu.contract_precision<fp32>} : vector<8x128xf32>, vector<128x32xf32>, vector<8x32xf32> -> vector<8x32xf32>
    %cst_34 = arith.constant dense<0.000000e+00> : vector<8x32xf32>
    %66 = tpu.matmul %61, %45, %cst_34 {dimension_numbers = #tpu.dot_dimension_numbers<[1], [0], [0], [1], [0, 0, 1, 1], [], []>, precision = #tpu.contract_precision<fp32>} : vector<8x2xf32>, vector<2x32xf32>, vector<8x32xf32> -> vector<8x32xf32>
    %67 = arith.mulf %66, %65 : vector<8x32xf32>
    %cst_35 = arith.constant dense<0.000000e+00> : vector<8x32xf32>
    %68 = tpu.matmul %64, %45, %cst_35 {dimension_numbers = #tpu.dot_dimension_numbers<[1], [0], [0], [1], [0, 0, 1, 1], [], []>, precision = #tpu.contract_precision<fp32>} : vector<8x2xf32>, vector<2x32xf32>, vector<8x32xf32> -> vector<8x32xf32>
    %69 = arith.addf %67, %68 : vector<8x32xf32>
    %c1384 = arith.constant 1384 : index
    %c0_36 = arith.constant 0 : index
    %70 = vector.load %arg2[%c1384, %c0_36] : memref<1448x128xf32, #tpu.memory_space<vmem>>, vector<16x8xf32>
    %c1400 = arith.constant 1400 : index
    %c0_37 = arith.constant 0 : index
    %71 = vector.load %arg2[%c1400, %c0_37] : memref<1448x128xf32, #tpu.memory_space<vmem>>, vector<16x1xf32>
    %cst_38 = arith.constant dense<0.000000e+00> : vector<16x32xf32>
    %72 = tpu.matmul %70, %69, %cst_38 {dimension_numbers = #tpu.dot_dimension_numbers<[1], [0], [0], [1], [0, 0, 1, 1], [], []>, precision = #tpu.contract_precision<fp32>} : vector<16x8xf32>, vector<8x32xf32>, vector<16x32xf32> -> vector<16x32xf32>
    %73 = vector.broadcast %71 : vector<16x1xf32> to vector<16x32xf32>
    %74 = arith.addf %72, %73 : vector<16x32xf32>
    %cst_39 = arith.constant 0.000000e+00 : f32
    %75 = vector.broadcast %cst_39 : f32 to vector<16x32xf32>
    %76 = arith.maximumf %74, %75 : vector<16x32xf32>
    %c1416 = arith.constant 1416 : index
    %c0_40 = arith.constant 0 : index
    %77 = vector.load %arg2[%c1416, %c0_40] : memref<1448x128xf32, #tpu.memory_space<vmem>>, vector<16x16xf32>
    %c1432 = arith.constant 1432 : index
    %c0_41 = arith.constant 0 : index
    %78 = vector.load %arg2[%c1432, %c0_41] : memref<1448x128xf32, #tpu.memory_space<vmem>>, vector<16x1xf32>
    %cst_42 = arith.constant dense<0.000000e+00> : vector<16x32xf32>
    %79 = tpu.matmul %77, %76, %cst_42 {dimension_numbers = #tpu.dot_dimension_numbers<[1], [0], [0], [1], [0, 0, 1, 1], [], []>, precision = #tpu.contract_precision<fp32>} : vector<16x16xf32>, vector<16x32xf32>, vector<16x32xf32> -> vector<16x32xf32>
    %80 = vector.broadcast %78 : vector<16x1xf32> to vector<16x32xf32>
    %81 = arith.addf %79, %80 : vector<16x32xf32>
    %c1368 = arith.constant 1368 : index
    %c0_43 = arith.constant 0 : index
    %82 = vector.load %arg2[%c1368, %c0_43] : memref<1448x128xf32, #tpu.memory_space<vmem>>, vector<16x8xf32>
    %cst_44 = arith.constant dense<0.000000e+00> : vector<16x32xf32>
    %83 = tpu.matmul %82, %65, %cst_44 {dimension_numbers = #tpu.dot_dimension_numbers<[1], [0], [0], [1], [0, 0, 1, 1], [], []>, precision = #tpu.contract_precision<fp32>} : vector<16x8xf32>, vector<8x32xf32>, vector<16x32xf32> -> vector<16x32xf32>
    %84 = arith.addf %81, %83 : vector<16x32xf32>
    %c0_45 = arith.constant 0 : index
    %c0_46 = arith.constant 0 : index
    %85 = vector.load %arg3[%c0_45, %c0_46] : memref<16x32xf32, #tpu.memory_space<vmem>>, vector<16x32xf32>
    tpu.vector_store %arg3[%c0_45, %c0_46], %84 {strides = array<i32>} : memref<16x32xf32, #tpu.memory_space<vmem>>, vector<16x32xf32>,
    return
  }
  func.func @transform_0(%arg0: i32) -> (i32, i32) {
    %c0_i32 = arith.constant 0 : i32
    %c0_i32_0 = arith.constant 0 : i32
    return %c0_i32, %arg0 : i32, i32
  }
  func.func @transform_1(%arg0: i32) -> (i32, i32) {
    %c0_i32 = arith.constant 0 : i32
    %c0_i32_0 = arith.constant 0 : i32
    %c0_i32_1 = arith.constant 0 : i32
    return %c0_i32, %c0_i32_0 : i32, i32
  }
  func.func @transform_2(%arg0: i32) -> (i32, i32) {
    %c0_i32 = arith.constant 0 : i32
    %c0_i32_0 = arith.constant 0 : i32
    return %c0_i32, %arg0 : i32, i32
  }
}

</mosaic_0001>

<bundles_post_ra>
// kernel: blockblock_forward.1
= control target key start
LH: loop header
LB: loop body
LE: loop exit
PB: predicated region body
PF: predicated region fallthrough
CT: control target
= control target key end

     0   :  { %vm5353_vm0 = vcmask 1041408   ;;  %vm16443_vm1 = vmmov 0   ;;  %vm5349_vm2 = vcmask 15360   ;;  %vm6261_vm3 = vcmask 31744   ;;  %s21086_s1 = inlined_call_operand.vmem [shape: f32[1448,128], index: 1, kind: input, shape index: {}]   ;;  %s21087_s0 = inlined_call_operand.vmem [shape: f32[4,512], index: 0, kind: input, shape index: {}]   ;;  %s21088_s2 = inlined_call_operand.vmem [shape: f32[16,32], index: 2, kind: output, shape index: {}]  }
   0x1   :  { %v16463_v0 = vld [vmem:[%s21086_s1 + $0x280] sm:$0xff]  ;;  %v16468_v1 = vld [vmem:[%s21086_s1 + $0x288] sm:$0xff]  ;;  %v16486_v7 = vld [vmem:[%s21086_s1 + $0x290] sm:$0xff]  ;;  %vm6265_vm4 = vcmask 1043456   ;;  %vm6723_vm5 = vcmask 64512   ;;  %vm11033_vm6 = vcmask 130048  }
   0x2   :  { %v16473_v2 = vld [vmem:[%s21086_s1 + $0x200] sm:$0xff]  ;;  %v199_v3 = vand.u32 4294901760, %v16463_v0  ;;  %v202_v4 = vand.u32 4294901760, %v16468_v1  ;;  %v16480_v5 = vld [vmem:[%s21086_s1 + $0x208] sm:$0xff]  ;;  %v16491_v8 = vld [vmem:[%s21086_s1 + $0x298] sm:$0xff]  ;;  %v205_v10 = vand.u32 4294901760, %v16486_v7 }
   0x3   :  { %v151_v6 = vand.u32 4294901760, %v16473_v2  ;;  %v154_v9 = vand.u32 4294901760, %v16480_v5  ;;  %v21105_v11 = vand.u32 4294901760, %v16491_v8  ;;  %v16499_v12 = vld [vmem:[%s21086_s1 + $0x210] sm:$0xff]  ;;  %v16504_v13 = vld [vmem:[%s21086_s1 + $0x218] sm:$0xff]  ;;  %v16509_v14 = vld [vmem:[%s21086_s1 + $0x2a0] sm:$0xff] }
   0x4   :  { %v16515_v15 = vpack.c.bf16 %v202_v4, %v199_v3  ;;  %v21102_v16 = vand.u32 4294901760, %v16499_v12  ;;  %v21099_v17 = vand.u32 4294901760, %v16504_v13  ;;  %v16522_v18 = vld [vmem:[%s21086_s1 + $0x2a8] sm:$0xff]  ;;  %v21098_v19 = vand.u32 4294901760, %v16509_v14  ;;  %v16528_v20 = vld [vmem:[%s21086_s1 + $0x220] sm:$0xff]  ;;  %v16552_v26 = vld [vmem:[%s21086_s1 + $0x2b0] sm:$0xff] }
   0x5   :  { %v16533_v21 = vld [vmem:[%s21086_s1 + $0x228] sm:$0xff]  ;;  %v16539_v22 = vpack.c.bf16 %v154_v9, %v151_v6  ;;  %v16545_v23 = vpack.c.bf16 %v21105_v11, %v205_v10  ;;  %v21097_v24 = vand.u32 4294901760, %v16522_v18  ;;  %v21096_v25 = vand.u32 4294901760, %v16528_v20  ;;  %v16557_v27 = vld [vmem:[%s21086_s1 + $0x2b8] sm:$0xff]  ;;  %v16562_v28 = vld [vmem:[%s21086_s1 + $0x230] sm:$0xff] }
   0x6   :  { %21452 = vst [vmem:[#allocation2_spill] sm:$0xff] %v16515_v15  ;;  %14701 = vmatprep.subr.bf16.mxu1 %v16515_v15  ;;  %v21091_v29 = vand.u32 4294901760, %v16533_v21  ;;  %v21090_v30 = vand.u32 4294901760, %v16552_v26  ;;  %v21089_v31 = vand.u32 4294901760, %v16557_v27  ;;  %v16571_v32 = vld [vmem:[%s21086_s1 + $0x238] sm:$0xff]  ;;  %v16576_v33 = vld [vmem:[%s21086_s1 + $0x2c0] sm:$0xff]  ;;  %v16588_v35 = vpack.c.bf16 %v21099_v17, %v21102_v16 }
   0x7   :  { %21453 = vst [vmem:[#allocation3_spill] sm:$0xff] %v16539_v22  ;;  %21454 = vst [vmem:[#allocation4_spill] sm:$0xff] %v16545_v23  ;;  %v16581_v34 = vld [vmem:[%s21086_s1 + $0x2c8] sm:$0xff]  ;;  %14703 = vmatpush3.bf16.msra.mxu1 %v16539_v22  ;;  %v21093_v36 = vand.u32 4294901760, %v16562_v28  ;;  %v21092_v37 = vand.u32 4294901760, %v16571_v32  ;;  %v21095_v38 = vand.u32 4294901760, %v16576_v33  ;;  %v16613_v42 = vpack.c.bf16 %v21097_v24, %v21098_v19 }
   0x8   :  { %21455 = vst [vmem:[#allocation5_spill] sm:$0xff] %v16588_v35  ;;  %v16596_v39 = vld [vmem:[%s21086_s1 + $0x240] sm:$0xff]  ;;  %v16601_v40 = vld [vmem:[%s21086_s1 + $0x248] sm:$0xff]  ;;  %v16606_v41 = vld [vmem:[%s21086_s1 + $0x2d0] sm:$0xff]  ;;  %14705 = vmatprep.subr.bf16.mxu1 %v16545_v23  ;;  %v21094_v43 = vand.u32 4294901760, %v16581_v34  ;;  %v16636_v48 = vpack.c.bf16 %v21091_v29, %v21096_v25  ;;  %v16660_v55 = vpack.c.bf16 %v21089_v31, %v21090_v30  ;;  %vm12041_vm7 = vcmask 261120  }
   0x9   :  { %21456 = vst [vmem:[#allocation6_spill] sm:$0xff] %v16613_v42  ;;  %v21101_v44 = vand.u32 4294901760, %v16596_v39  ;;  %v16620_v45 = vld [vmem:[%s21086_s1 + $0x2d8] sm:$0xff]  ;;  %v16625_v46 = vld [vmem:[%s21086_s1 + $0x250] sm:$0xff]  ;;  %v21100_v49 = vand.u32 4294901760, %v16601_v40  ;;  %v21104_v50 = vand.u32 4294901760, %v16606_v41  ;;  %v16685_v62 = vpack.c.bf16 %v21092_v37, %v21093_v36 }
   0xa   :  { %v16630_v47 = vld [vmem:[%s21086_s1 + $0x258] sm:$0xff]  ;;  %21457 = vst [vmem:[#allocation7_spill] sm:$0xff] %v16636_v48  ;;  %v21103_v51 = vand.u32 4294901760, %v16620_v45  ;;  %v16644_v52 = vld [vmem:[%s21086_s1 + $0x2e0] sm:$0xff]  ;;  %v16649_v53 = vld [vmem:[%s21086_s1 + $0x2e8] sm:$0xff]  ;;  %v21113_v56 = vand.u32 4294901760, %v16625_v46  ;;  %v16691_v63 = vpack.c.bf16 %v21094_v43, %v21095_v38 }
   0xb   :  { %v16654_v54 = vld [vmem:[%s21086_s1 + $0x260] sm:$0xff]  ;;  %21458 = vst [vmem:[#allocation8_spill] sm:$0xff] %v16660_v55  ;;  %v21110_v57 = vand.u32 4294901760, %v16630_v47  ;;  %v21107_v58 = vand.u32 4294901760, %v16644_v52  ;;  %v16668_v59 = vld [vmem:[%s21086_s1 + $0x268] sm:$0xff]  ;;  %v16673_v60 = vld [vmem:[%s21086_s1 + $0x2f0] sm:$0xff]  ;;  %14707 = vmatpush3.bf16.msra.mxu1 %v16588_v35  ;;  %v16713_v43 = vpack.c.bf16 %v21100_v49, %v21101_v44 }
   0xc   :  { %v16678_v61 = vld [vmem:[%s21086_s1 + $0x2f8] sm:$0xff]  ;;  %21459 = vst [vmem:[#allocation9_spill] sm:$0xff] %v16685_v62  ;;  %21460 = vst [vmem:[#allocation10_spill] sm:$0xff] %v16691_v63  ;;  %v21106_v31 = vand.u32 4294901760, %v16649_v53  ;;  %v21109_v30 = vand.u32 4294901760, %v16654_v54  ;;  %v16698_v29 = vld [vmem:[%s21086_s1 + $0x270] sm:$0xff]  ;;  %14709 = vmatprep.subr.bf16.mxu1 %v16613_v42  ;;  %v16722_v19 = vpack.c.bf16 %v21103_v51, %v21104_v50 }
   0xd   :  { %v16703_v37 = vld [vmem:[%s21086_s1 + $0x278] sm:$0xff]  ;;  %v11_v36 = vld [vmem:[%s21087_s0] sm:$0xff]  ;;  %21461 = vst [vmem:[#allocation11_spill] sm:$0xff] %v16713_v43  ;;  %v21108_v38 = vand.u32 4294901760, %v16668_v59  ;;  %v21112_v25 = vand.u32 4294901760, %v16673_v60  ;;  %v21111_v24 = vand.u32 4294901760, %v16678_v61  ;;  %v16728_v17 = vpack.c.bf16 %v21110_v57, %v21113_v56 }
   0xe   :  { %21462 = vst [vmem:[#allocation12_spill] sm:$0xff] %v16722_v19  ;;  %v16734_v49 = vpack.c.bf16 %v21106_v31, %v21107_v58  ;;  %v146_v44 = vcombine.high %v11_v36, %v11_v36  ;;  %v16744_v11 = vand.u32 4294901760, %v11_v36  ;;  %v21483_v42 = vand.u32 4294901760, %v16499_v12 }
   0xf   :  { %21463 = vst [vmem:[#allocation13_spill] sm:$0xff] %v16728_v17  ;;  %v16740_v16 = vpack.c.bf16 %v21108_v38, %v21109_v30  ;;  %14711 = vmatpush3.bf16.msra.mxu1 %v16636_v48  ;;  %v16751_v31 = vpack.c.bf16 %v21111_v24, %v21112_v25  ;;  %v16758_v38 = vsub.f32 %v16463_v0, %v199_v3  ;;  %v21480_v48 = vand.u32 4294901760, %v16491_v8 }
  0x10   :  { %21464 = vst [vmem:[#allocation14_spill] sm:$0xff] %v16734_v49  ;;  %21466 = vst [vmem:[#allocation16_spill] sm:$0xff] %v16744_v11  ;;  %v16753_v58 = vand.u32 4294901760, %v146_v44  ;;  %v16763_v30 = vsub.f32 %v16468_v1, %v202_v4  ;;  %14713 = vmatprep.subr.bf16.mxu1 %v16660_v55  ;;  %v16767_v57 = vsub.f32 %v11_v36, %v16744_v11 }
  0x11   :  { %21465 = vst [vmem:[#allocation15_spill] sm:$0xff] %v16740_v16  ;;  %21467 = vst [vmem:[#allocation17_spill] sm:$0xff] %v16751_v31  ;;  %v16772_v24 = vsub.f32 %v16473_v2, %v151_v6  ;;  %v16777_v0 = vsub.f32 %v16480_v5, %v154_v9  ;;  %v16782_v1 = vsub.f32 %v16486_v7, %v205_v10  ;;  %v21114_v4 = vand.u32 4294901760, %v16758_v38 }
  0x12   :  { %21468 = vst [vmem:[#allocation18_spill] sm:$0xff] %v16753_v58  ;;  %21469 = vst [vmem:[#allocation19_spill] sm:$0xff] %v16767_v57  ;;  %v16785_v3 = vsub.f32 %v146_v44, %v16753_v58  ;;  %v21115_v36 = vand.u32 4294901760, %v16763_v30  ;;  %v16791_v2 = vpack.c.bf16 %v16763_v30, %v16758_v38  ;;  %v16794_v6 = vand.u32 4294901760, %v16767_v57 }
  0x13   :  { %v21123_v5 = vand.u32 4294901760, %v16772_v24  ;;  %v21126_v9 = vand.u32 4294901760, %v16777_v0  ;;  %v16800_v7 = vpack.c.bf16 %v16777_v0, %v16772_v24  ;;  %14715 = vmatpush3.bf16.msra.mxu1 %v16685_v62  ;;  %v378_v44 = vsub.f32 %v16758_v38, %v21114_v4 }
  0x14   :  { %21470 = vst [vmem:[#allocation20_spill] sm:$0xff] %v16785_v3  ;;  %21471 = vst [vmem:[#allocation21_spill] sm:$0xff] %v16791_v2  ;;  %v16804_v10 = vand.u32 4294901760, %v16785_v3  ;;  %v385_v25 = vsub.f32 %v16763_v30, %v21115_v36  ;;  %14765 = vmatprep.subr.bf16.mxu0 %v16791_v2  ;;  %14717 = vmatprep.subr.bf16.mxu1 %v16691_v63  ;;  %v255_v50 = vsub.f32 %v16767_v57, %v16794_v6 }
  0x15   :  { %21472 = vst [vmem:[#allocation22_spill] sm:$0xff] %v16794_v6  ;;  %21473 = vst [vmem:[#allocation23_spill] sm:$0xff] %v16800_v7  ;;  %v266_v51 = vsub.f32 %v16772_v24, %v21123_v5  ;;  %v273_v4 = vsub.f32 %v16777_v0, %v21126_v9  ;;  %14767 = vmatpush3.bf16.msra.mxu0 %v16800_v7  ;;  %v379_v2 = vand.u32 4294901760, %v378_v44  ;;  %v21475_v63 = vand.u32 4294901760, %v16782_v1 }
  0x16   :  { %21474 = vst [vmem:[#allocation24_spill] sm:$0xff] %v16804_v10  ;;  %v249_v36 = vsub.f32 %v16785_v3, %v16804_v10  ;;  %v386_v56 = vand.u32 4294901760, %v385_v25  ;;  %624 = vmatprep.mubr.f32.mxu0 %v16785_v3  ;;  %v21476_v6 = vand.u32 4294901760, %v16698_v29  ;;  %v21477_v5 = vand.u32 4294901760, %v16703_v37 }
  0x17   :  { %v392_v62 = vsub.f32 %v16782_v1, %v21475_v63  ;;  %v16836_v9 = vand.u32 4294901760, %v255_v50  ;;  %v267_v7 = vand.u32 4294901760, %v266_v51  ;;  %v16841_v44 = vsub.f32 %v16491_v8, %v21480_v48  ;;  %14719 = vmatpush3.bf16.msra.mxu1 %v16713_v43 }
  0x18   :  { %v16834_v55 = vpack.c.bf16 %v21477_v5, %v21476_v6  ;;  %v16844_v25 = vand.u32 4294901760, %v249_v36  ;;  %v16846_v63 = vpack.c.bf16 %v386_v56, %v379_v2  ;;  %v274_v3 = vand.u32 4294901760, %v273_v4  ;;  %14721 = vmatprep.subr.bf16.mxu1 %v16722_v19 }
  0x19   :  { %21479 = vst [vmem:[#allocation26_spill] sm:$0xff] %v16836_v9  ;;  %v16851_v6 = vsub.f32 %v16499_v12, %v21483_v42  ;;  %v393_v50 = vand.u32 4294901760, %v392_v62  ;;  %v21133_v51 = vand.u32 4294901760, %v16841_v44  ;;  %v21484_v8 = vand.u32 4294901760, %v16504_v13 }
  0x1a   :  { %21478 = vst [vmem:[#allocation25_spill] sm:$0xff] %v16834_v55  ;;  %21481 = vst [vmem:[#allocation27_spill] sm:$0xff] %v16844_v25  ;;  %v16862_v56 = vpack.c.bf16 %v16841_v44, %v16782_v1  ;;  %251 = vmatprep.mubr.f32.mxu1 %v16844_v25  ;;  %v21486_v12 = vand.u32 4294901760, %v16509_v14  ;;  %v21487_v62 = vand.u32 4294901760, %v16522_v18 }
  0x1b   :  { %21482 = vst [vmem:[#allocation28_spill] sm:$0xff] %v16846_v63  ;;  %v16858_v48 = vsub.f32 %v16504_v13, %v21484_v8  ;;  %v21135_v4 = vand.u32 4294901760, %v16851_v6  ;;  %v21488_v13 = vand.u32 4294901760, %v16528_v20  ;;  %v399_v5 = vsub.f32 %v16841_v44, %v21133_v51  ;;  %14723 = vmatpush3.bf16.msra.mxu1 %v16728_v17 }
  0x1c   :  { %21485 = vst [vmem:[#allocation29_spill] sm:$0xff] %v16862_v56  ;;  %v16869_v42 = vsub.f32 %v16509_v14, %v21486_v12  ;;  %v16874_v36 = vsub.f32 %v16522_v18, %v21487_v62  ;;  %14769 = vmatprep.subr.bf16.mxu0 %v16862_v56  ;;  %v21490_v18 = vand.u32 4294901760, %v16533_v21  ;;  %14725 = vmatprep.subr.bf16.mxu1 %v16734_v49 }
  0x1d   :  { %v16879_v2 = vsub.f32 %v16528_v20, %v21488_v13  ;;  %v16888_v14 = vpack.c.bf16 %v16858_v48, %v16851_v6  ;;  %v280_v20 = vsub.f32 %v16851_v6, %v21135_v4  ;;  %v400_v8 = vand.u32 4294901760, %v399_v5 }
  0x1e   :  { %v16893_v12 = vsub.f32 %v16533_v21, %v21490_v18  ;;  %v21491_v25 = vand.u32 4294901760, %v16858_v48  ;;  %v16910_v4 = vpack.c.bf16 %v16874_v36, %v16869_v42  ;;  %v21493_v13 = vand.u32 4294901760, %v16869_v42 }
  0x1f   :  { %21489 = vst [vmem:[#allocation30_spill] sm:$0xff] %v16888_v14  ;;  %14771 = vmatpush3.bf16.msra.mxu0 %v16888_v14  ;;  %v281_v62 = vand.u32 4294901760, %v280_v20  ;;  %v21494_v56 = vand.u32 4294901760, %v16874_v36  ;;  %v21495_v49 = vand.u32 4294901760, %v16879_v2  ;;  %v16921_v14 = vpack.c.bf16 %v274_v3, %v267_v7  ;;  %14727 = vmatpush3.bf16.msra.mxu1 %v16740_v16 }
  0x20   :  { %v287_v21 = vsub.f32 %v16858_v48, %v21491_v25  ;;  %21492 = vst [vmem:[#allocation31_spill] sm:$0xff] %v16910_v4  ;;  %v406_v51 = vsub.f32 %v16869_v42, %v21493_v13  ;;  %v21497_v17 = vand.u32 4294901760, %v16893_v12  ;;  %14773 = vmatprep.subr.bf16.mxu0 %v16910_v4  ;;  %v16929_v20 = vpack.c.bf16 %v16893_v12, %v16879_v2 }
  0x21   :  { %v413_v5 = vsub.f32 %v16874_v36, %v21494_v56  ;;  %v294_v25 = vsub.f32 %v16879_v2, %v21495_v49  ;;  %21496 = vst [vmem:[#allocation32_spill] sm:$0xff] %v16921_v14  ;;  %v16932_v56 = vpack.c.bf16 %v400_v8, %v393_v50  ;;  %v21500_v49 = vand.u32 4294901760, %v16552_v26  ;;  %14729 = vmatprep.subr.bf16.mxu1 %v16751_v31 }
  0x22   :  { %v288_v18 = vand.u32 4294901760, %v287_v21  ;;  %v301_v19 = vsub.f32 %v16893_v12, %v21497_v17  ;;  %21498 = vst [vmem:[#allocation33_spill] sm:$0xff] %v16929_v20  ;;  %v407_v13 = vand.u32 4294901760, %v406_v51  ;;  %v21502_v21 = vand.u32 4294901760, %v16557_v27 }
  0x23   :  { %21499 = vst [vmem:[#allocation34_spill] sm:$0xff] %v16932_v56  ;;  %v414_v43 = vand.u32 4294901760, %v413_v5  ;;  %v16937_v3 = vsub.f32 %v16552_v26, %v21500_v49  ;;  %v295_v7 = vand.u32 4294901760, %v294_v25  ;;  %14775 = vmatpush3.bf16.msra.mxu0 %v16929_v20  ;;  %v21503_v50 = vand.u32 4294901760, %v16562_v28  ;;  %14731 = vmatpush3.bf16.msra.mxu1 %v16834_v55 }
  0x24   :  { %v16940_v17 = vpack.c.bf16 %v288_v18, %v281_v62  ;;  %v16946_v4 = vsub.f32 %v16557_v27, %v21502_v21  ;;  %v302_v8 = vand.u32 4294901760, %v301_v19  ;;  %v21504_v5 = vand.u32 4294901760, %v16571_v32  ;;  %14733 = vmatprep.subr.bf16.mxu1 %v16846_v63 }
  0x25   :  { %v16951_v51 = vsub.f32 %v16562_v28, %v21503_v50  ;;  %v21147_v26 = vand.u32 4294901760, %v16937_v3  ;;  %v21505_v18 = vand.u32 4294901760, %v16576_v33  ;;  %v16964_v27 = vpack.c.bf16 %v414_v43, %v407_v13 }
  0x26   :  { %21501 = vst [vmem:[#allocation35_spill] sm:$0xff] %v16940_v17  ;;  %v16957_v62 = vsub.f32 %v16571_v32, %v21504_v5  ;;  %v21148_v49 = vand.u32 4294901760, %v16946_v4  ;;  %v16970_v19 = vpack.c.bf16 %v16946_v4, %v16937_v3  ;;  %v21509_v5 = vand.u32 4294901760, %v16581_v34  ;;  %257 = vmatmul.mubr.f32.vlgmr.msra.gmra.mrb[0].mxu1 %v16836_v9 }
  0x27   :  { %v16962_v25 = vsub.f32 %v16576_v33, %v21505_v18  ;;  %21506 = vst [vmem:[#allocation36_spill] sm:$0xff] %v16964_v27  ;;  %v21150_v28 = vand.u32 4294901760, %v16951_v51  ;;  %v420_v32 = vsub.f32 %v16937_v3, %v21147_v26  ;;  %14735 = vmatpush3.bf16.msra.mxu1 %v16921_v14  ;;  %487 = vmatprep.mubr.f32.mxu1 %v16753_v58 }
  0x28   :  { %21507 = vst [vmem:[#allocation37_spill] sm:$0xff] %v16970_v19  ;;  %v21152_v21 = vand.u32 4294901760, %v16957_v62  ;;  %v16979_v33 = vpack.c.bf16 %v16957_v62, %v16951_v51  ;;  %v427_v13 = vsub.f32 %v16946_v4, %v21148_v49  ;;  %14777 = vmatprep.subr.bf16.mxu0 %v16970_v19  ;;  %v16993_v18 = vsub.f32 %v16581_v34, %v21509_v5 }
  0x29   :  { %v308_v50 = vsub.f32 %v16951_v51, %v21150_v28  ;;  %v421_v26 = vand.u32 4294901760, %v420_v32  ;;  %v21510_v49 = vand.u32 4294901760, %v16962_v25  ;;  %v21511_v28 = vand.u32 4294901760, %v16596_v39  ;;  %14737 = vmatprep.subr.bf16.mxu1 %v16932_v56 }
  0x2a   :  { %21508 = vst [vmem:[#allocation38_spill] sm:$0xff] %v16979_v33  ;;  %v315_v43 = vsub.f32 %v16957_v62, %v21152_v21  ;;  %14779 = vmatpush3.bf16.msra.mxu0 %v16979_v33  ;;  %v17008_v34 = vpack.c.bf16 %v302_v8, %v295_v7  ;;  %v428_v32 = vand.u32 4294901760, %v427_v13  ;;  %v21157_v5 = vand.u32 4294901760, %v16993_v18 }
  0x2b   :  { %v434_v20 = vsub.f32 %v16962_v25, %v21510_v49  ;;  %v17005_v19 = vsub.f32 %v16596_v39, %v21511_v28  ;;  %v21513_v21 = vand.u32 4294901760, %v16601_v40  ;;  %v309_v49 = vand.u32 4294901760, %v308_v50  ;;  %14739 = vmatpush3.bf16.msra.mxu1 %v16940_v17 }
  0x2c   :  { %21512 = vst [vmem:[#allocation39_spill] sm:$0xff] %v17008_v34  ;;  %v316_v63 = vand.u32 4294901760, %v315_v43  ;;  %v17020_v39 = vpack.c.bf16 %v16993_v18, %v16962_v25  ;;  %v21518_v50 = vand.u32 4294901760, %v16620_v45  ;;  %14741 = vmatprep.subr.bf16.mxu1 %v16964_v27 }
  0x2d   :  { %v17014_v33 = vsub.f32 %v16601_v40, %v21513_v21  ;;  %v21158_v55 = vand.u32 4294901760, %v17005_v19  ;;  %v435_v7 = vand.u32 4294901760, %v434_v20  ;;  %v441_v40 = vsub.f32 %v16993_v18, %v21157_v5 }
  0x2e   :  { %21514 = vst [vmem:[#allocation40_spill] sm:$0xff] %v17020_v39  ;;  %v17032_v21 = vpack.c.bf16 %v428_v32, %v421_v26  ;;  %14781 = vmatprep.subr.bf16.mxu0 %v17020_v39  ;;  %v21517_v20 = vand.u32 4294901760, %v16606_v41  ;;  %v17046_v5 = vsub.f32 %v16620_v45, %v21518_v50  ;;  %v17063_v45 = vpack.c.bf16 %v316_v63, %v309_v49 }
  0x2f   :  { %v17030_v28 = vpack.c.bf16 %v17014_v33, %v17005_v19  ;;  %v322_v43 = vsub.f32 %v17005_v19, %v21158_v55  ;;  %v442_v8 = vand.u32 4294901760, %v441_v40  ;;  %v21519_v26 = vand.u32 4294901760, %v17014_v33  ;;  %14743 = vmatpush3.bf16.msra.mxu1 %v17008_v34 }
  0x30   :  { %21516 = vst [vmem:[#allocation42_spill] sm:$0xff] %v17032_v21  ;;  %v17041_v13 = vsub.f32 %v16606_v41, %v21517_v20  ;;  %v21520_v55 = vand.u32 4294901760, %v16625_v46  ;;  %v21521_v41 = vand.u32 4294901760, %v16630_v47  ;;  %21522 = vst [vmem:[#allocation43_spill] sm:$0xff] %v17063_v45  ;;  %v21163_v50 = vand.u32 4294901760, %v17046_v5  ;;  %14745 = vmatprep.subr.bf16.mxu1 %v17032_v21 }
  0x31   :  { %21515 = vst [vmem:[#allocation41_spill] sm:$0xff] %v17030_v28  ;;  %v329_v32 = vsub.f32 %v17014_v33, %v21519_v26  ;;  %14783 = vmatpush3.bf16.msra.mxu0 %v17030_v28 }
  0x32   :  { %v17055_v9 = vsub.f32 %v16625_v46, %v21520_v55  ;;  %v17060_v20 = vsub.f32 %v16630_v47, %v21521_v41  ;;  %v21161_v40 = vand.u32 4294901760, %v17041_v13  ;;  %v17069_v26 = vpack.c.bf16 %v17046_v5, %v17041_v13 }
  0x33   :  { %v323_v46 = vand.u32 4294901760, %v322_v43  ;;  %v330_v55 = vand.u32 4294901760, %v329_v32  ;;  %v455_v49 = vsub.f32 %v17046_v5, %v21163_v50  ;;  %v21525_v43 = vand.u32 4294901760, %v16644_v52  ;;  %14747 = vmatpush3.bf16.msra.mxu1 %v17063_v45 }
  0x34   :  { %21523 = vst [vmem:[#allocation44_spill] sm:$0xff] %v17069_v26  ;;  %v21167_v28 = vand.u32 4294901760, %v17055_v9  ;;  %v448_v63 = vsub.f32 %v17041_v13, %v21161_v40  ;;  %14785 = vmatprep.subr.bf16.mxu0 %v17069_v26  ;;  %v17083_v41 = vpack.c.bf16 %v17060_v20, %v17055_v9  ;;  %v17090_v47 = vpack.c.bf16 %v442_v8, %v435_v7 }
  0x35   :  { %v17088_v32 = vsub.f32 %v16644_v52, %v21525_v43  ;;  %v21527_v27 = vand.u32 4294901760, %v17060_v20  ;;  %v21528_v26 = vand.u32 4294901760, %v16649_v53  ;;  %v456_v52 = vand.u32 4294901760, %v455_v49 }
  0x36   :  { %21524 = vst [vmem:[#allocation45_spill] sm:$0xff] %v17083_v41  ;;  %21526 = vst [vmem:[#allocation46_spill] sm:$0xff] %v17090_v47  ;;  %v336_v40 = vsub.f32 %v17055_v9, %v21167_v28  ;;  %v449_v39 = vand.u32 4294901760, %v448_v63  ;;  %14787 = vmatpush3.bf16.msra.mxu0 %v17083_v41  ;;  %v21529_v8 = vand.u32 4294901760, %v16654_v54  ;;  %14749 = vmatprep.subr.bf16.mxu1 %v17090_v47 }
  0x37   :  { %v343_v50 = vsub.f32 %v17060_v20, %v21527_v27  ;;  %v17101_v17 = vsub.f32 %v16649_v53, %v21528_v26  ;;  %v21170_v7 = vand.u32 4294901760, %v17088_v32  ;;  %v17112_v27 = vpack.c.bf16 %v330_v55, %v323_v46 }
  0x38   :  { %v17109_v43 = vsub.f32 %v16654_v54, %v21529_v8  ;;  %v337_v28 = vand.u32 4294901760, %v336_v40  ;;  %v21531_v26 = vand.u32 4294901760, %v16668_v59  ;;  %v17128_v46 = vpack.c.bf16 %v456_v52, %v449_v39 }
  0x39   :  { %21530 = vst [vmem:[#allocation47_spill] sm:$0xff] %v17112_v27  ;;  %v21169_v53 = vand.u32 4294901760, %v17101_v17  ;;  %v344_v49 = vand.u32 4294901760, %v343_v50  ;;  %v462_v41 = vsub.f32 %v17088_v32, %v21170_v7  ;;  %v17126_v8 = vpack.c.bf16 %v17101_v17, %v17088_v32  ;;  %14751 = vmatpush3.bf16.msra.mxu1 %v17112_v27 }
  0x3a   :  { %v17118_v63 = vsub.f32 %v16668_v59, %v21531_v26  ;;  %v21172_v54 = vand.u32 4294901760, %v17109_v43  ;;  %21533 = vst [vmem:[#allocation49_spill] sm:$0xff] %v17128_v46  ;;  %v21535_v39 = vand.u32 4294901760, %v16673_v60  ;;  %14753 = vmatprep.subr.bf16.mxu1 %v17128_v46 }
  0x3b   :  { %21532 = vst [vmem:[#allocation48_spill] sm:$0xff] %v17126_v8  ;;  %v469_v40 = vsub.f32 %v17101_v17, %v21169_v53  ;;  %v463_v55 = vand.u32 4294901760, %v462_v41  ;;  %14789 = vmatprep.subr.bf16.mxu0 %v17126_v8  ;;  %v21536_v53 = vand.u32 4294901760, %v16678_v61 }
  0x3c   :  { %v17136_v50 = vpack.c.bf16 %v17118_v63, %v17109_v43  ;;  %v350_v26 = vsub.f32 %v17109_v43, %v21172_v54  ;;  %v17146_v52 = vsub.f32 %v16673_v60, %v21535_v39  ;;  %v21537_v41 = vand.u32 4294901760, %v17118_v63 }
  0x3d   :  { %v17151_v7 = vsub.f32 %v16678_v61, %v21536_v53  ;;  %v470_v59 = vand.u32 4294901760, %v469_v40  ;;  %v21538_v54 = vand.u32 4294901760, %v16698_v29  ;;  %v21539_v60 = vand.u32 4294901760, %v16703_v37 }
  0x3e   :  { %21534 = vst [vmem:[#allocation50_spill] sm:$0xff] %v17136_v50  ;;  %v357_v45 = vsub.f32 %v17118_v63, %v21537_v41  ;;  %14791 = vmatpush3.bf16.msra.mxu0 %v17136_v50  ;;  %v21177_v61 = vand.u32 4294901760, %v17146_v52  ;;  %v17174_v41 = vpack.c.bf16 %v344_v49, %v337_v28  ;;  %v351_v50 = vand.u32 4294901760, %v350_v26 }
  0x3f   :  { %v17161_v8 = vsub.f32 %v16698_v29, %v21538_v54  ;;  %v17166_v39 = vsub.f32 %v16703_v37, %v21539_v60  ;;  %v21176_v53 = vand.u32 4294901760, %v17151_v7  ;;  %v17172_v40 = vpack.c.bf16 %v17151_v7, %v17146_v52 }
  0x40   :  { %21541 = vst [vmem:[#allocation52_spill] sm:$0xff] %v17174_v41  ;;  %v358_v54 = vand.u32 4294901760, %v357_v45  ;;  %v476_v37 = vsub.f32 %v17146_v52, %v21177_v61  ;;  %v17191_v49 = vpack.c.bf16 %v470_v59, %v463_v55  ;;  %v21545_v61 = vand.u32 4294901760, %v16763_v30  ;;  %14755 = vmatpush3.bf16.msra.mxu1 %v17174_v41  ;;  %v21624_v41 = vld [vmem:[#allocation22_spill] sm:$0xff] }
  0x41   :  { %21540 = vst [vmem:[#allocation51_spill] sm:$0xff] %v17172_v40  ;;  %v21183_v47 = vand.u32 4294901760, %v17161_v8  ;;  %v21182_v29 = vand.u32 4294901760, %v17166_v39  ;;  %v483_v60 = vsub.f32 %v17151_v7, %v21176_v53  ;;  %14793 = vmatprep.subr.bf16.mxu0 %v17172_v40  ;;  %v17188_v28 = vpack.c.bf16 %v17166_v39, %v17161_v8 }
  0x42   :  { %21543 = vst [vmem:[#allocation54_spill] sm:$0xff] %v17191_v49  ;;  %v21544_v53 = vand.u32 4294901760, %v16758_v38  ;;  %v477_v40 = vand.u32 4294901760, %v476_v37  ;;  %v21547_v59 = vand.u32 4294901760, %v16772_v24  ;;  %v21548_v55 = vand.u32 4294901760, %v16777_v0  ;;  %14757 = vmatprep.subr.bf16.mxu1 %v17191_v49  ;;  %v17557_v49 = vld [vmem:[%s21086_s1 + $0x358] sm:$0xff] }
  0x43   :  { %21542 = vst [vmem:[#allocation53_spill] sm:$0xff] %v17188_v28  ;;  %v364_v45 = vsub.f32 %v17161_v8, %v21183_v47  ;;  %v371_v26 = vsub.f32 %v17166_v39, %v21182_v29  ;;  %v484_v21 = vand.u32 4294901760, %v483_v60  ;;  %14795 = vmatpush3.bf16.msra.mxu0 %v17188_v28  ;;  %v21550_v29 = vand.u32 4294901760, %v16782_v1  ;;  %v17572_v28 = vld [vmem:[%s21086_s1 + $0x3e0] sm:$0xff] }
  0x44   :  { %v17203_v27 = vpack.c.bf16 %v21545_v61, %v21544_v53  ;;  %v17210_v46 = vpack.c.bf16 %v21548_v55, %v21547_v59  ;;  %v21551_v38 = vand.u32 4294901760, %v16841_v44  ;;  %v17220_v30 = vpack.c.bf16 %v358_v54, %v351_v50 }
  0x45   :  { %v365_v61 = vand.u32 4294901760, %v364_v45  ;;  %v372_v53 = vand.u32 4294901760, %v371_v26  ;;  %v17223_v24 = vpack.c.bf16 %v484_v21, %v477_v40  ;;  %v21555_v0 = vand.u32 4294901760, %v16851_v6 }
  0x46   :  { %21546 = vst [vmem:[#allocation55_spill] sm:$0xff] %v17203_v27  ;;  %21549 = vst [vmem:[#allocation56_spill] sm:$0xff] %v17210_v46  ;;  %14829 = vmatprep.subr.bf16.mxu0 %v17203_v27  ;;  %v17217_v47 = vpack.c.bf16 %v21551_v38, %v21550_v29  ;;  %627 = vmatmul.mubr.f32.vlgmr.msra.gmra.mrb[0].mxu0 %v16767_v57  ;;  %v21556_v1 = vand.u32 4294901760, %v16858_v48  ;;  %v21558_v50 = vand.u32 4294901760, %v16869_v42  ;;  %v21559_v29 = vand.u32 4294901760, %v16874_v36 }
  0x47   :  { %21553 = vst [vmem:[#allocation58_spill] sm:$0xff] %v17220_v30  ;;  %21554 = vst [vmem:[#allocation59_spill] sm:$0xff] %v17223_v24  ;;  %14831 = vmatpush3.bf16.msra.mxu0 %v17210_v46  ;;  %901 = vmatprep.mubr.f32.mxu0 %v16753_v58  ;;  %v17242_v21 = vpack.c.bf16 %v372_v53, %v365_v61  ;;  %v21562_v6 = vand.u32 4294901760, %v16879_v2  ;;  %v21563_v48 = vand.u32 4294901760, %v16893_v12  ;;  %v21565_v42 = vand.u32 4294901760, %v16937_v3  ;;  %v17271_v3 = vld [vmem:[%s21087_s0 + $0x8] sm:$0xff] }
  0x48   :  { %21552 = vst [vmem:[#allocation57_spill] sm:$0xff] %v17217_v47  ;;  %v17231_v44 = vpack.c.bf16 %v21556_v1, %v21555_v0  ;;  %14833 = vmatprep.subr.bf16.mxu0 %v17217_v47  ;;  %v17238_v54 = vpack.c.bf16 %v21559_v29, %v21558_v50  ;;  %14759 = vmatpush3.bf16.msra.mxu1 %v17220_v30  ;;  %v21566_v36 = vand.u32 4294901760, %v16946_v4  ;;  %v21568_v2 = vand.u32 4294901760, %v16951_v51  ;;  %v21590_v29 = vld [vmem:[#allocation7_spill] sm:$0xff]  ;;  %v17552_v46 = vld [vmem:[%s21086_s1 + $0x350] sm:$0xff] }
  0x49   :  { %21561 = vst [vmem:[#allocation62_spill] sm:$0xff] %v17242_v21  ;;  %14761 = vmatprep.subr.bf16.mxu1 %v17223_v24  ;;  %v17250_v40 = vpack.c.bf16 %v21563_v48, %v21562_v6  ;;  %v21569_v12 = vand.u32 4294901760, %v16957_v62  ;;  %21571 = vst [vmem:[#allocation66_spill] sm:$0xff] %v17271_v3  ;;  %v21572_v4 = vand.u32 4294901760, %v16962_v25  ;;  %v21573_v45 = vand.u32 4294901760, %v16993_v18  ;;  %v21591_v6 = vld [vmem:[#allocation8_spill] sm:$0xff] }
  0x4a   :  { %21557 = vst [vmem:[#allocation60_spill] sm:$0xff] %v17231_v44  ;;  %21560 = vst [vmem:[#allocation61_spill] sm:$0xff] %v17238_v54  ;;  %v17257_v37 = vpack.c.bf16 %v21566_v36, %v21565_v42  ;;  %v21575_v51 = vand.u32 4294901760, %v17005_v19  ;;  %v21576_v62 = vand.u32 4294901760, %v17014_v33  ;;  %v147_v25 = vcombine.high %v17271_v3, %v17271_v3  ;;  %v21582_v19 = vld [vmem:[#allocation6_spill] sm:$0xff] }
  0x4b   :  { %14835 = vmatpush3.bf16.msra.mxu0 %v17231_v44  ;;  %21564 = vst [vmem:[#allocation63_spill] sm:$0xff] %v17250_v40  ;;  %v17266_v60 = vpack.c.bf16 %v21569_v12, %v21568_v2  ;;  %v17279_v26 = vpack.c.bf16 %v21573_v45, %v21572_v4  ;;  %v21578_v18 = vand.u32 4294901760, %v17041_v13  ;;  %v21579_v55 = vand.u32 4294901760, %v17046_v5 }
  0x4c   :  { %14837 = vmatprep.subr.bf16.mxu0 %v17238_v54  ;;  %21567 = vst [vmem:[#allocation64_spill] sm:$0xff] %v17257_v37  ;;  %14763 = vmatpush3.bf16.msra.mxu1 %v17242_v21  ;;  %v17289_v59 = vpack.c.bf16 %v21576_v62, %v21575_v51  ;;  %v17301_v61 = vand.u32 4294901760, %v147_v25  ;;  %v21583_v33 = vand.u32 4294901760, %v17055_v9  ;;  %v21584_v53 = vand.u32 4294901760, %v17060_v20  ;;  %v17325_v9 = vld [vmem:[%s21086_s1 + $0x380] sm:$0xff]  ;;  %v17330_v20 = vld [vmem:[%s21086_s1 + $0x388] sm:$0xff] }
  0x4d   :  { %14797 = vmatprep.subr.bf16.mxu1 %v16515_v15  ;;  %21570 = vst [vmem:[#allocation65_spill] sm:$0xff] %v17266_v60  ;;  %21574 = vst [vmem:[#allocation67_spill] sm:$0xff] %v17279_v26  ;;  %v17298_v38 = vpack.c.bf16 %v21579_v55, %v21578_v18  ;;  %v21587_v5 = vand.u32 4294901760, %v17088_v32  ;;  %v21588_v1 = vand.u32 4294901760, %v17101_v17  ;;  %v21592_v17 = vand.u32 4294901760, %v17109_v43  ;;  %v17355_v43 = vld [vmem:[%s21086_s1 + $0x300] sm:$0xff] }
  0x4e   :  { %21577 = vst [vmem:[#allocation68_spill] sm:$0xff] %v17289_v59  ;;  %21581 = vst [vmem:[#allocation70_spill] sm:$0xff] %v17301_v61  ;;  %v17309_v0 = vpack.c.bf16 %v21584_v53, %v21583_v33  ;;  %v17312_v13 = vsub.f32 %v147_v25, %v17301_v61  ;;  %v21593_v32 = vand.u32 4294901760, %v17118_v63  ;;  %v21596_v36 = vand.u32 4294901760, %v17146_v52  ;;  %v17360_v63 = vld [vmem:[%s21086_s1 + $0x308] sm:$0xff]  ;;  %v21599_v51 = vld [vmem:[#allocation9_spill] sm:$0xff] }
  0x4f   :  { %14839 = vmatpush3.bf16.msra.mxu0 %v17250_v40  ;;  %489 = vmatmul.mubr.f32.vlgmr.msra.gmra.mrb[2].mxu1 %v16744_v11  ;;  %21580 = vst [vmem:[#allocation69_spill] sm:$0xff] %v17298_v38  ;;  %v17319_v50 = vpack.c.bf16 %v21588_v1, %v21587_v5  ;;  %v21597_v2 = vand.u32 4294901760, %v17151_v7  ;;  %v21185_v4 = vand.u32 4294901760, %v17325_v9  ;;  %v21184_v45 = vand.u32 4294901760, %v17330_v20  ;;  %v17366_v7 = vld [vmem:[%s21086_s1 + $0x390] sm:$0xff]  ;;  %v17371_v52 = vld [vmem:[%s21086_s1 + $0x398] sm:$0xff] }
  0x50   :  { %14841 = vmatprep.subr.bf16.mxu0 %v17257_v37  ;;  %14799 = vmatpush3.bf16.msra.mxu1 %v16539_v22  ;;  %21585 = vst [vmem:[#allocation71_spill] sm:$0xff] %v17309_v0  ;;  %21586 = vst [vmem:[#allocation72_spill] sm:$0xff] %v17312_v13  ;;  %v17338_v48 = vpack.c.bf16 %v21593_v32, %v21592_v17  ;;  %v17341_v42 = vand.u32 4294901760, %v17312_v13  ;;  %v21600_v62 = vld [vmem:[#allocation10_spill] sm:$0xff]  ;;  %v21601_v25 = vand.u32 4294901760, %v17161_v8  ;;  %v21602_v18 = vand.u32 4294901760, %v17166_v39 }
  0x51   :  { %731 = vmatprep.mubr.f32.mxu1 %v16804_v10  ;;  %14801 = vmatprep.subr.bf16.mxu1 %v16545_v23  ;;  %21589 = vst [vmem:[#allocation73_spill] sm:$0xff] %v17319_v50  ;;  %v17348_v12 = vpack.c.bf16 %v21597_v2, %v21596_v36  ;;  %v21192_v33 = vand.u32 4294901760, %v17355_v43  ;;  %v21191_v53 = vand.u32 4294901760, %v17360_v63  ;;  %v17390_v1 = vpack.c.bf16 %v21184_v45, %v21185_v4  ;;  %v17397_v17 = vld [vmem:[%s21086_s1 + $0x310] sm:$0xff]  ;;  %v17402_v32 = vld [vmem:[%s21086_s1 + $0x318] sm:$0xff]  ;;  %v21604_v36 = vld [vmem:[#allocation11_spill] sm:$0xff] }
  0x52   :  { %21594 = vst [vmem:[#allocation74_spill] sm:$0xff] %v17338_v48  ;;  %21595 = vst [vmem:[#allocation75_spill] sm:$0xff] %v17341_v42  ;;  %v17379_v55 = vpack.c.bf16 %v21602_v18, %v21601_v25  ;;  %v1111_v5 = vsub.f32 %v17312_v13, %v17341_v42  ;;  %v17408_v2 = vld [vmem:[%s21086_s1 + $0x3a0] sm:$0xff]  ;;  %v17413_v25 = vld [vmem:[%s21086_s1 + $0x3a8] sm:$0xff]  ;;  %v21201_v4 = vand.u32 4294901760, %v17397_v17  ;;  %v21200_v39 = vand.u32 4294901760, %v17402_v32 }
  0x53   :  { %14843 = vmatpush3.bf16.msra.mxu0 %v17266_v60  ;;  %21598 = vst [vmem:[#allocation76_spill] sm:$0xff] %v17348_v12  ;;  %v21605_v18 = vld [vmem:[#allocation12_spill] sm:$0xff]  ;;  %v17421_v45 = vpack.c.bf16 %v21191_v53, %v21192_v33  ;;  %v21608_v10 = vand.u32 4294901760, %v17366_v7  ;;  %v21609_v57 = vand.u32 4294901760, %v17371_v52  ;;  %v17439_v53 = vld [vmem:[%s21086_s1 + $0x320] sm:$0xff]  ;;  %v21611_v33 = vld [vmem:[#allocation13_spill] sm:$0xff] }
  0x54   :  { %14845 = vmatprep.subr.bf16.mxu0 %v17279_v26  ;;  %14803 = vmatpush3.bf16.msra.mxu1 %v16588_v35  ;;  %21603 = vst [vmem:[#allocation77_spill] sm:$0xff] %v17379_v55  ;;  %v17425_v8 = vand.u32 4294901760, %v1111_v5  ;;  %v17444_v5 = vld [vmem:[%s21086_s1 + $0x328] sm:$0xff]  ;;  %v17575_v34 = vand.u32 4294901760, %v17271_v3  ;;  %v21629_v27 = vand.u32 4294901760, %v17325_v9 }
  0x55   :  { %14805 = vmatprep.subr.bf16.mxu1 %v21582_v19  ;;  %21606 = vst [vmem:[#allocation78_spill] sm:$0xff] %v17421_v45 }
  0x56   :  { %21607 = vst [vmem:[#allocation79_spill] sm:$0xff] %v17425_v8  ;;  %21628 = vst [vmem:[#allocation85_spill] sm:$0xff] %v17575_v34  ;;  %v17590_v47 = vsub.f32 %v17325_v9, %v21629_v27  ;;  %v17608_v27 = vld [vmem:[%s21086_s1 + $0x368] sm:$0xff]  ;;  %v21633_v9 = vand.u32 4294901760, %v17330_v20 }
  0x57   :  { %14847 = vmatpush3.bf16.msra.mxu0 %v17289_v59  ;;  %v21615_v59 = vand.u32 4294901760, %v17413_v25 }
  0x58   :  { %14849 = vmatprep.subr.bf16.mxu0 %v17298_v38  ;;  %14807 = vmatpush3.bf16.msra.mxu1 %v21590_v29  ;;  %v21614_v38 = vand.u32 4294901760, %v17408_v2 }
  0x59   :  { %14809 = vmatprep.subr.bf16.mxu1 %v21591_v6 }
  0x5a   :  { %v17474_v26 = vpack.c.bf16 %v21615_v59, %v21614_v38  ;;  %v17492_v59 = vld [vmem:[%s21086_s1 + $0x3c0] sm:$0xff]  ;;  %v17497_v38 = vld [vmem:[%s21086_s1 + $0x3c8] sm:$0xff] }
  0x5b   :  { %14851 = vmatpush3.bf16.msra.mxu0 %v17309_v0  ;;  %v21208_v0 = vand.u32 4294901760, %v17444_v5 }
  0x5c   :  { %14853 = vmatprep.subr.bf16.mxu0 %v17319_v50  ;;  %14811 = vmatpush3.bf16.msra.mxu1 %v21599_v51  ;;  %v21209_v50 = vand.u32 4294901760, %v17439_v53  ;;  %21616 = vst [vmem:[#allocation81_spill] sm:$0xff] %v17474_v26 }
  0x5d   :  { %14813 = vmatprep.subr.bf16.mxu1 %v21600_v62 }
  0x5e   :  { %v17505_v37 = vpack.c.bf16 %v21208_v0, %v21209_v50  ;;  %v17521_v0 = vld [vmem:[%s21086_s1 + $0x340] sm:$0xff]  ;;  %v17526_v50 = vld [vmem:[%s21086_s1 + $0x348] sm:$0xff] }
  0x5f   :  { %14855 = vmatpush3.bf16.msra.mxu0 %v17338_v48  ;;  %v21612_v48 = vld [vmem:[#allocation14_spill] sm:$0xff]  ;;  %v21630_v56 = vand.u32 4294901760, %v17521_v0  ;;  %v21631_v14 = vand.u32 4294901760, %v17526_v50 }
  0x60   :  { %14857 = vmatprep.subr.bf16.mxu0 %v17348_v12  ;;  %14815 = vmatpush3.bf16.msra.mxu1 %v21604_v36  ;;  %v17432_v12 = vpack.c.bf16 %v21609_v57, %v21608_v10  ;;  %v17450_v57 = vld [vmem:[%s21086_s1 + $0x3b0] sm:$0xff]  ;;  %v17455_v10 = vld [vmem:[%s21086_s1 + $0x3b8] sm:$0xff]  ;;  %21617 = vst [vmem:[#allocation82_spill] sm:$0xff] %v17505_v37 }
  0x61   :  { %14817 = vmatprep.subr.bf16.mxu1 %v21605_v18  ;;  %v21618_v40 = vand.u32 4294901760, %v17450_v57  ;;  %v21619_v21 = vand.u32 4294901760, %v17455_v10 }
  0x62   :  { %21610 = vst [vmem:[#allocation80_spill] sm:$0xff] %v17432_v12 }
  0x63   :  { %14859 = vmatpush3.bf16.msra.mxu0 %v17379_v55  ;;  %v17464_v55 = vpack.c.bf16 %v21200_v39, %v21201_v4  ;;  %v17481_v39 = vld [vmem:[%s21086_s1 + $0x330] sm:$0xff]  ;;  %v17486_v4 = vld [vmem:[%s21086_s1 + $0x338] sm:$0xff]  ;;  %v17514_v54 = vpack.c.bf16 %v21619_v21, %v21618_v40 }
  0x64   :  { %14893 = vmatprep.subr.bf16.mxu0 %v17390_v1  ;;  %14819 = vmatpush3.bf16.msra.mxu1 %v21611_v33  ;;  %v21215_v60 = vand.u32 4294901760, %v17481_v39  ;;  %v17532_v21 = vld [vmem:[%s21086_s1 + $0x3d0] sm:$0xff]  ;;  %v17537_v40 = vld [vmem:[%s21086_s1 + $0x3d8] sm:$0xff]  ;;  %v21622_v24 = vand.u32 4294901760, %v17486_v4 }
  0x65   :  { %14821 = vmatprep.subr.bf16.mxu1 %v21612_v48  ;;  %21613 = vst [vmem:[#allocation13_spill] sm:$0xff] %v17464_v55  ;;  %21620 = vst [vmem:[#allocation83_spill] sm:$0xff] %v17514_v54 }
  0x66   :  { %903 = vmatmul.mubr.f32.vlgmr.msra.gmra.mrb[2].mxu0 %v16744_v11  ;;  %v17545_v44 = vpack.c.bf16 %v21622_v24, %v21215_v60  ;;  %v21625_v24 = vand.u32 4294901760, %v17492_v59  ;;  %v21626_v60 = vand.u32 4294901760, %v17497_v38 }
  0x67   :  { %14895 = vmatpush3.bf16.msra.mxu0 %v17421_v45  ;;  %1113 = vmatprep.mubr.f32.mxu0 %v17425_v8  ;;  %v21621_v8 = vld [vmem:[#allocation25_spill] sm:$0xff]  ;;  %v21670_v45 = vand.u32 4294901760, %v17444_v5 }
  0x68   :  { %14897 = vmatprep.subr.bf16.mxu0 %v17432_v12  ;;  %14823 = vmatpush3.bf16.msra.mxu1 %v16740_v16  ;;  %21623 = vst [vmem:[#allocation25_spill] sm:$0xff] %v17545_v44  ;;  %v17565_v30 = vpack.c.bf16 %v21626_v60, %v21625_v24  ;;  %v17603_v60 = vld [vmem:[%s21086_s1 + $0x360] sm:$0xff]  ;;  %v17613_v24 = vsub.f32 %v17330_v20, %v21633_v9  ;;  %v21638_v9 = vand.u32 4294901760, %v17360_v63  ;;  %v21659_v12 = vand.u32 4294901760, %v17402_v32 }
  0x69   :  { %14825 = vmatprep.subr.bf16.mxu1 %v16751_v31 }
  0x6a   :  { %21627 = vst [vmem:[#allocation84_spill] sm:$0xff] %v17565_v30 }
  0x6b   :  { %14899 = vmatpush3.bf16.msra.mxu0 %v17464_v55 }
  0x6c   :  { %14901 = vmatprep.subr.bf16.mxu0 %v17474_v26  ;;  %14827 = vmatpush3.bf16.msra.mxu1 %v21621_v8 }
  0x6d   :  { %14861 = vmatprep.subr.bf16.mxu1 %v16515_v15  ;;  %v17626_v15 = vld [vmem:[%s21086_s1 + $0x3f0] sm:$0xff] }
  0x6f   :  { %14903 = vmatpush3.bf16.msra.mxu0 %v17505_v37  ;;  %735 = vmatmul.mubr.f32.vlgmr.msra.gmra.mrb[4].mxu1 %v21624_v41  ;;  %v17581_v41 = vld [vmem:[%s21086_s1 + $0x3e8] sm:$0xff] }
  0x70   :  { %14905 = vmatprep.subr.bf16.mxu0 %v17514_v54  ;;  %14863 = vmatpush3.bf16.msra.mxu1 %v16539_v22  ;;  %v17597_v22 = vpack.c.bf16 %v21631_v14, %v21630_v56  ;;  %v21634_v14 = vand.u32 4294901760, %v17532_v21  ;;  %v21635_v56 = vand.u32 4294901760, %v17537_v40  ;;  %v21644_v54 = vand.u32 4294901760, %v17371_v52 }
  0x71   :  { %1005 = vmatprep.mubr.f32.mxu1 %v16753_v58  ;;  %14865 = vmatprep.subr.bf16.mxu1 %v16545_v23 }
  0x72   :  { %21632 = vst [vmem:[#allocation86_spill] sm:$0xff] %v17597_v22  ;;  %v17620_v58 = vpack.c.bf16 %v21635_v56, %v21634_v14  ;;  %v17642_v14 = vld [vmem:[%s21086_s1 + $0x3f8] sm:$0xff]  ;;  %v17646_v56 = vsub.f32 %v17271_v3, %v17575_v34  ;;  %v17679_v37 = vsub.f32 %v17371_v52, %v21644_v54 }
  0x73   :  { %14907 = vmatpush3.bf16.msra.mxu0 %v17545_v44  ;;  %v21637_v44 = vand.u32 4294901760, %v17355_v43  ;;  %v17665_v3 = vld [vmem:[%s21086_s1 + $0x378] sm:$0xff] }
  0x74   :  { %14909 = vmatprep.subr.bf16.mxu0 %v17565_v30  ;;  %21636 = vst [vmem:[#allocation87_spill] sm:$0xff] %v17620_v58  ;;  %v17636_v30 = vsub.f32 %v17360_v63, %v21638_v9  ;;  %14867 = vmatpush3.bf16.msra.mxu1 %v16588_v35  ;;  %21639 = vst [vmem:[#allocation88_spill] sm:$0xff] %v17646_v56  ;;  %v17660_v35 = vld [vmem:[%s21086_s1 + $0x370] sm:$0xff]  ;;  %v21643_v9 = vand.u32 4294901760, %v17366_v7  ;;  %v17695_v52 = vand.u32 4294901760, %v17646_v56 }
  0x75   :  { %v17631_v20 = vsub.f32 %v17355_v43, %v21637_v44  ;;  %14869 = vmatprep.subr.bf16.mxu1 %v21582_v19  ;;  %v21640_v44 = vand.u32 4294901760, %v17552_v46  ;;  %v21641_v43 = vand.u32 4294901760, %v17557_v49  ;;  %v21645_v19 = vand.u32 4294901760, %v17572_v28 }
  0x76   :  { %v17674_v63 = vsub.f32 %v17366_v7, %v21643_v9  ;;  %21648 = vst [vmem:[#allocation91_spill] sm:$0xff] %v17695_v52  ;;  %v21652_v9 = vand.u32 4294901760, %v17613_v24 }
  0x77   :  { %v17653_v23 = vpack.c.bf16 %v21641_v43, %v21640_v44  ;;  %14911 = vmatpush3.bf16.msra.mxu0 %v17597_v22  ;;  %v21646_v22 = vand.u32 4294901760, %v17581_v41  ;;  %v21651_v43 = vand.u32 4294901760, %v17590_v47 }
  0x78   :  { %14913 = vmatprep.subr.bf16.mxu0 %v17620_v58  ;;  %14871 = vmatpush3.bf16.msra.mxu1 %v21590_v29  ;;  %v1247_v54 = vsub.f32 %v17613_v24, %v21652_v9  ;;  %v21653_v58 = vand.u32 4294901760, %v17397_v17  ;;  %v21658_v29 = vand.u32 4294901760, %v17636_v30 }
  0x79   :  { %21642 = vst [vmem:[#allocation89_spill] sm:$0xff] %v17653_v23  ;;  %v17686_v26 = vpack.c.bf16 %v21646_v22, %v21645_v19  ;;  %14873 = vmatprep.subr.bf16.mxu1 %v21591_v6  ;;  %v21649_v22 = vand.u32 4294901760, %v17603_v60  ;;  %v21650_v19 = vand.u32 4294901760, %v17608_v27  ;;  %v1240_v7 = vsub.f32 %v17590_v47, %v21651_v43 }
  0x7a   :  { %v17716_v55 = vsub.f32 %v17397_v17, %v21653_v58  ;;  %v21655_v43 = vand.u32 4294901760, %v17642_v14  ;;  %v1135_v6 = vsub.f32 %v17636_v30, %v21658_v29  ;;  %v17734_v58 = vsub.f32 %v17402_v32, %v21659_v12 }
  0x7b   :  { %21647 = vst [vmem:[#allocation90_spill] sm:$0xff] %v17686_v26  ;;  %v17702_v44 = vpack.c.bf16 %v21650_v19, %v21649_v22  ;;  %14915 = vmatpush3.bf16.msra.mxu0 %v17653_v23  ;;  %v21654_v22 = vand.u32 4294901760, %v17626_v15  ;;  %v21657_v23 = vand.u32 4294901760, %v17631_v20  ;;  %v21660_v17 = vand.u32 4294901760, %v17660_v35 }
  0x7c   :  { %14917 = vmatprep.subr.bf16.mxu0 %v17686_v26  ;;  %14875 = vmatpush3.bf16.msra.mxu1 %v21599_v51  ;;  %v1241_v26 = vand.u32 4294901760, %v1240_v7  ;;  %v17748_v29 = vpack.c.bf16 %v17613_v24, %v17590_v47  ;;  %v21663_v12 = vand.u32 4294901760, %v17408_v2  ;;  %v21664_v51 = vand.u32 4294901760, %v17413_v25 }
  0x7d   :  { %v17723_v19 = vpack.c.bf16 %v21655_v43, %v21654_v22  ;;  %v1128_v9 = vsub.f32 %v17631_v20, %v21657_v23  ;;  %v21661_v22 = vand.u32 4294901760, %v17665_v3  ;;  %v1117_v23 = vsub.f32 %v17646_v56, %v17695_v52  ;;  %14877 = vmatprep.subr.bf16.mxu1 %v21600_v62 }
  0x7e   :  { %21662 = vst [vmem:[#allocation93_spill] sm:$0xff] %v17748_v29  ;;  %v17753_v32 = vsub.f32 %v17408_v2, %v21663_v12  ;;  %v21665_v62 = vand.u32 4294901760, %v17674_v63  ;;  %v21666_v52 = vand.u32 4294901760, %v17679_v37  ;;  %v1136_v12 = vand.u32 4294901760, %v1135_v6 }
  0x7f   :  { %21656 = vst [vmem:[#allocation92_spill] sm:$0xff] %v17723_v19  ;;  %v17741_v43 = vpack.c.bf16 %v21661_v22, %v21660_v17  ;;  %v17758_v17 = vsub.f32 %v17413_v25, %v21664_v51  ;;  %14919 = vmatpush3.bf16.msra.mxu0 %v17702_v44  ;;  %v1248_v22 = vand.u32 4294901760, %v1247_v54  ;;  %v1129_v2 = vand.u32 4294901760, %v1128_v9 }
  0x80   :  { %v1254_v7 = vsub.f32 %v17674_v63, %v21665_v62  ;;  %v1261_v42 = vsub.f32 %v17679_v37, %v21666_v52  ;;  %14921 = vmatprep.subr.bf16.mxu0 %v17723_v19  ;;  %v21667_v25 = vand.u32 4294901760, %v17439_v53  ;;  %14879 = vmatpush3.bf16.msra.mxu1 %v21604_v36  ;;  %v17776_v62 = vand.u32 4294901760, %v1117_v23 }
  0x81   :  { %v17780_v52 = vpack.c.bf16 %v17636_v30, %v17631_v20  ;;  %v17785_v9 = vsub.f32 %v17444_v5, %v21670_v45  ;;  %14881 = vmatprep.subr.bf16.mxu1 %v21605_v18  ;;  %v21672_v51 = vand.u32 4294901760, %v17455_v10  ;;  %v17801_v45 = vpack.c.bf16 %v1248_v22, %v1241_v26 }
  0x82   :  { %v17773_v54 = vsub.f32 %v17439_v53, %v21667_v25  ;;  %21668 = vst [vmem:[#allocation94_spill] sm:$0xff] %v17776_v62  ;;  %v21671_v25 = vand.u32 4294901760, %v17450_v57  ;;  %v1255_v5 = vand.u32 4294901760, %v1254_v7  ;;  %v1262_v18 = vand.u32 4294901760, %v1261_v42 }
  0x83   :  { %21669 = vst [vmem:[#allocation95_spill] sm:$0xff] %v17780_v52  ;;  %v17798_v36 = vsub.f32 %v17455_v10, %v21672_v51  ;;  %14923 = vmatpush3.bf16.msra.mxu0 %v17741_v43  ;;  %21673 = vst [vmem:[#allocation96_spill] sm:$0xff] %v17801_v45  ;;  %v21674_v6 = vand.u32 4294901760, %v17716_v55  ;;  %v17806_v19 = vpack.c.bf16 %v1136_v12, %v1129_v2  ;;  %v21677_v7 = vand.u32 4294901760, %v17481_v39 }
  0x84   :  { %v17793_v23 = vsub.f32 %v17450_v57, %v21671_v25  ;;  %14957 = vmatprep.subr.bf16.mxu0 %v17748_v29  ;;  %v21675_v57 = vand.u32 4294901760, %v17734_v58  ;;  %v17814_v10 = vpack.c.bf16 %v17679_v37, %v17674_v63  ;;  %14883 = vmatpush3.bf16.msra.mxu1 %v21611_v33  ;;  %v17820_v42 = vpack.c.bf16 %v17734_v58, %v17716_v55 }
  0x85   :  { %v1142_v53 = vsub.f32 %v17716_v55, %v21674_v6  ;;  %v17826_v2 = vsub.f32 %v17481_v39, %v21677_v7  ;;  %v21678_v12 = vand.u32 4294901760, %v17486_v4  ;;  %14885 = vmatprep.subr.bf16.mxu1 %v21612_v48  ;;  %v21679_v6 = vand.u32 4294901760, %v17753_v32 }
  0x86   :  { %v1149_v25 = vsub.f32 %v17734_v58, %v21675_v57  ;;  %21676 = vst [vmem:[#allocation97_spill] sm:$0xff] %v17814_v10  ;;  %1119 = vmatmul.mubr.f32.vlgmr.msra.gmra.mrb[4].mxu0 %v17776_v62  ;;  %v21680_v22 = vand.u32 4294901760, %v17758_v17  ;;  %v21682_v29 = vand.u32 4294901760, %v17492_v59  ;;  %v21684_v7 = vand.u32 4294901760, %v17773_v54 }
  0x87   :  { %v17831_v51 = vsub.f32 %v17486_v4, %v21678_v12  ;;  %v1268_v57 = vsub.f32 %v17753_v32, %v21679_v6  ;;  %14959 = vmatpush3.bf16.msra.mxu0 %v17780_v52  ;;  %v17844_v4 = vpack.c.bf16 %v1262_v18, %v1255_v5  ;;  %v1143_v12 = vand.u32 4294901760, %v1142_v53  ;;  %1486 = vmatprep.mubr.f32.mxu0 %v17312_v13 }
  0x88   :  { %v1275_v26 = vsub.f32 %v17758_v17, %v21680_v22  ;;  %v17849_v62 = vsub.f32 %v17492_v59, %v21682_v29  ;;  %v21683_v6 = vand.u32 4294901760, %v17497_v38  ;;  %v1150_v22 = vand.u32 4294901760, %v1149_v25  ;;  %14961 = vmatprep.subr.bf16.mxu0 %v17814_v10  ;;  %14887 = vmatpush3.bf16.msra.mxu1 %v16740_v16 }
  0x89   :  { %21681 = vst [vmem:[#allocation98_spill] sm:$0xff] %v17844_v4  ;;  %v1156_v18 = vsub.f32 %v17773_v54, %v21684_v7  ;;  %v17863_v53 = vpack.c.bf16 %v17758_v17, %v17753_v32  ;;  %v17867_v59 = vpack.c.bf16 %v17785_v9, %v17773_v54  ;;  %v21688_v7 = vand.u32 4294901760, %v17521_v0  ;;  %14889 = vmatprep.subr.bf16.mxu1 %v16751_v31 }
  0x8a   :  { %v17854_v48 = vsub.f32 %v17497_v38, %v21683_v6  ;;  %v21687_v38 = vand.u32 4294901760, %v17785_v9  ;;  %v1269_v39 = vand.u32 4294901760, %v1268_v57  ;;  %v1276_v13 = vand.u32 4294901760, %v1275_v26 }
  0x8b   :  { %21685 = vst [vmem:[#allocation99_spill] sm:$0xff] %v17863_v53  ;;  %21686 = vst [vmem:[#allocation100_spill] sm:$0xff] %v17867_v59  ;;  %v17878_v6 = vsub.f32 %v17521_v0, %v21688_v7  ;;  %v21689_v10 = vand.u32 4294901760, %v17793_v23  ;;  %v21690_v16 = vand.u32 4294901760, %v17798_v36  ;;  %14963 = vmatpush3.bf16.msra.mxu0 %v17820_v42  ;;  %v21691_v0 = vand.u32 4294901760, %v17526_v50 }
  0x8c   :  { %v1163_v29 = vsub.f32 %v17785_v9, %v21687_v38  ;;  %v21692_v26 = vand.u32 4294901760, %v17532_v21  ;;  %v1157_v31 = vand.u32 4294901760, %v1156_v18  ;;  %14965 = vmatprep.subr.bf16.mxu0 %v17863_v53  ;;  %v21694_v5 = vand.u32 4294901760, %v17537_v40  ;;  %14891 = vmatpush3.bf16.msra.mxu1 %v21621_v8 }
  0x8d   :  { %v1282_v52 = vsub.f32 %v17793_v23, %v21689_v10  ;;  %v1289_v38 = vsub.f32 %v17798_v36, %v21690_v16  ;;  %v17893_v7 = vsub.f32 %v17526_v50, %v21691_v0  ;;  %v17900_v10 = vpack.c.bf16 %v1150_v22, %v1143_v12  ;;  %14925 = vmatprep.subr.bf16.mxu1 %v17801_v45 }
  0x8e   :  { %v17898_v57 = vsub.f32 %v17532_v21, %v21692_v26  ;;  %v17905_v16 = vpack.c.bf16 %v17798_v36, %v17793_v23  ;;  %v17910_v25 = vsub.f32 %v17537_v40, %v21694_v5  ;;  %v1164_v50 = vand.u32 4294901760, %v1163_v29 }
  0x8f   :  { %v21695_v21 = vand.u32 4294901760, %v17826_v2  ;;  %v21696_v22 = vand.u32 4294901760, %v17831_v51  ;;  %v17921_v26 = vpack.c.bf16 %v1276_v13, %v1269_v39  ;;  %v1283_v53 = vand.u32 4294901760, %v1282_v52  ;;  %14967 = vmatpush3.bf16.msra.mxu0 %v17867_v59  ;;  %1007 = vmatmul.mubr.f32.vlgmr.msra.gmra.mrb[6].mxu1 %v16744_v11 }
  0x90   :  { %21693 = vst [vmem:[#allocation101_spill] sm:$0xff] %v17905_v16  ;;  %v1290_v40 = vand.u32 4294901760, %v1289_v38  ;;  %v17925_v5 = vpack.c.bf16 %v17831_v51, %v17826_v2  ;;  %v21699_v29 = vand.u32 4294901760, %v17849_v62  ;;  %14969 = vmatprep.subr.bf16.mxu0 %v17905_v16  ;;  %v17940_v52 = vpack.c.bf16 %v17854_v48, %v17849_v62  ;;  %14927 = vmatpush3.bf16.msra.mxu1 %v17806_v19 }
  0x91   :  { %v1170_v12 = vsub.f32 %v17826_v2, %v21695_v21  ;;  %v1177_v18 = vsub.f32 %v17831_v51, %v21696_v22  ;;  %21697 = vst [vmem:[#allocation102_spill] sm:$0xff] %v17921_v26  ;;  %v21700_v22 = vand.u32 4294901760, %v17854_v48  ;;  %v21702_v38 = vand.u32 4294901760, %v17552_v46  ;;  %1349 = vmatprep.mubr.f32.mxu1 %v17301_v61  ;;  %14929 = vmatprep.subr.bf16.mxu1 %v17844_v4 }
  0x92   :  { %21698 = vst [vmem:[#allocation103_spill] sm:$0xff] %v17925_v5  ;;  %v1296_v21 = vsub.f32 %v17849_v62, %v21699_v29  ;;  %21701 = vst [vmem:[#allocation104_spill] sm:$0xff] %v17940_v52  ;;  %v17954_v13 = vpack.c.bf16 %v1164_v50, %v1157_v31  ;;  %v21705_v59 = vand.u32 4294901760, %v17878_v6  ;;  %v21709_v50 = vand.u32 4294901760, %v17581_v41 }
  0x93   :  { %v1303_v0 = vsub.f32 %v17854_v48, %v21700_v22  ;;  %v17946_v29 = vsub.f32 %v17552_v46, %v21702_v38  ;;  %v21703_v22 = vand.u32 4294901760, %v17557_v49  ;;  %v1171_v11 = vand.u32 4294901760, %v1170_v12  ;;  %14971 = vmatpush3.bf16.msra.mxu0 %v17925_v5 }
  0x94   :  { %21704 = vst [vmem:[#allocation105_spill] sm:$0xff] %v17954_v13  ;;  %v1178_v16 = vand.u32 4294901760, %v1177_v18  ;;  %v1184_v39 = vsub.f32 %v17878_v6, %v21705_v59  ;;  %v17961_v46 = vpack.c.bf16 %v1290_v40, %v1283_v53  ;;  %v21708_v38 = vand.u32 4294901760, %v17572_v28  ;;  %14973 = vmatprep.subr.bf16.mxu0 %v17940_v52  ;;  %14931 = vmatpush3.bf16.msra.mxu1 %v17900_v10 }
  0x95   :  { %v17951_v45 = vsub.f32 %v17557_v49, %v21703_v22  ;;  %v17965_v49 = vpack.c.bf16 %v17893_v7, %v17878_v6  ;;  %v17975_v12 = vsub.f32 %v17581_v41, %v21709_v50  ;;  %v1297_v59 = vand.u32 4294901760, %v1296_v21  ;;  %14933 = vmatprep.subr.bf16.mxu1 %v17921_v26 }
  0x96   :  { %21706 = vst [vmem:[#allocation106_spill] sm:$0xff] %v17961_v46  ;;  %v17970_v31 = vsub.f32 %v17572_v28, %v21708_v38  ;;  %v1304_v18 = vand.u32 4294901760, %v1303_v0  ;;  %v21710_v53 = vand.u32 4294901760, %v17893_v7  ;;  %v21711_v22 = vand.u32 4294901760, %v17898_v57 }
  0x97   :  { %21707 = vst [vmem:[#allocation107_spill] sm:$0xff] %v17965_v49  ;;  %v21712_v28 = vand.u32 4294901760, %v17910_v25  ;;  %v17992_v0 = vpack.c.bf16 %v17910_v25, %v17898_v57  ;;  %v17995_v21 = vpack.c.bf16 %v1178_v16, %v1171_v11  ;;  %v21717_v11 = vand.u32 4294901760, %v17626_v15  ;;  %14975 = vmatpush3.bf16.msra.mxu0 %v17965_v49 }
  0x98   :  { %v1191_v40 = vsub.f32 %v17893_v7, %v21710_v53  ;;  %v1310_v4 = vsub.f32 %v17898_v57, %v21711_v22  ;;  %v1185_v53 = vand.u32 4294901760, %v1184_v39  ;;  %v21715_v22 = vand.u32 4294901760, %v17603_v60  ;;  %14935 = vmatpush3.bf16.msra.mxu1 %v17954_v13 }
  0x99   :  { %v1317_v38 = vsub.f32 %v17910_v25, %v21712_v28  ;;  %21713 = vst [vmem:[#allocation108_spill] sm:$0xff] %v17992_v0  ;;  %21714 = vst [vmem:[#allocation109_spill] sm:$0xff] %v17995_v21  ;;  %v21716_v28 = vand.u32 4294901760, %v17608_v27  ;;  %v18013_v16 = vsub.f32 %v17626_v15, %v21717_v11  ;;  %v21718_v39 = vand.u32 4294901760, %v17642_v14  ;;  %14977 = vmatprep.subr.bf16.mxu0 %v17992_v0 }
  0x9a   :  { %v18000_v52 = vsub.f32 %v17603_v60, %v21715_v22  ;;  %v18020_v22 = vpack.c.bf16 %v1304_v18, %v1297_v59  ;;  %v18025_v50 = vpack.c.bf16 %v17951_v45, %v17946_v29  ;;  %v21721_v26 = vand.u32 4294901760, %v17946_v29  ;;  %14937 = vmatprep.subr.bf16.mxu1 %v17961_v46 }
  0x9b   :  { %v18005_v41 = vsub.f32 %v17608_v27, %v21716_v28  ;;  %v18018_v60 = vsub.f32 %v17642_v14, %v21718_v39  ;;  %v1192_v27 = vand.u32 4294901760, %v1191_v40  ;;  %v1311_v28 = vand.u32 4294901760, %v1310_v4 }
  0x9c   :  { %21719 = vst [vmem:[#allocation110_spill] sm:$0xff] %v18020_v22  ;;  %21720 = vst [vmem:[#allocation111_spill] sm:$0xff] %v18025_v50  ;;  %v1318_v5 = vand.u32 4294901760, %v1317_v38  ;;  %v1198_v15 = vsub.f32 %v17946_v29, %v21721_v26  ;;  %v21722_v11 = vand.u32 4294901760, %v17951_v45  ;;  %v18036_v59 = vpack.c.bf16 %v17975_v12, %v17970_v31  ;;  %14979 = vmatpush3.bf16.msra.mxu0 %v18025_v50 }
  0x9d   :  { %v21724_v40 = vand.u32 4294901760, %v17660_v35  ;;  %v21725_v38 = vand.u32 4294901760, %v17665_v3  ;;  %v21727_v4 = vand.u32 4294901760, %v17975_v12  ;;  %14939 = vmatpush3.bf16.msra.mxu1 %v17995_v21  ;;  %v21732_v50 = vand.u32 4294901760, %v18018_v60 }
  0x9e   :  { %v1205_v14 = vsub.f32 %v17951_v45, %v21722_v11  ;;  %21723 = vst [vmem:[#allocation112_spill] sm:$0xff] %v18036_v59  ;;  %v21726_v11 = vand.u32 4294901760, %v17970_v31  ;;  %v1199_v46 = vand.u32 4294901760, %v1198_v15  ;;  %14981 = vmatprep.subr.bf16.mxu0 %v18036_v59  ;;  %14941 = vmatprep.subr.bf16.mxu1 %v18020_v22  ;;  %v21731_v59 = vand.u32 4294901760, %v18013_v16 }
  0x9f   :  { %v18044_v26 = vsub.f32 %v17660_v35, %v21724_v40  ;;  %v18049_v39 = vsub.f32 %v17665_v3, %v21725_v38  ;;  %v1331_v18 = vsub.f32 %v17975_v12, %v21727_v4  ;;  %v18060_v40 = vpack.c.bf16 %v1192_v27, %v1185_v53 }
  0xa0   :  { %v1324_v13 = vsub.f32 %v17970_v31, %v21726_v11  ;;  %v18065_v3 = vpack.c.bf16 %v18005_v41, %v18000_v52  ;;  %v18067_v38 = vpack.c.bf16 %v1318_v5, %v1311_v28  ;;  %v1206_v11 = vand.u32 4294901760, %v1205_v14 }
  0xa1   :  { %v18072_v4 = vpack.c.bf16 %v18018_v60, %v18013_v16  ;;  %v21729_v53 = vand.u32 4294901760, %v18000_v52  ;;  %v21730_v35 = vand.u32 4294901760, %v18005_v41  ;;  %v1332_v14 = vand.u32 4294901760, %v1331_v18  ;;  %14943 = vmatpush3.bf16.msra.mxu1 %v18060_v40 }
  0xa2   :  { %21728 = vst [vmem:[#allocation113_spill] sm:$0xff] %v18065_v3  ;;  %v1325_v15 = vand.u32 4294901760, %v1324_v13  ;;  %v1338_v21 = vsub.f32 %v18013_v16, %v21731_v59  ;;  %14983 = vmatpush3.bf16.msra.mxu0 %v18065_v3  ;;  %v18095_v5 = vpack.c.bf16 %v1206_v11, %v1199_v46  ;;  %v21733_v13 = vand.u32 4294901760, %v17590_v47  ;;  %14945 = vmatprep.subr.bf16.mxu1 %v18067_v38 }
  0xa3   :  { %v1212_v27 = vsub.f32 %v18000_v52, %v21729_v53  ;;  %v1219_v0 = vsub.f32 %v18005_v41, %v21730_v35  ;;  %v1345_v53 = vsub.f32 %v18018_v60, %v21732_v50  ;;  %v18093_v35 = vpack.c.bf16 %v18049_v39, %v18044_v26  ;;  %14985 = vmatprep.subr.bf16.mxu0 %v18072_v4 }
  0xa4   :  { %v21734_v18 = vand.u32 4294901760, %v17613_v24  ;;  %v21735_v3 = vand.u32 4294901760, %v18044_v26  ;;  %v21736_v49 = vand.u32 4294901760, %v18049_v39  ;;  %v18112_v11 = vpack.c.bf16 %v1332_v14, %v1325_v15 }
  0xa5   :  { %v1213_v59 = vand.u32 4294901760, %v1212_v27  ;;  %v1220_v50 = vand.u32 4294901760, %v1219_v0  ;;  %v1339_v47 = vand.u32 4294901760, %v1338_v21  ;;  %v1346_v24 = vand.u32 4294901760, %v1345_v53  ;;  %14947 = vmatpush3.bf16.msra.mxu1 %v18095_v5 }
  0xa6   :  { %v18102_v28 = vpack.c.bf16 %v21734_v18, %v21733_v13  ;;  %v1226_v22 = vsub.f32 %v18044_v26, %v21735_v3  ;;  %v1233_v46 = vsub.f32 %v18049_v39, %v21736_v49  ;;  %14987 = vmatpush3.bf16.msra.mxu0 %v18093_v35  ;;  %v21737_v13 = vand.u32 4294901760, %v17631_v20  ;;  %14949 = vmatprep.subr.bf16.mxu1 %v18112_v11 }
  0xa7   :  { %v21738_v0 = vand.u32 4294901760, %v17636_v30  ;;  %v21739_v3 = vand.u32 4294901760, %v17674_v63  ;;  %v21740_v49 = vand.u32 4294901760, %v17679_v37  ;;  %v18129_v21 = vpack.c.bf16 %v1220_v50, %v1213_v59 }
  0xa8   :  { %15021 = vmatprep.subr.bf16.mxu0 %v18102_v28  ;;  %v1227_v15 = vand.u32 4294901760, %v1226_v22  ;;  %v1234_v14 = vand.u32 4294901760, %v1233_v46  ;;  %v18132_v20 = vpack.c.bf16 %v1346_v24, %v1339_v47  ;;  %v21741_v30 = vand.u32 4294901760, %v17716_v55 }
  0xa9   :  { %v18119_v27 = vpack.c.bf16 %v21738_v0, %v21737_v13  ;;  %v18126_v18 = vpack.c.bf16 %v21740_v49, %v21739_v3  ;;  %1489 = vmatmul.mubr.f32.vlgmr.msra.gmra.mrb[6].mxu0 %v17646_v56  ;;  %v21742_v37 = vand.u32 4294901760, %v17734_v58  ;;  %v21743_v22 = vand.u32 4294901760, %v17753_v32  ;;  %14951 = vmatpush3.bf16.msra.mxu1 %v18129_v21  ;;  %v16440_v32 = vld [vmem:[%s21087_s0] sm:$0xff]  ;;  %v21805_v56 = vld [vmem:[#allocation12_spill] sm:$0xff] }
  0xaa   :  { %1763 = vmatprep.mubr.f32.mxu0 %v17301_v61  ;;  %v21744_v53 = vand.u32 4294901760, %v17758_v17  ;;  %v18151_v50 = vpack.c.bf16 %v1234_v14, %v1227_v15  ;;  %14953 = vmatprep.subr.bf16.mxu1 %v18132_v20  ;;  %v21747_v55 = vand.u32 4294901760, %v17773_v54  ;;  %v21748_v58 = vand.u32 4294901760, %v17785_v9  ;;  %v21759_v15 = vld [vmem:[#allocation78_spill] sm:$0xff] }
  0xab   :  { %15023 = vmatpush3.bf16.msra.mxu0 %v18119_v27  ;;  %v18140_v63 = vpack.c.bf16 %v21742_v37, %v21741_v30  ;;  %v18164_v17 = vmul.f32 %v16440_v32, %v16440_v32  ;;  %v21750_v47 = vand.u32 4294901760, %v17793_v23  ;;  %v21751_v24 = vand.u32 4294901760, %v17798_v36 }
  0xac   :  { %15025 = vmatprep.subr.bf16.mxu0 %v18126_v18  ;;  %v18148_v59 = vpack.c.bf16 %v21744_v53, %v21743_v22  ;;  %21746 = vst [vmem:[#allocation115_spill] sm:$0xff] %v18151_v50  ;;  %v18159_v46 = vpack.c.bf16 %v21748_v58, %v21747_v55  ;;  %v21753_v54 = vand.u32 4294901760, %v17826_v2  ;;  %v21754_v9 = vand.u32 4294901760, %v17831_v51  ;;  %v21760_v2 = vld [vmem:[#allocation75_spill] sm:$0xff]  ;;  %v21761_v51 = vld [vmem:[#allocation80_spill] sm:$0xff]  ;;  %v21768_v55 = vld [vmem:[#allocation13_spill] sm:$0xff] }
  0xad   :  { %v18171_v13 = vpack.c.bf16 %v21751_v24, %v21750_v47  ;;  %14955 = vmatpush3.bf16.msra.mxu1 %v18151_v50  ;;  %v1879_v3 = vcombine.high %v18164_v17, %v18164_v17  ;;  %v21756_v36 = vand.u32 4294901760, %v17849_v62  ;;  %v21757_v23 = vand.u32 4294901760, %v17854_v48  ;;  %v21769_v58 = vld [vmem:[#allocation81_spill] sm:$0xff]  ;;  %v21836_v50 = vld [vmem:[#allocation55_spill] sm:$0xff] }
  0xae   :  { %21745 = vst [vmem:[#allocation114_spill] sm:$0xff] %v18148_v59  ;;  %21749 = vst [vmem:[#allocation116_spill] sm:$0xff] %v18159_v46  ;;  %14989 = vmatprep.subr.bf16.mxu1 %v17390_v1  ;;  %v18180_v0 = vpack.c.bf16 %v21754_v9, %v21753_v54  ;;  %v21762_v14 = vand.u32 4294901760, %v17878_v6  ;;  %v21763_v30 = vand.u32 4294901760, %v17893_v7  ;;  %v21765_v48 = vand.u32 4294901760, %v17898_v57  ;;  %v21776_v54 = vld [vmem:[#allocation82_spill] sm:$0xff] }
  0xaf   :  { %15027 = vmatpush3.bf16.msra.mxu0 %v18140_v63  ;;  %21752 = vst [vmem:[#allocation117_spill] sm:$0xff] %v18171_v13  ;;  %v18190_v49 = vpack.c.bf16 %v21757_v23, %v21756_v36  ;;  %v18202_v22 = vand.u32 4294901760, %v1879_v3  ;;  %v21766_v62 = vand.u32 4294901760, %v17910_v25  ;;  %v21770_v6 = vand.u32 4294901760, %v17946_v29  ;;  %v21777_v9 = vld [vmem:[#allocation83_spill] sm:$0xff] }
  0xb0   :  { %15029 = vmatprep.subr.bf16.mxu0 %v18148_v59  ;;  %21755 = vst [vmem:[#allocation118_spill] sm:$0xff] %v18180_v0  ;;  %1351 = vmatmul.mubr.f32.vlgmr.msra.gmra.mrb[8].mxu1 %v17575_v34  ;;  %v18200_v37 = vpack.c.bf16 %v21763_v30, %v21762_v14  ;;  %v21771_v7 = vand.u32 4294901760, %v17951_v45  ;;  %v21773_v25 = vand.u32 4294901760, %v17970_v31  ;;  %v21774_v57 = vand.u32 4294901760, %v17975_v12  ;;  %v21784_v14 = vld [vmem:[#allocation25_spill] sm:$0xff]  ;;  %v21785_v30 = vld [vmem:[#allocation84_spill] sm:$0xff] }
  0xb1   :  { %21758 = vst [vmem:[#allocation119_spill] sm:$0xff] %v18190_v49  ;;  %14991 = vmatpush3.bf16.msra.mxu1 %v21759_v15  ;;  %1593 = vmatprep.mubr.f32.mxu1 %v21760_v2  ;;  %v18209_v53 = vpack.c.bf16 %v21766_v62, %v21765_v48  ;;  %v18221_v47 = vsub.f32 %v1879_v3, %v18202_v22  ;;  %v21778_v45 = vand.u32 4294901760, %v18000_v52  ;;  %v21779_v29 = vand.u32 4294901760, %v18005_v41  ;;  %v21790_v62 = vld [vmem:[#allocation87_spill] sm:$0xff] }
  0xb2   :  { %14993 = vmatprep.subr.bf16.mxu1 %v21761_v51  ;;  %21764 = vst [vmem:[#allocation78_spill] sm:$0xff] %v18200_v37  ;;  %v18218_v32 = vpack.c.bf16 %v21771_v7, %v21770_v6  ;;  %v18228_v24 = vpack.c.bf16 %v21774_v57, %v21773_v25  ;;  %v21781_v31 = vand.u32 4294901760, %v18013_v16  ;;  %v21782_v12 = vand.u32 4294901760, %v18018_v60  ;;  %v21789_v60 = vld [vmem:[#allocation86_spill] sm:$0xff]  ;;  %v21794_v25 = vld [vmem:[#allocation3_spill] sm:$0xff]  ;;  %v21795_v57 = vld [vmem:[#allocation4_spill] sm:$0xff] }
  0xb3   :  { %15031 = vmatpush3.bf16.msra.mxu0 %v18159_v46  ;;  %21767 = vst [vmem:[#allocation80_spill] sm:$0xff] %v18209_v53  ;;  %v18237_v3 = vpack.c.bf16 %v21779_v29, %v21778_v45  ;;  %v21298_v36 = vand.u32 4294901760, %v18221_v47  ;;  %v21786_v52 = vand.u32 4294901760, %v18044_v26  ;;  %v21787_v41 = vand.u32 4294901760, %v18049_v39  ;;  %v21791_v7 = vld [vmem:[#allocation2_spill] sm:$0xff]  ;;  %v21792_v26 = vld [vmem:[#allocation89_spill] sm:$0xff] }
  0xb4   :  { %15033 = vmatprep.subr.bf16.mxu0 %v18171_v13  ;;  %21772 = vst [vmem:[#allocation13_spill] sm:$0xff] %v18218_v32  ;;  %21775 = vst [vmem:[#allocation81_spill] sm:$0xff] %v18228_v24  ;;  %v18245_v23 = vpack.c.bf16 %v21782_v12, %v21781_v31  ;;  %v21793_v39 = vld [vmem:[#allocation90_spill] sm:$0xff]  ;;  %v21796_v45 = vld [vmem:[#allocation92_spill] sm:$0xff] }
  0xb5   :  { %14995 = vmatpush3.bf16.msra.mxu1 %v21768_v55  ;;  %21780 = vst [vmem:[#allocation82_spill] sm:$0xff] %v18237_v3  ;;  %v18254_v48 = vpack.c.bf16 %v21787_v41, %v21786_v52  ;;  %v1982_v16 = vsub.f32 %v18221_v47, %v21298_v36  ;;  %v21797_v29 = vld [vmem:[#allocation5_spill] sm:$0xff]  ;;  %v21798_v31 = vld [vmem:[#allocation6_spill] sm:$0xff]  ;;  %v21799_v12 = vld [vmem:[#allocation7_spill] sm:$0xff] }
  0xb6   :  { %14997 = vmatprep.subr.bf16.mxu1 %v21769_v58  ;;  %21783 = vst [vmem:[#allocation83_spill] sm:$0xff] %v18245_v23  ;;  %v21800_v52 = vld [vmem:[#allocation91_spill] sm:$0xff]  ;;  %v21801_v41 = vld [vmem:[#allocation8_spill] sm:$0xff]  ;;  %v21803_v36 = vld [vmem:[#allocation10_spill] sm:$0xff] }
  0xb7   :  { %15035 = vmatpush3.bf16.msra.mxu0 %v18180_v0  ;;  %21788 = vst [vmem:[#allocation25_spill] sm:$0xff] %v18254_v48  ;;  %v1983_v6 = vand.u32 4294901760, %v1982_v16  ;;  %v18282_v16 = vand.u32 4294901760, %v18164_v17  ;;  %v21804_v2 = vld [vmem:[#allocation11_spill] sm:$0xff]  ;;  %v21819_v0 = vld [vmem:[#allocation38_spill] sm:$0xff]  ;;  %v21822_v13 = vld [vmem:[#allocation36_spill] sm:$0xff] }
  0xb8   :  { %15037 = vmatprep.subr.bf16.mxu0 %v18190_v49  ;;  %v21815_v49 = vld [vmem:[#allocation33_spill] sm:$0xff]  ;;  %v21828_v46 = vld [vmem:[#allocation48_spill] sm:$0xff] }
  0xb9   :  { %14999 = vmatpush3.bf16.msra.mxu1 %v21776_v54 }
  0xba   :  { %15001 = vmatprep.subr.bf16.mxu1 %v21777_v9 }
  0xbb   :  { %15039 = vmatpush3.bf16.msra.mxu0 %v18200_v37  ;;  %v21813_v37 = vld [vmem:[#allocation31_spill] sm:$0xff] }
  0xbc   :  { %15041 = vmatprep.subr.bf16.mxu0 %v18209_v53  ;;  %v21810_v53 = vld [vmem:[#allocation23_spill] sm:$0xff] }
  0xbd   :  { %15003 = vmatpush3.bf16.msra.mxu1 %v21784_v14 }
  0xbe   :  { %15005 = vmatprep.subr.bf16.mxu1 %v21785_v30 }
  0xbf   :  { %15043 = vmatpush3.bf16.msra.mxu0 %v18218_v32  ;;  %v21809_v32 = vld [vmem:[#allocation21_spill] sm:$0xff] }
  0xc0   :  { %15045 = vmatprep.subr.bf16.mxu0 %v18228_v24 }
  0xc1   :  { %15007 = vmatpush3.bf16.msra.mxu1 %v21789_v60 }
  0xc2   :  { %15009 = vmatprep.subr.bf16.mxu1 %v21790_v62 }
  0xc3   :  { %15047 = vmatpush3.bf16.msra.mxu0 %v18237_v3  ;;  %v21808_v3 = vld [vmem:[#allocation17_spill] sm:$0xff] }
  0xc4   :  { %15049 = vmatprep.subr.bf16.mxu0 %v18245_v23  ;;  %v21807_v23 = vld [vmem:[#allocation15_spill] sm:$0xff] }
  0xc5   :  { %15011 = vmatpush3.bf16.msra.mxu1 %v21792_v26 }
  0xc6   :  { %15013 = vmatprep.subr.bf16.mxu1 %v21793_v39 }
  0xc7   :  { %15051 = vmatpush3.bf16.msra.mxu0 %v18254_v48  ;;  %v21806_v48 = vld [vmem:[#allocation14_spill] sm:$0xff] }
  0xc8   :  { %15085 = vmatprep.subr.bf16.mxu0 %v21791_v7 }
  0xc9   :  { %15015 = vmatpush3.bf16.msra.mxu1 %v17702_v44 }
  0xca   :  { %1765 = vmatmul.mubr.f32.vlgmr.msra.gmra.mrb[8].mxu0 %v17575_v34  ;;  %15017 = vmatprep.subr.bf16.mxu1 %v21796_v45 }
  0xcb   :  { %15087 = vmatpush3.bf16.msra.mxu0 %v21794_v25  ;;  %1984 = vmatprep.mubr.f32.mxu0 %v1983_v6  ;;  %v21802_v6 = vld [vmem:[#allocation9_spill] sm:$0xff] }
  0xcc   :  { %15089 = vmatprep.subr.bf16.mxu0 %v21795_v57 }
  0xcd   :  { %15019 = vmatpush3.bf16.msra.mxu1 %v17741_v43 }
  0xce   :  { %15053 = vmatprep.subr.bf16.mxu1 %v17390_v1 }
  0xcf   :  { %15091 = vmatpush3.bf16.msra.mxu0 %v21797_v29 }
  0xd0   :  { %15093 = vmatprep.subr.bf16.mxu0 %v21798_v31  ;;  %1597 = vmatmul.mubr.f32.vlgmr.msra.gmra.mrb[10].mxu1 %v21800_v52  ;;  %v18290_v52 = vsub.f32 %v18164_v17, %v18282_v16 }
  0xd1   :  { %15055 = vmatpush3.bf16.msra.mxu1 %v21759_v15  ;;  %1867 = vmatprep.mubr.f32.mxu1 %v17301_v61 }
  0xd2   :  { %15057 = vmatprep.subr.bf16.mxu1 %v21761_v51  ;;  %v21308_v61 = vand.u32 4294901760, %v18290_v52 }
  0xd3   :  { %15095 = vmatpush3.bf16.msra.mxu0 %v21799_v12 }
  0xd4   :  { %15097 = vmatprep.subr.bf16.mxu0 %v21801_v41  ;;  %v1988_v17 = vsub.f32 %v18290_v52, %v21308_v61  ;;  %v21811_v61 = vld [vmem:[#allocation29_spill] sm:$0xff] }
  0xd5   :  { %15059 = vmatpush3.bf16.msra.mxu1 %v21768_v55 }
  0xd6   :  { %15061 = vmatprep.subr.bf16.mxu1 %v21769_v58  ;;  %v1989_v24 = vand.u32 4294901760, %v1988_v17  ;;  %v21812_v17 = vld [vmem:[#allocation30_spill] sm:$0xff] }
  0xd7   :  { %15099 = vmatpush3.bf16.msra.mxu0 %v21802_v6 }
  0xd8   :  { %15101 = vmatprep.subr.bf16.mxu0 %v21803_v36 }
  0xd9   :  { %15063 = vmatpush3.bf16.msra.mxu1 %v21776_v54 }
  0xda   :  { %15065 = vmatprep.subr.bf16.mxu1 %v21777_v9 }
  0xdb   :  { %15103 = vmatpush3.bf16.msra.mxu0 %v21804_v2 }
  0xdc   :  { %15105 = vmatprep.subr.bf16.mxu0 %v21805_v56 }
  0xdd   :  { %15067 = vmatpush3.bf16.msra.mxu1 %v21784_v14 }
  0xde   :  { %15069 = vmatprep.subr.bf16.mxu1 %v21785_v30 }
  0xdf   :  { %15107 = vmatpush3.bf16.msra.mxu0 %v21611_v33 }
  0xe0   :  { %15109 = vmatprep.subr.bf16.mxu0 %v21806_v48 }
  0xe1   :  { %15071 = vmatpush3.bf16.msra.mxu1 %v21789_v60 }
  0xe2   :  { %15073 = vmatprep.subr.bf16.mxu1 %v21790_v62 }
  0xe3   :  { %15111 = vmatpush3.bf16.msra.mxu0 %v21807_v23 }
  0xe4   :  { %15113 = vmatprep.subr.bf16.mxu0 %v21808_v3 }
  0xe5   :  { %15075 = vmatpush3.bf16.msra.mxu1 %v21792_v26 }
  0xe6   :  { %15077 = vmatprep.subr.bf16.mxu1 %v21793_v39 }
  0xe7   :  { %15115 = vmatpush3.bf16.msra.mxu0 %v21621_v8 }
  0xe8   :  { %15149 = vmatprep.subr.bf16.mxu0 %v21809_v32  ;;  %v21814_v32 = vld [vmem:[#allocation28_spill] sm:$0xff] }
  0xe9   :  { %15079 = vmatpush3.bf16.msra.mxu1 %v17702_v44 }
  0xea   :  { %1990 = vmatmul.mubr.f32.vlgmr.msra.gmra.mrb[10].mxu0 %v1989_v24  ;;  %15081 = vmatprep.subr.bf16.mxu1 %v21796_v45  ;;  %v21817_v24 = vld [vmem:[#allocation32_spill] sm:$0xff] }
  0xeb   :  { %15151 = vmatpush3.bf16.msra.mxu0 %v21810_v53  ;;  %2357 = vmatprep.mubr.f32.mxu0 %v18221_v47  ;;  %v21816_v53 = vld [vmem:[#allocation37_spill] sm:$0xff] }
  0xec   :  { %15153 = vmatprep.subr.bf16.mxu0 %v21811_v61  ;;  %v21818_v61 = vld [vmem:[#allocation34_spill] sm:$0xff] }
  0xed   :  { %15083 = vmatpush3.bf16.msra.mxu1 %v17741_v43 }
  0xee   :  { %15117 = vmatprep.subr.bf16.mxu1 %v21814_v32  ;;  %v21823_v32 = vld [vmem:[#allocation41_spill] sm:$0xff] }
  0xef   :  { %15155 = vmatpush3.bf16.msra.mxu0 %v21812_v17  ;;  %v21820_v17 = vld [vmem:[#allocation40_spill] sm:$0xff] }
  0xf0   :  { %15157 = vmatprep.subr.bf16.mxu0 %v21813_v37  ;;  %1869 = vmatmul.mubr.f32.vlgmr.msra.gmra.mrb[12].mxu1 %v17575_v34  ;;  %v21821_v37 = vld [vmem:[#allocation35_spill] sm:$0xff] }
  0xf1   :  { %15119 = vmatpush3.bf16.msra.mxu1 %v21817_v24  ;;  %2220 = vmatprep.mubr.f32.mxu1 %v18202_v22  ;;  %v21825_v34 = vld [vmem:[#allocation39_spill] sm:$0xff]  ;;  %v21827_v24 = vld [vmem:[#allocation45_spill] sm:$0xff] }
  0xf2   :  { %15121 = vmatprep.subr.bf16.mxu1 %v21818_v61  ;;  %v21829_v61 = vld [vmem:[#allocation43_spill] sm:$0xff] }
  0xf3   :  { %15159 = vmatpush3.bf16.msra.mxu0 %v21815_v49  ;;  %v21824_v49 = vld [vmem:[#allocation44_spill] sm:$0xff] }
  0xf4   :  { %15161 = vmatprep.subr.bf16.mxu0 %v21816_v53  ;;  %v21826_v53 = vld [vmem:[#allocation42_spill] sm:$0xff] }
  0xf5   :  { %15123 = vmatpush3.bf16.msra.mxu1 %v21821_v37  ;;  %v21832_v37 = vld [vmem:[#allocation51_spill] sm:$0xff] }
  0xf6   :  { %15125 = vmatprep.subr.bf16.mxu1 %v21822_v13  ;;  %v21833_v13 = vld [vmem:[#allocation47_spill] sm:$0xff] }
  0xf7   :  { %15163 = vmatpush3.bf16.msra.mxu0 %v21819_v0  ;;  %v21830_v0 = vld [vmem:[#allocation46_spill] sm:$0xff] }
  0xf8   :  { %15165 = vmatprep.subr.bf16.mxu0 %v21820_v17  ;;  %v21831_v17 = vld [vmem:[#allocation50_spill] sm:$0xff] }
  0xf9   :  { %15127 = vmatpush3.bf16.msra.mxu1 %v21825_v34  ;;  %v21835_v34 = vld [vmem:[#allocation53_spill] sm:$0xff] }
  0xfa   :  { %15129 = vmatprep.subr.bf16.mxu1 %v21826_v53 }
  0xfb   :  { %15167 = vmatpush3.bf16.msra.mxu0 %v21823_v32  ;;  %v21834_v32 = vld [vmem:[#allocation49_spill] sm:$0xff] }
  0xfc   :  { %15169 = vmatprep.subr.bf16.mxu0 %v21824_v49  ;;  %v12080_v49 = vpop.f32.mrb[0].mxu1 }
  0xfd   :  { %15131 = vmatpush3.bf16.msra.mxu1 %v21829_v61  ;;  %v12081_v53 = vpop.f32.mrb[1].mxu1  ;;  %v21838_v61 = vld [vmem:[#allocation54_spill] sm:$0xff] }
  0xfe   :  { %15133 = vmatprep.subr.bf16.mxu1 %v21830_v0  ;;  %v21839_v0 = vld [vmem:[#allocation56_spill] sm:$0xff] }
  0xff   :  { %15171 = vmatpush3.bf16.msra.mxu0 %v21827_v24  ;;  %v12082_v24 = vadd.f32 %v12081_v53, %v12080_v49  ;;  %v21846_v53 = vld [vmem:[#allocation62_spill] sm:$0xff] }
 0x100   :  { %15173 = vmatprep.subr.bf16.mxu0 %v21828_v46  ;;  %v21837_v46 = vld [vmem:[#allocation52_spill] sm:$0xff] }
 0x101   :  { %15135 = vmatpush3.bf16.msra.mxu1 %v21833_v13  ;;  %v21842_v13 = vld [vmem:[#allocation59_spill] sm:$0xff] }
 0x102   :  { %15137 = vmatprep.subr.bf16.mxu1 %v21834_v32  ;;  %v21843_v32 = vld [vmem:[#allocation60_spill] sm:$0xff] }
 0x103   :  { %15175 = vmatpush3.bf16.msra.mxu0 %v21831_v17  ;;  %v21840_v17 = vld [vmem:[#allocation57_spill] sm:$0xff] }
 0x104   :  { %15177 = vmatprep.subr.bf16.mxu0 %v21832_v37  ;;  %v21841_v37 = vld [vmem:[#allocation58_spill] sm:$0xff] }
 0x105   :  { %15139 = vmatpush3.bf16.msra.mxu1 %v21837_v46  ;;  %v21847_v46 = vld [vmem:[#allocation63_spill] sm:$0xff] }
 0x106   :  { %15141 = vmatprep.subr.bf16.mxu1 %v21838_v61 }
 0x107   :  { %15179 = vmatpush3.bf16.msra.mxu0 %v21835_v34  ;;  %v21845_v34 = vld [vmem:[#allocation61_spill] sm:$0xff] }
 0x108   :  { %15213 = vmatprep.subr.bf16.mxu0 %v21836_v50  ;;  %v21844_v50 = vld [vmem:[#allocation66_spill] sm:$0xff] }
 0x109   :  { %15143 = vmatpush3.bf16.msra.mxu1 %v21841_v37  ;;  %v18356_v49 = vmul.f32 %v21844_v50, %v21844_v50  ;;  %v21850_v37 = vld [vmem:[#allocation65_spill] sm:$0xff]  ;;  %v21852_v50 = vld [vmem:[#allocation68_spill] sm:$0xff] }
 0x10a   :  { %2360 = vmatmul.mubr.f32.vlgmr.msra.gmra.mrb[12].mxu0 %v18290_v52  ;;  %15145 = vmatprep.subr.bf16.mxu1 %v21842_v13 }
 0x10b   :  { %15215 = vmatpush3.bf16.msra.mxu0 %v21839_v0  ;;  %2634 = vmatprep.mubr.f32.mxu0 %v18202_v22  ;;  %v1880_v61 = vcombine.high %v18356_v49, %v18356_v49  ;;  %v21848_v0 = vld [vmem:[#allocation64_spill] sm:$0xff] }
 0x10c   :  { %15217 = vmatprep.subr.bf16.mxu0 %v21840_v17  ;;  %v21849_v17 = vand.u32 4294901760, %v18221_v47 }
 0x10d   :  { %15147 = vmatpush3.bf16.msra.mxu1 %v21846_v53  ;;  %v18371_v13 = vand.u32 4294901760, %v1880_v61  ;;  %v21853_v53 = vld [vmem:[#allocation69_spill] sm:$0xff] }
 0x10e   :  { %15181 = vmatprep.subr.bf16.mxu1 %v21791_v7 }
 0x10f   :  { %15219 = vmatpush3.bf16.msra.mxu0 %v21843_v32  ;;  %v21851_v32 = vld [vmem:[#allocation67_spill] sm:$0xff] }
 0x110   :  { %15221 = vmatprep.subr.bf16.mxu0 %v21845_v34  ;;  %2222 = vmatmul.mubr.f32.vlgmr.msra.gmra.mrb[14].mxu1 %v18282_v16  ;;  %v18378_v34 = vsub.f32 %v1880_v61, %v18371_v13  ;;  %v21856_v61 = vld [vmem:[#allocation74_spill] sm:$0xff] }
 0x111   :  { %15183 = vmatpush3.bf16.msra.mxu1 %v21794_v25  ;;  %2464 = vmatprep.mubr.f32.mxu1 %v21849_v17  ;;  %v21854_v17 = vld [vmem:[#allocation71_spill] sm:$0xff] }
 0x112   :  { %15185 = vmatprep.subr.bf16.mxu1 %v21795_v57 }
 0x113   :  { %15223 = vmatpush3.bf16.msra.mxu0 %v21847_v46 }
 0x114   :  { %15225 = vmatprep.subr.bf16.mxu0 %v21848_v0 }
 0x115   :  { %15187 = vmatpush3.bf16.msra.mxu1 %v21797_v29 }
 0x116   :  { %15189 = vmatprep.subr.bf16.mxu1 %v21798_v31 }
 0x117   :  { %15227 = vmatpush3.bf16.msra.mxu0 %v21850_v37  ;;  %v2843_v37 = vand.u32 4294901760, %v18378_v34 }
 0x118   :  { %15229 = vmatprep.subr.bf16.mxu0 %v21851_v32  ;;  %v21855_v32 = vld [vmem:[#allocation73_spill] sm:$0xff] }
 0x119   :  { %15191 = vmatpush3.bf16.msra.mxu1 %v21799_v12  ;;  %v12150_v47 = vpop.f32.mrb[0].mxu0 }
 0x11a   :  { %15193 = vmatprep.subr.bf16.mxu1 %v21801_v41  ;;  %v12151_v46 = vpop.f32.mrb[1].mxu0 }
 0x11b   :  { %15231 = vmatpush3.bf16.msra.mxu0 %v21852_v50  ;;  %v12152_v0 = vadd.f32 %v12151_v46, %v12150_v47  ;;  %v2844_v50 = vsub.f32 %v18378_v34, %v2843_v37  ;;  %v21858_v46 = vld [vmem:[#allocation77_spill] sm:$0xff] }
 0x11c   :  { %15233 = vmatprep.subr.bf16.mxu0 %v21853_v53  ;;  %v21857_v53 = vld [vmem:[#allocation76_spill] sm:$0xff] }
 0x11d   :  { %15195 = vmatpush3.bf16.msra.mxu1 %v21802_v6 }
 0x11e   :  { %15197 = vmatprep.subr.bf16.mxu1 %v21803_v36 }
 0x11f   :  { %15235 = vmatpush3.bf16.msra.mxu0 %v21854_v17  ;;  %v2845_v17 = vand.u32 4294901760, %v2844_v50  ;;  %v21863_v50 = vld [vmem:[#allocation99_spill] sm:$0xff] }
 0x120   :  { %15237 = vmatprep.subr.bf16.mxu0 %v21855_v32 }
 0x121   :  { %15199 = vmatpush3.bf16.msra.mxu1 %v21804_v2 }
 0x122   :  { %15201 = vmatprep.subr.bf16.mxu1 %v21805_v56  ;;  %v12115_v47 = vpop.f32.mrb[2].mxu1 }
 0x123   :  { %15239 = vmatpush3.bf16.msra.mxu0 %v21856_v61  ;;  %v12116_v32 = vpop.f32.mrb[3].mxu1 }
 0x124   :  { %15241 = vmatprep.subr.bf16.mxu0 %v21857_v53  ;;  %v12117_v59 = vadd.f32 %v12116_v32, %v12115_v47  ;;  %v21866_v47 = vld [vmem:[#allocation101_spill] sm:$0xff] }
 0x125   :  { %15203 = vmatpush3.bf16.msra.mxu1 %v21611_v33 }
 0x126   :  { %15205 = vmatprep.subr.bf16.mxu1 %v21806_v48  ;;  %v491_v61 = vadd.f32 %v12117_v59, %v12082_v24  ;;  %v21859_v59 = vand.u32 4294901760, %v18290_v52  ;;  %v18416_v24 = vand.u32 4294901760, %v18356_v49 }
 0x127   :  { %15243 = vmatpush3.bf16.msra.mxu0 %v21858_v46  ;;  %v21871_v46 = vld [vmem:[#allocation107_spill] sm:$0xff] }
 0x128   :  { %15277 = vmatprep.subr.bf16.mxu0 %v17390_v1  ;;  %v629_v53 = vadd.f32 %v12152_v0, %v491_v61  ;;  %v21861_v0 = vld [vmem:[#allocation95_spill] sm:$0xff] }
 0x129   :  { %15207 = vmatpush3.bf16.msra.mxu1 %v21807_v23 }
 0x12a   :  { %2636 = vmatmul.mubr.f32.vlgmr.msra.gmra.mrb[14].mxu0 %v18282_v16  ;;  %15209 = vmatprep.subr.bf16.mxu1 %v21808_v3 }
 0x12b   :  { %15279 = vmatpush3.bf16.msra.mxu0 %v21759_v15  ;;  %2846 = vmatprep.mubr.f32.mxu0 %v2845_v17  ;;  %v21872_v17 = vld [vmem:[#allocation108_spill] sm:$0xff] }
 0x12c   :  { %15281 = vmatprep.subr.bf16.mxu0 %v21761_v51 }
 0x12d   :  { %15211 = vmatpush3.bf16.msra.mxu1 %v21621_v8 }
 0x12e   :  { %15245 = vmatprep.subr.bf16.mxu1 %v21791_v7  ;;  %v18424_v7 = vsub.f32 %v18356_v49, %v18416_v24 }
 0x12f   :  { %15283 = vmatpush3.bf16.msra.mxu0 %v21768_v55 }
 0x130   :  { %15285 = vmatprep.subr.bf16.mxu0 %v21769_v58  ;;  %2468 = vmatmul.mubr.f32.vlgmr.msra.gmra.mrb[16].mxu1 %v21859_v59  ;;  %v21875_v59 = vld [vmem:[#allocation111_spill] sm:$0xff] }
 0x131   :  { %15247 = vmatpush3.bf16.msra.mxu1 %v21794_v25  ;;  %2738 = vmatprep.mubr.f32.mxu1 %v18202_v22 }
 0x132   :  { %15249 = vmatprep.subr.bf16.mxu1 %v21795_v57  ;;  %v2849_v57 = vand.u32 4294901760, %v18424_v7 }
 0x133   :  { %15287 = vmatpush3.bf16.msra.mxu0 %v21776_v54 }
 0x134   :  { %15289 = vmatprep.subr.bf16.mxu0 %v21777_v9 }
 0x135   :  { %15251 = vmatpush3.bf16.msra.mxu1 %v21797_v29  ;;  %v2850_v29 = vsub.f32 %v18424_v7, %v2849_v57 }
 0x136   :  { %15253 = vmatprep.subr.bf16.mxu1 %v21798_v31 }
 0x137   :  { %15291 = vmatpush3.bf16.msra.mxu0 %v21784_v14  ;;  %v2851_v31 = vand.u32 4294901760, %v2850_v29 }
 0x138   :  { %15293 = vmatprep.subr.bf16.mxu0 %v21785_v30 }
 0x139   :  { %15255 = vmatpush3.bf16.msra.mxu1 %v21799_v12  ;;  %v12220_v22 = vpop.f32.mrb[2].mxu0 }
 0x13a   :  { %15257 = vmatprep.subr.bf16.mxu1 %v21801_v41  ;;  %v12221_v25 = vpop.f32.mrb[3].mxu0 }
 0x13b   :  { %15295 = vmatpush3.bf16.msra.mxu0 %v21789_v60  ;;  %v12222_v52 = vadd.f32 %v12221_v25, %v12220_v22  ;;  %v21876_v22 = vld [vmem:[#allocation112_spill] sm:$0xff]  ;;  %v21877_v25 = vld [vmem:[#allocation109_spill] sm:$0xff] }
 0x13c   :  { %15297 = vmatprep.subr.bf16.mxu0 %v21790_v62 }
 0x13d   :  { %15259 = vmatpush3.bf16.msra.mxu1 %v21802_v6  ;;  %v21860_v6 = vld [vmem:[#allocation93_spill] sm:$0xff] }
 0x13e   :  { %15261 = vmatprep.subr.bf16.mxu1 %v21803_v36 }
 0x13f   :  { %15299 = vmatpush3.bf16.msra.mxu0 %v21792_v26 }
 0x140   :  { %15301 = vmatprep.subr.bf16.mxu0 %v21793_v39 }
 0x141   :  { %15263 = vmatpush3.bf16.msra.mxu1 %v21804_v2  ;;  %v21862_v2 = vld [vmem:[#allocation97_spill] sm:$0xff] }
 0x142   :  { %15265 = vmatprep.subr.bf16.mxu1 %v21805_v56  ;;  %v12185_v12 = vpop.f32.mrb[4].mxu1 }
 0x143   :  { %15303 = vmatpush3.bf16.msra.mxu0 %v17702_v44  ;;  %v12186_v41 = vpop.f32.mrb[5].mxu1 }
 0x144   :  { %15305 = vmatprep.subr.bf16.mxu0 %v21796_v45  ;;  %v12187_v36 = vadd.f32 %v12186_v41, %v12185_v12 }
 0x145   :  { %15267 = vmatpush3.bf16.msra.mxu1 %v21611_v33  ;;  %v21864_v33 = vld [vmem:[#allocation96_spill] sm:$0xff] }
 0x146   :  { %15269 = vmatprep.subr.bf16.mxu1 %v21806_v48  ;;  %v737_v49 = vadd.f32 %v12187_v36, %v629_v53  ;;  %v21865_v48 = vld [vmem:[#allocation100_spill] sm:$0xff]  ;;  %v21889_v36 = vld [vmem:[#allocation81_spill] sm:$0xff] }
 0x147   :  { %15307 = vmatpush3.bf16.msra.mxu0 %v17741_v43 }
 0x148   :  { %15341 = vmatprep.subr.bf16.mxu0 %v21860_v6  ;;  %v905_v56 = vadd.f32 %v12222_v52, %v737_v49  ;;  %v21879_v52 = vld [vmem:[#allocation113_spill] sm:$0xff] }
 0x149   :  { %15271 = vmatpush3.bf16.msra.mxu1 %v21807_v23  ;;  %v21867_v23 = vld [vmem:[#allocation98_spill] sm:$0xff]  ;;  %v21888_v6 = vld [vmem:[#allocation13_spill] sm:$0xff] }
 0x14a   :  { %2852 = vmatmul.mubr.f32.vlgmr.msra.gmra.mrb[16].mxu0 %v2851_v31  ;;  %15273 = vmatprep.subr.bf16.mxu1 %v21808_v3  ;;  %v21868_v3 = vld [vmem:[#allocation103_spill] sm:$0xff] }
 0x14b   :  { %15343 = vmatpush3.bf16.msra.mxu0 %v21861_v0  ;;  %3219 = vmatprep.mubr.f32.mxu0 %v18378_v34 }
 0x14c   :  { %15345 = vmatprep.subr.bf16.mxu0 %v21862_v2  ;;  %v18525_v2 = vld [vmem:[%s21086_s1] sm:$0xff] }
 0x14d   :  { %15275 = vmatpush3.bf16.msra.mxu1 %v21621_v8  ;;  %v21870_v8 = vld [vmem:[#allocation102_spill] sm:$0xff] }
 0x14e   :  { %15309 = vmatprep.subr.bf16.mxu1 %v21864_v33  ;;  %v18541_v33 = vld [vmem:[%s21086_s1 + $0x98] sm:$0xff] }
 0x14f   :  { %15347 = vmatpush3.bf16.msra.mxu0 %v17820_v42  ;;  %v21869_v42 = vld [vmem:[#allocation104_spill] sm:$0xff] }
 0x150   :  { %15349 = vmatprep.subr.bf16.mxu0 %v21863_v50  ;;  %2740 = vmatmul.mubr.f32.vlgmr.msra.gmra.mrb[18].mxu1 %v18282_v16  ;;  %v21873_v16 = vld [vmem:[#allocation105_spill] sm:$0xff]  ;;  %v18536_v50 = vld [vmem:[%s21086_s1 + $0x90] sm:$0xff] }
 0x151   :  { %15311 = vmatpush3.bf16.msra.mxu1 %v17806_v19  ;;  %3082 = vmatprep.mubr.f32.mxu1 %v18371_v13  ;;  %v21874_v19 = vld [vmem:[#allocation106_spill] sm:$0xff] }
 0x152   :  { %15313 = vmatprep.subr.bf16.mxu1 %v21867_v23 }
 0x153   :  { %15351 = vmatpush3.bf16.msra.mxu0 %v21865_v48  ;;  %v21890_v48 = vld [vmem:[#allocation82_spill] sm:$0xff] }
 0x154   :  { %15353 = vmatprep.subr.bf16.mxu0 %v21866_v47  ;;  %v3626_v47 = vand.u32 4294901760, %v18525_v2 }
 0x155   :  { %15315 = vmatpush3.bf16.msra.mxu1 %v17900_v10  ;;  %v21878_v10 = vld [vmem:[#allocation110_spill] sm:$0xff] }
 0x156   :  { %15317 = vmatprep.subr.bf16.mxu1 %v21870_v8  ;;  %v21331_v8 = vand.u32 4294901760, %v18536_v50 }
 0x157   :  { %15355 = vmatpush3.bf16.msra.mxu0 %v21868_v3  ;;  %v21891_v3 = vld [vmem:[#allocation83_spill] sm:$0xff] }
 0x158   :  { %15357 = vmatprep.subr.bf16.mxu0 %v21869_v42 }
 0x159   :  { %15319 = vmatpush3.bf16.msra.mxu1 %v21873_v16  ;;  %v12290_v32 = vpop.f32.mrb[4].mxu0  ;;  %v18564_v16 = vld [vmem:[%s21086_s1 + $0x18] sm:$0xff] }
 0x15a   :  { %15321 = vmatprep.subr.bf16.mxu1 %v21874_v19  ;;  %v12291_v61 = vpop.f32.mrb[5].mxu0  ;;  %v18575_v19 = vld [vmem:[%s21086_s1 + $0xa8] sm:$0xff] }
 0x15b   :  { %15359 = vmatpush3.bf16.msra.mxu0 %v21871_v46  ;;  %v12292_v53 = vadd.f32 %v12291_v61, %v12290_v32  ;;  %v21326_v46 = vand.u32 4294901760, %v18541_v33  ;;  %v18570_v32 = vld [vmem:[%s21086_s1 + $0xa0] sm:$0xff] }
 0x15c   :  { %15361 = vmatprep.subr.bf16.mxu0 %v21872_v17  ;;  %v18559_v17 = vld [vmem:[%s21086_s1 + $0x10] sm:$0xff] }
 0x15d   :  { %15323 = vmatpush3.bf16.msra.mxu1 %v21877_v25  ;;  %v21324_v25 = vand.u32 4294901760, %v18564_v16 }
 0x15e   :  { %15325 = vmatprep.subr.bf16.mxu1 %v21878_v10 }
 0x15f   :  { %15363 = vmatpush3.bf16.msra.mxu0 %v21875_v59 }
 0x160   :  { %15365 = vmatprep.subr.bf16.mxu0 %v21876_v22  ;;  %v21325_v22 = vand.u32 4294901760, %v18559_v17 }
 0x161   :  { %15327 = vmatpush3.bf16.msra.mxu1 %v18060_v40 }
 0x162   :  { %15329 = vmatprep.subr.bf16.mxu1 %v18067_v38  ;;  %v12255_v29 = vpop.f32.mrb[6].mxu1  ;;  %v21880_v38 = vld [vmem:[#allocation114_spill] sm:$0xff] }
 0x163   :  { %15367 = vmatpush3.bf16.msra.mxu0 %v21879_v52  ;;  %v12256_v31 = vpop.f32.mrb[7].mxu1  ;;  %v18592_v52 = vpack.c.bf16 %v21326_v46, %v21331_v8 }
 0x164   :  { %15369 = vmatprep.subr.bf16.mxu0 %v18072_v4  ;;  %v12257_v12 = vadd.f32 %v12256_v31, %v12255_v29  ;;  %v21881_v4 = vld [vmem:[#allocation115_spill] sm:$0xff]  ;;  %v21319_v29 = vand.u32 4294901760, %v18570_v32  ;;  %v21318_v31 = vand.u32 4294901760, %v18575_v19 }
 0x165   :  { %15331 = vmatpush3.bf16.msra.mxu1 %v18095_v5  ;;  %v21882_v5 = vld [vmem:[#allocation116_spill] sm:$0xff] }
 0x166   :  { %15333 = vmatprep.subr.bf16.mxu1 %v18112_v11  ;;  %v1009_v41 = vadd.f32 %v12257_v12, %v905_v56  ;;  %v21885_v11 = vld [vmem:[#allocation119_spill] sm:$0xff]  ;;  %v18599_v12 = vld [vmem:[%s21086_s1 + $0x20] sm:$0xff] }
 0x167   :  { %15371 = vmatpush3.bf16.msra.mxu0 %v18093_v35  ;;  %v21884_v35 = vld [vmem:[#allocation118_spill] sm:$0xff]  ;;  %v18530_v56 = vld [vmem:[%s21086_s1 + $0x8] sm:$0xff] }
 0x168   :  { %15405 = vmatprep.subr.bf16.mxu0 %v18102_v28  ;;  %v18485_v40 = vadd.f32 %v12292_v53, %v1009_v41  ;;  %v21883_v28 = vld [vmem:[#allocation117_spill] sm:$0xff]  ;;  %v21332_v23 = vand.u32 4294901760, %v18530_v56  ;;  %v18604_v41 = vld [vmem:[%s21086_s1 + $0x28] sm:$0xff]  ;;  %v21902_v8 = vand.u32 4294901760, %v18530_v56 }
 0x169   :  { %15335 = vmatpush3.bf16.msra.mxu1 %v18129_v21  ;;  %v21892_v53 = vld [vmem:[#allocation25_spill] sm:$0xff] }
 0x16a   :  { %3222 = vmatmul.mubr.f32.vlgmr.msra.gmra.mrb[18].mxu0 %v18424_v7  ;;  %15337 = vmatprep.subr.bf16.mxu1 %v18132_v20  ;;  %v18510_v20 = vld [vmem:[%s21086_s1 + $0x80] sm:$0xff]  ;;  %v18583_v59 = vpack.c.bf16 %v21332_v23, %v3626_v47  ;;  %v18737_v7 = vld [vmem:[%s21086_s1 + $0x58] sm:$0xff] }
 0x16b   :  { %15407 = vmatpush3.bf16.msra.mxu0 %v18119_v27  ;;  %3496 = vmatprep.mubr.f32.mxu0 %v18371_v13  ;;  %v21886_v27 = vld [vmem:[#allocation78_spill] sm:$0xff]  ;;  %v3674_v49 = vand.u32 4294901760, %v18510_v20 }
 0x16c   :  { %15409 = vmatprep.subr.bf16.mxu0 %v18126_v18  ;;  %v21887_v18 = vld [vmem:[#allocation80_spill] sm:$0xff] }
 0x16d   :  { %15339 = vmatpush3.bf16.msra.mxu1 %v21881_v4  ;;  %v18610_v4 = vld [vmem:[%s21086_s1 + $0xb0] sm:$0xff]  ;;  %v18800_v23 = vsub.f32 %v18510_v20, %v3674_v49 }
 0x16e   :  { %15373 = vmatprep.subr.bf16.mxu1 %v17390_v1 }
 0x16f   :  { %15411 = vmatpush3.bf16.msra.mxu0 %v18140_v63  ;;  %v18515_v63 = vld [vmem:[%s21086_s1 + $0x88] sm:$0xff] }
 0x170   :  { %15413 = vmatprep.subr.bf16.mxu0 %v21880_v38  ;;  %3084 = vmatmul.mubr.f32.vlgmr.msra.gmra.mrb[20].mxu1 %v18416_v24  ;;  %v3677_v0 = vand.u32 4294901760, %v18515_v63 }
 0x171   :  { %15375 = vmatpush3.bf16.msra.mxu1 %v21759_v15  ;;  %3326 = vmatprep.mubr.f32.mxu1 %v2843_v37 }
 0x172   :  { %15377 = vmatprep.subr.bf16.mxu1 %v21761_v51  ;;  %v18552_v42 = vpack.c.bf16 %v3677_v0, %v3674_v49  ;;  %v21904_v49 = vand.u32 4294901760, %v18737_v7 }
 0x173   :  { %15415 = vmatpush3.bf16.msra.mxu0 %v21882_v5  ;;  %v18615_v5 = vld [vmem:[%s21086_s1 + $0xb8] sm:$0xff] }
 0x174   :  { %15417 = vmatprep.subr.bf16.mxu0 %v21883_v28 }
 0x175   :  { %15379 = vmatpush3.bf16.msra.mxu1 %v21768_v55 }
 0x176   :  { %15381 = vmatprep.subr.bf16.mxu1 %v21769_v58 }
 0x177   :  { %15419 = vmatpush3.bf16.msra.mxu0 %v21884_v35  ;;  %v18625_v35 = vpack.c.bf16 %v21324_v25, %v21325_v22 }
 0x178   :  { %15421 = vmatprep.subr.bf16.mxu0 %v21885_v11  ;;  %v21323_v11 = vand.u32 4294901760, %v18599_v12 }
 0x179   :  { %15383 = vmatpush3.bf16.msra.mxu1 %v21776_v54  ;;  %21893 = vst [vmem:[#allocation84_spill] sm:$0xff] %v18625_v35 }
 0x17a   :  { %15385 = vmatprep.subr.bf16.mxu1 %v21777_v9 }
 0x17b   :  { %15423 = vmatpush3.bf16.msra.mxu0 %v21886_v27  ;;  %v21320_v27 = vand.u32 4294901760, %v18604_v41 }
 0x17c   :  { %15425 = vmatprep.subr.bf16.mxu0 %v21887_v18  ;;  %v12360_v21 = vpop.f32.mrb[6].mxu0  ;;  %v21894_v18 = vld [vmem:[#allocation27_spill] sm:$0xff] }
 0x17d   :  { %v12361_v34 = vpop.f32.mrb[7].mxu0  ;;  %15387 = vmatpush3.bf16.msra.mxu1 %v21784_v14 }
 0x17e   :  { %v12362_v37 = vadd.f32 %v12361_v34, %v12360_v21  ;;  %15389 = vmatprep.subr.bf16.mxu1 %v21785_v30  ;;  %v21322_v21 = vand.u32 4294901760, %v18610_v4  ;;  %v21321_v34 = vand.u32 4294901760, %v18615_v5 }
 0x17f   :  { %15427 = vmatpush3.bf16.msra.mxu0 %v21888_v6  ;;  %v18642_v6 = vld [vmem:[%s21086_s1 + $0x30] sm:$0xff] }
 0x180   :  { %15429 = vmatprep.subr.bf16.mxu0 %v21889_v36  ;;  %v18647_v36 = vld [vmem:[%s21086_s1 + $0x38] sm:$0xff] }
 0x181   :  { %15391 = vmatpush3.bf16.msra.mxu1 %v21789_v60 }
 0x182   :  { %15393 = vmatprep.subr.bf16.mxu1 %v21790_v62 }
 0x183   :  { %15431 = vmatpush3.bf16.msra.mxu0 %v21890_v48  ;;  %v12325_v61 = vpop.f32.mrb[8].mxu1 }
 0x184   :  { %15433 = vmatprep.subr.bf16.mxu0 %v21891_v3  ;;  %v12326_v10 = vpop.f32.mrb[9].mxu1  ;;  %v18655_v3 = vld [vmem:[%s21086_s1 + $0xc0] sm:$0xff] }
 0x185   :  { %v12327_v38 = vadd.f32 %v12326_v10, %v12325_v61  ;;  %15395 = vmatpush3.bf16.msra.mxu1 %v21792_v26  ;;  %v18660_v61 = vld [vmem:[%s21086_s1 + $0xc8] sm:$0xff]  ;;  %v18671_v10 = vpack.c.bf16 %v21320_v27, %v21323_v11  ;;  %v18687_v27 = vld [vmem:[%s21086_s1 + $0x40] sm:$0xff]  ;;  %v143_v11 = vld [vmem:[%s21086_s1 + $0x410] sm:$0xf] }
 0x186   :  { %15397 = vmatprep.subr.bf16.mxu1 %v21793_v39  ;;  %v21336_v25 = vand.u32 4294901760, %v18687_v27 }
 0x187   :  { %15435 = vmatpush3.bf16.msra.mxu0 %v21892_v53  ;;  %v1353_v28 = vadd.f32 %v12327_v38, %v18485_v40  ;;  %v18635_v40 = vpack.c.bf16 %v21318_v31, %v21319_v29  ;;  %v142_v53 = vld [vmem:[%s21086_s1 + $0x408] sm:$0xf]  ;;  %21896 = vst [vmem:[#allocation87_spill] sm:$0xff] %v18671_v10  ;;  %v21328_v38 = vand.u32 4294901760, %v18642_v6  ;;  %v21330_v31 = vand.u32 4294901760, %v18655_v3 }
 0x188   :  { %15469 = vmatprep.subr.bf16.mxu0 %v18552_v42  ;;  %v21329_v29 = vand.u32 4294901760, %v18660_v61 }
 0x189   :  { %21895 = vst [vmem:[#allocation86_spill] sm:$0xff] %v18635_v40  ;;  %v18649_v48 = vadd.f32 %v12362_v37, %v1353_v28  ;;  %15399 = vmatpush3.bf16.msra.mxu1 %v17702_v44  ;;  %v16441_v37 = vmov 0   ;;  %v21327_v28 = vand.u32 4294901760, %v18647_v36 }
 0x18a   :  { %3498 = vmatmul.mubr.f32.vlgmr.msra.gmra.mrb[20].mxu0 %v18416_v24  ;;  %15401 = vmatprep.subr.bf16.mxu1 %v21796_v45 }
 0x18b   :  { %15471 = vmatpush3.bf16.msra.mxu0 %v18583_v59  ;;  %3726 = vmatprep.mubr.f32.mxu0 %v21894_v18  ;;  %v18680_v18 = vpack.c.bf16 %v21321_v34, %v21322_v21  ;;  %v18698_v34 = vld [vmem:[%s21086_s1 + $0xd0] sm:$0xff]  ;;  %v18703_v21 = vld [vmem:[%s21086_s1 + $0xd8] sm:$0xff] }
 0x18c   :  { %15473 = vmatprep.subr.bf16.mxu0 %v18592_v52  ;;  %16432 = vset.pattern.permute.xlu0 %v16441_v37  ;;  %v21335_v46 = vand.u32 4294901760, %v18698_v34 }
 0x18d   :  { %3614 = vperm.xlu0 %16432, %v142_v53   ;;  %21897 = vst [vmem:[#allocation2_spill] sm:$0xff] %v18680_v18  ;;  %v18692_v53 = vld [vmem:[%s21086_s1 + $0x48] sm:$0xff]  ;;  %16433 = vset.pattern.permute.xlu1 %v16441_v37  ;;  %v18714_v37 = vpack.c.bf16 %v21327_v28, %v21328_v38  ;;  %v21334_v28 = vand.u32 4294901760, %v18703_v21  ;;  %v18732_v38 = vld [vmem:[%s21086_s1 + $0x50] sm:$0xff] }
 0x18e   :  { %15403 = vmatpush3.bf16.msra.mxu1 %v17741_v43  ;;  %v21333_v22 = vand.u32 4294901760, %v18692_v53  ;;  %v21903_v20 = vand.u32 4294901760, %v18732_v38 }
 0x18f   :  { %15475 = vmatpush3.bf16.msra.mxu0 %v18625_v35  ;;  %15437 = vmatprep.subr.bf16.mxu1 %v17390_v1  ;;  %21898 = vst [vmem:[#allocation89_spill] sm:$0xff] %v18714_v37  ;;  %v18725_v1 = vpack.c.bf16 %v21329_v29, %v21330_v31  ;;  %v7660_v29 = vld [vmem:[%s21086_s1 + $0x548] sm:$0xff]  ;;  %v18816_v31 = vsub.f32 %v18530_v56, %v21902_v8 }
 0x190   :  { %15477 = vmatprep.subr.bf16.mxu0 %v18635_v40 }
 0x191   :  { %3621 = vperm.xlu0 %16432, %v143_v11   ;;  %3330 = vmatmul.mubr.f32.vlgmr.msra.gmra.mrb[22].mxu1 %v2849_v57  ;;  %21899 = vst [vmem:[#allocation90_spill] sm:$0xff] %v18725_v1  ;;  %v18743_v57 = vld [vmem:[%s21086_s1 + $0xe0] sm:$0xff]  ;;  %v18748_v11 = vld [vmem:[%s21086_s1 + $0xe8] sm:$0xff] }
 0x192   :  { %15439 = vmatpush3.bf16.msra.mxu1 %v21759_v15  ;;  %3600 = vmatprep.mubr.f32.mxu1 %v18371_v13  ;;  %v18760_v15 = vpack.c.bf16 %v21333_v22, %v21336_v25  ;;  %v18776_v22 = vld [vmem:[%s21086_s1 + $0x60] sm:$0xff]  ;;  %v10510_v25 = vld [vmem:[%s21086_s1 + $0x578] sm:$0xff]  ;;  %v18810_v13 = vsub.f32 %v18525_v2, %v3626_v47  ;;  %v21907_v56 = vand.u32 4294901760, %v18743_v57  ;;  %v21908_v8 = vand.u32 4294901760, %v18748_v11 }
 0x193   :  { %15479 = vmatpush3.bf16.msra.mxu0 %v18671_v10  ;;  %15441 = vmatprep.subr.bf16.mxu1 %v21761_v51  ;;  %v18769_v51 = vpack.c.bf16 %v21334_v28, %v21335_v46  ;;  %v18787_v28 = vld [vmem:[%s21086_s1 + $0xf0] sm:$0xff]  ;;  %v18792_v46 = vld [vmem:[%s21086_s1 + $0xf8] sm:$0xff] }
 0x194   :  { %15481 = vmatprep.subr.bf16.mxu0 %v18680_v18  ;;  %21900 = vst [vmem:[#allocation3_spill] sm:$0xff] %v18760_v15 }
 0x195   :  { %8953 = vperm.xlu0 %16432, %v7660_v29   ;;  %21901 = vst [vmem:[#allocation4_spill] sm:$0xff] %v18769_v51  ;;  %v18781_v29 = vld [vmem:[%s21086_s1 + $0x68] sm:$0xff] }
 0x196   :  { %15443 = vmatpush3.bf16.msra.mxu1 %v21768_v55  ;;  %v18805_v55 = vsub.f32 %v18515_v63, %v3677_v0  ;;  %v18823_v63 = vpack.c.bf16 %v21904_v49, %v21903_v20  ;;  %v3662_v0 = vand.u32 4294901760, %v18776_v22  ;;  %v3716_v20 = vand.u32 4294901760, %v18787_v28 }
 0x197   :  { %15483 = vmatpush3.bf16.msra.mxu0 %v18714_v37  ;;  %15445 = vmatprep.subr.bf16.mxu1 %v21769_v58  ;;  %v21906_v58 = vand.u32 4294901760, %v18536_v50  ;;  %v21912_v49 = vand.u32 4294901760, %v18564_v16 }
 0x198   :  { %15485 = vmatprep.subr.bf16.mxu0 %v18725_v1  ;;  %21905 = vst [vmem:[#allocation92_spill] sm:$0xff] %v18823_v63  ;;  %v21913_v1 = vand.u32 4294901760, %v18570_v32 }
 0x199   :  { %10514 = vperm.xlu0 %16432, %v10510_v25   ;;  %v18830_v47 = vsub.f32 %v18536_v50, %v21906_v58  ;;  %v18844_v25 = vld [vmem:[%s21086_s1 + $0x70] sm:$0xff]  ;;  %v18849_v50 = vld [vmem:[%s21086_s1 + $0x78] sm:$0xff]  ;;  %v21910_v58 = vand.u32 4294901760, %v18541_v33 }
 0x19a   :  { %15447 = vmatpush3.bf16.msra.mxu1 %v21776_v54  ;;  %v18870_v37 = vsub.f32 %v18570_v32, %v21913_v1  ;;  %v21916_v54 = vand.u32 4294901760, %v18604_v41  ;;  %v21917_v1 = vand.u32 4294901760, %v18610_v4 }
 0x19b   :  { %15487 = vmatpush3.bf16.msra.mxu0 %v18760_v15  ;;  %v18837_v15 = vpack.c.bf16 %v21908_v8, %v21907_v56  ;;  %v18854_v2 = vsub.f32 %v18541_v33, %v21910_v58  ;;  %v21911_v56 = vand.u32 4294901760, %v18559_v17  ;;  %v11021_v33 = vld [vmem:[%s21086_s1 + $0x598] sm:$0xff]  ;;  %15449 = vmatprep.subr.bf16.mxu1 %v21777_v9  ;;  %v21920_v9 = vand.u32 4294901760, %v18615_v5 }
 0x19c   :  { %15489 = vmatprep.subr.bf16.mxu0 %v18769_v51  ;;  %v18864_v51 = vsub.f32 %v18564_v16, %v21912_v49  ;;  %v21915_v16 = vand.u32 4294901760, %v18599_v12  ;;  %v18888_v32 = vsub.f32 %v18604_v41, %v21916_v54  ;;  %v21928_v41 = vand.u32 4294901760, %v18692_v53 }
 0x19d   :  { %21909 = vst [vmem:[#allocation5_spill] sm:$0xff] %v18837_v15  ;;  %v18859_v8 = vsub.f32 %v18559_v17, %v21911_v56  ;;  %v12430_v18 = vpop.f32.mrb[8].mxu0  ;;  %v21914_v17 = vand.u32 4294901760, %v18575_v19  ;;  %v18894_v56 = vsub.f32 %v18610_v4, %v21917_v1  ;;  %11025 = vperm.xlu0 %16432, %v11021_v33   ;;  %v18908_v54 = vsub.f32 %v18615_v5, %v21920_v9 }
 0x19e   :  { %v18883_v49 = vsub.f32 %v18599_v12, %v21915_v16  ;;  %v12431_v10 = vpop.f32.mrb[9].mxu0  ;;  %v21918_v12 = vand.u32 4294901760, %v18781_v29  ;;  %v21349_v16 = vand.u32 4294901760, %v18844_v25  ;;  %v21921_v4 = vand.u32 4294901760, %v18642_v6  ;;  %15451 = vmatpush3.bf16.msra.mxu1 %v21784_v14 }
 0x19f   :  { %v18878_v58 = vsub.f32 %v18575_v19, %v21914_v17  ;;  %v18896_v19 = vadd.f32 %v12431_v10, %v12430_v18  ;;  %15491 = vmatpush3.bf16.msra.mxu0 %v18823_v63  ;;  %v21922_v18 = vand.u32 4294901760, %v18647_v36  ;;  %v21925_v5 = vand.u32 4294901760, %v18655_v3  ;;  %15453 = vmatprep.subr.bf16.mxu1 %v21785_v30  ;;  %v21943_v63 = vld [vmem:[#allocation26_spill] sm:$0xff] }
 0x1a0   :  { %v18901_v17 = vpack.c.bf16 %v21918_v12, %v3662_v0  ;;  %v18913_v10 = vsub.f32 %v18642_v6, %v21921_v4  ;;  %15493 = vmatprep.subr.bf16.mxu0 %v18837_v15  ;;  %v21923_v12 = vand.u32 4294901760, %v18792_v46  ;;  %v21926_v6 = vand.u32 4294901760, %v18660_v61 }
 0x1a1   :  { %v18918_v1 = vsub.f32 %v18647_v36, %v21922_v18  ;;  %v18929_v9 = vsub.f32 %v18655_v3, %v21925_v5  ;;  %v21350_v36 = vand.u32 4294901760, %v18800_v23  ;;  %v18947_v3 = vsub.f32 %v18692_v53, %v21928_v41 }
 0x1a2   :  { %21919 = vst [vmem:[#allocation6_spill] sm:$0xff] %v18901_v17  ;;  %v18923_v33 = vpack.c.bf16 %v21923_v12, %v3716_v20  ;;  %v18934_v4 = vsub.f32 %v18660_v61, %v21926_v6  ;;  %v21927_v12 = vand.u32 4294901760, %v18687_v27  ;;  %v21929_v5 = vand.u32 4294901760, %v18698_v34  ;;  %15455 = vmatpush3.bf16.msra.mxu1 %v21789_v60 }
 0x1a3   :  { %v21353_v6 = vand.u32 4294901760, %v18810_v13  ;;  %v21930_v18 = vand.u32 4294901760, %v18703_v21  ;;  %15495 = vmatpush3.bf16.msra.mxu0 %v18901_v17  ;;  %v21932_v53 = vand.u32 4294901760, %v18849_v50  ;;  %v21936_v41 = vand.u32 4294901760, %v18748_v11  ;;  %15457 = vmatprep.subr.bf16.mxu1 %v21790_v62 }
 0x1a4   :  { %21924 = vst [vmem:[#allocation7_spill] sm:$0xff] %v18923_v33  ;;  %v18942_v14 = vsub.f32 %v18687_v27, %v21927_v12  ;;  %v18952_v61 = vsub.f32 %v18698_v34, %v21929_v5  ;;  %v21931_v27 = vand.u32 4294901760, %v18732_v38  ;;  %v21934_v5 = vand.u32 4294901760, %v18737_v7  ;;  %15497 = vmatprep.subr.bf16.mxu0 %v18923_v33 }
 0x1a5   :  { %v18958_v30 = vsub.f32 %v18703_v21, %v21930_v18  ;;  %v18970_v34 = vpack.c.bf16 %v21932_v53, %v21349_v16  ;;  %v21935_v53 = vand.u32 4294901760, %v18743_v57  ;;  %v21937_v18 = vand.u32 4294901760, %v18805_v55 }
 0x1a6   :  { %v18963_v12 = vsub.f32 %v18732_v38, %v21931_v27  ;;  %v18976_v21 = vsub.f32 %v18737_v7, %v21934_v5  ;;  %v15532_v38 = vpack.c.bf16 %v18805_v55, %v18800_v23  ;;  %v18992_v7 = vsub.f32 %v18748_v11, %v21936_v41  ;;  %15459 = vmatpush3.bf16.msra.mxu1 %v21792_v26 }
 0x1a7   :  { %21933 = vst [vmem:[#allocation8_spill] sm:$0xff] %v18970_v34  ;;  %v18987_v16 = vsub.f32 %v18743_v57, %v21935_v53  ;;  %v3853_v5 = vsub.f32 %v18800_v23, %v21350_v36  ;;  %v3860_v27 = vsub.f32 %v18805_v55, %v21937_v18  ;;  %v19002_v60 = vsub.f32 %v18776_v22, %v3662_v0  ;;  %v12395_v53 = vpop.f32.mrb[10].mxu1 }
 0x1a8   :  { %v3741_v57 = vsub.f32 %v18810_v13, %v21353_v6  ;;  %v21938_v36 = vand.u32 4294901760, %v18781_v29  ;;  %v19015_v18 = vsub.f32 %v18787_v28, %v3716_v20  ;;  %15499 = vmatpush3.bf16.msra.mxu0 %v18970_v34  ;;  %v21939_v62 = vand.u32 4294901760, %v18816_v31  ;;  %v12396_v6 = vpop.f32.mrb[11].mxu1  ;;  %15461 = vmatprep.subr.bf16.mxu1 %v21793_v39 }
 0x1a9   :  { %v15534_v0 = vpack.c.bf16 %v18816_v31, %v18810_v13  ;;  %15533 = vmatprep.subr.bf16.mxu0 %v15532_v38  ;;  %v21940_v41 = vand.u32 4294901760, %v18830_v47  ;;  %v15536_v20 = vpack.c.bf16 %v18854_v2, %v18830_v47  ;;  %v12397_v34 = vadd.f32 %v12396_v6, %v12395_v53 }
 0x1aa   :  { %v19012_v33 = vsub.f32 %v18781_v29, %v21938_v36  ;;  %v3748_v22 = vsub.f32 %v18816_v31, %v21939_v62  ;;  %v21941_v29 = vand.u32 4294901760, %v18854_v2  ;;  %v21364_v36 = vand.u32 4294901760, %v18870_v37  ;;  %15463 = vmatpush3.bf16.msra.mxu1 %v17702_v44 }
 0x1ab   :  { %v3867_v11 = vsub.f32 %v18830_v47, %v21940_v41  ;;  %v21942_v62 = vand.u32 4294901760, %v18792_v46  ;;  %v3854_v17 = vand.u32 4294901760, %v3853_v5  ;;  %v3861_v15 = vand.u32 4294901760, %v3860_v27  ;;  %3732 = vmatmul.mubr.f32.vlgmr.msra.gmra.mrb[22].mxu0 %v21943_v63  ;;  %v21946_v63 = vld [vmem:[#allocation20_spill] sm:$0xff]  ;;  %15465 = vmatprep.subr.bf16.mxu1 %v21796_v45 }
 0x1ac   :  { %v3874_v28 = vsub.f32 %v18854_v2, %v21941_v29  ;;  %v3742_v41 = vand.u32 4294901760, %v3741_v57  ;;  %v21944_v29 = vand.u32 4294901760, %v18859_v8  ;;  %v21945_v6 = vand.u32 4294901760, %v18864_v51  ;;  %15535 = vmatpush3.bf16.msra.mxu0 %v15534_v0  ;;  %4099 = vmatprep.mubr.f32.mxu0 %v21946_v63 }
 0x1ad   :  { %v19036_v38 = vsub.f32 %v18792_v46, %v21942_v62  ;;  %v21370_v53 = vand.u32 4294901760, %v18878_v58  ;;  %v1599_v46 = vadd.f32 %v12397_v34, %v18649_v48  ;;  %v3749_v62 = vand.u32 4294901760, %v3748_v22  ;;  %15537 = vmatprep.subr.bf16.mxu0 %v15536_v20 }
 0x1ae   :  { %v3755_v40 = vsub.f32 %v18859_v8, %v21944_v29  ;;  %v3762_v26 = vsub.f32 %v18864_v51, %v21945_v6  ;;  %v15538_v39 = vpack.c.bf16 %v18864_v51, %v18859_v8  ;;  %v21369_v27 = vand.u32 4294901760, %v18883_v49  ;;  %15467 = vmatpush3.bf16.msra.mxu1 %v17741_v43 }
 0x1af   :  { %v3868_v5 = vand.u32 4294901760, %v3867_v11  ;;  %v3875_v57 = vand.u32 4294901760, %v3874_v28  ;;  %v3881_v29 = vsub.f32 %v18870_v37, %v21364_v36  ;;  %v15540_v6 = vpack.c.bf16 %v18878_v58, %v18870_v37 }
 0x1b0   :  { %v19058_v48 = vadd.f32 %v18896_v19, %v1599_v46  ;;  %v21947_v34 = vand.u32 4294901760, %v18844_v25  ;;  %v15500_v11 = vpack.c.bf16 %v3861_v15, %v3854_v17  ;;  %v21367_v0 = vand.u32 4294901760, %v18888_v32  ;;  %15539 = vmatpush3.bf16.msra.mxu0 %v15538_v39 }
 0x1b1   :  { %v3888_v28 = vsub.f32 %v18878_v58, %v21370_v53  ;;  %v21365_v20 = vand.u32 4294901760, %v18894_v56  ;;  %v21366_v19 = vand.u32 4294901760, %v18908_v54  ;;  %v21368_v44 = vand.u32 4294901760, %v18913_v10  ;;  %15541 = vmatprep.subr.bf16.mxu0 %v15540_v6  ;;  %3602 = vmatmul.mubr.f32.vlgmr.msra.gmra.mrb[24].mxu1 %v18416_v24 }
 0x1b2   :  { %v19064_v22 = vsub.f32 %v18844_v25, %v21947_v34  ;;  %v15502_v46 = vpack.c.bf16 %v3749_v62, %v3742_v41  ;;  %v3756_v63 = vand.u32 4294901760, %v3755_v40  ;;  %v3763_v36 = vand.u32 4294901760, %v3762_v26  ;;  %15501 = vmatprep.subr.bf16.mxu1 %v15500_v11 }
 0x1b3   :  { %v15542_v15 = vpack.c.bf16 %v18888_v32, %v18883_v49  ;;  %v15504_v25 = vpack.c.bf16 %v3875_v57, %v3868_v5  ;;  %v3882_v17 = vand.u32 4294901760, %v3881_v29  ;;  %v3769_v45 = vsub.f32 %v18883_v49, %v21369_v27 }
 0x1b4   :  { %v15544_v34 = vpack.c.bf16 %v18908_v54, %v18894_v56  ;;  %v3776_v40 = vsub.f32 %v18888_v32, %v21367_v0  ;;  %v21372_v41 = vand.u32 4294901760, %v18918_v1  ;;  %v21371_v26 = vand.u32 4294901760, %v18929_v9  ;;  %15503 = vmatpush3.bf16.msra.mxu1 %v15502_v46 }
 0x1b5   :  { %v21373_v62 = vand.u32 4294901760, %v18934_v4  ;;  %v3889_v39 = vand.u32 4294901760, %v3888_v28  ;;  %v3895_v5 = vsub.f32 %v18894_v56, %v21365_v20  ;;  %v3902_v43 = vsub.f32 %v18908_v54, %v21366_v19  ;;  %15543 = vmatpush3.bf16.msra.mxu0 %v15542_v15  ;;  %15505 = vmatprep.subr.bf16.mxu1 %v15504_v25 }
 0x1b6   :  { %v3783_v57 = vsub.f32 %v18913_v10, %v21368_v44  ;;  %v15506_v29 = vpack.c.bf16 %v3763_v36, %v3756_v63  ;;  %v15546_v6 = vpack.c.bf16 %v18918_v1, %v18913_v10  ;;  %v21375_v11 = vand.u32 4294901760, %v18942_v14  ;;  %15545 = vmatprep.subr.bf16.mxu0 %v15544_v34 }
 0x1b7   :  { %v21374_v28 = vand.u32 4294901760, %v18947_v3  ;;  %v3770_v20 = vand.u32 4294901760, %v3769_v45  ;;  %v15548_v19 = vpack.c.bf16 %v18934_v4, %v18929_v9  ;;  %v21376_v0 = vand.u32 4294901760, %v18952_v61  ;;  %v21948_v45 = vld [vmem:[#allocation18_spill] sm:$0xff] }
 0x1b8   :  { %v21377_v44 = vand.u32 4294901760, %v18958_v30  ;;  %v3777_v36 = vand.u32 4294901760, %v3776_v40  ;;  %v3790_v63 = vsub.f32 %v18918_v1, %v21372_v41  ;;  %v3909_v15 = vsub.f32 %v18929_v9, %v21371_v26  ;;  %3962 = vmatprep.mubr.f32.mxu1 %v21948_v45  ;;  %15507 = vmatpush3.bf16.msra.mxu1 %v15506_v29 }
 0x1b9   :  { %v3916_v24 = vsub.f32 %v18934_v4, %v21373_v62  ;;  %v15508_v34 = vpack.c.bf16 %v3889_v39, %v3882_v17  ;;  %v3896_v27 = vand.u32 4294901760, %v3895_v5  ;;  %v3903_v53 = vand.u32 4294901760, %v3902_v43  ;;  %15547 = vmatpush3.bf16.msra.mxu0 %v15546_v6 }
 0x1ba   :  { %v3784_v46 = vand.u32 4294901760, %v3783_v57  ;;  %v3797_v40 = vsub.f32 %v18942_v14, %v21375_v11  ;;  %v3804_v26 = vsub.f32 %v18947_v3, %v21374_v28  ;;  %v15550_v41 = vpack.c.bf16 %v18947_v3, %v18942_v14  ;;  %15549 = vmatprep.subr.bf16.mxu0 %v15548_v19 }
 0x1bb   :  { %v3923_v25 = vsub.f32 %v18952_v61, %v21376_v0  ;;  %v3930_v17 = vsub.f32 %v18958_v30, %v21377_v44  ;;  %v15552_v5 = vpack.c.bf16 %v18958_v30, %v18952_v61  ;;  %v15510_v43 = vpack.c.bf16 %v3777_v36, %v3770_v20  ;;  %15509 = vmatprep.subr.bf16.mxu1 %v15508_v34 }
 0x1bc   :  { %v3791_v57 = vand.u32 4294901760, %v3790_v63  ;;  %v3910_v6 = vand.u32 4294901760, %v3909_v15  ;;  %v3917_v28 = vand.u32 4294901760, %v3916_v24  ;;  %v21949_v19 = vand.u32 4294901760, %v18849_v50 }
 0x1bd   :  { %v15512_v0 = vpack.c.bf16 %v3903_v53, %v3896_v27  ;;  %v3936_v62 = vand.u32 4294901760, %v18987_v16  ;;  %v21380_v44 = vand.u32 4294901760, %v18992_v7  ;;  %v3798_v39 = vand.u32 4294901760, %v3797_v40  ;;  %15551 = vmatpush3.bf16.msra.mxu0 %v15550_v41  ;;  %15511 = vmatpush3.bf16.msra.mxu1 %v15510_v43  ;;  %v12500_v40 = vpop.f32.mrb[10].mxu0 }
 0x1be   :  { %v19137_v11 = vsub.f32 %v18849_v50, %v21949_v19  ;;  %v3805_v35 = vand.u32 4294901760, %v3804_v26  ;;  %v21950_v29 = vand.u32 4294901760, %v18963_v12  ;;  %v15554_v36 = vpack.c.bf16 %v18976_v21, %v18963_v12  ;;  %15553 = vmatprep.subr.bf16.mxu0 %v15552_v5 }
 0x1bf   :  { %v3924_v63 = vand.u32 4294901760, %v3923_v25  ;;  %v3931_v15 = vand.u32 4294901760, %v3930_v17  ;;  %v21951_v50 = vand.u32 4294901760, %v18976_v21  ;;  %v15556_v27 = vpack.c.bf16 %v18992_v7, %v18987_v16  ;;  %15513 = vmatprep.subr.bf16.mxu1 %v15512_v0 }
 0x1c0   :  { %v3811_v20 = vsub.f32 %v18963_v12, %v21950_v29  ;;  %v15514_v26 = vpack.c.bf16 %v3791_v57, %v3784_v46  ;;  %v15516_v41 = vpack.c.bf16 %v3917_v28, %v3910_v6  ;;  %v3824_v24 = vand.u32 4294901760, %v19002_v60  ;;  %v12501_v46 = vpop.f32.mrb[11].mxu0 }
 0x1c1   :  { %v3818_v53 = vsub.f32 %v18976_v21, %v21951_v50  ;;  %v3831_v34 = vand.u32 4294901760, %v19012_v33  ;;  %v3937_v25 = vsub.f32 %v18987_v16, %v3936_v62  ;;  %v3944_v17 = vsub.f32 %v18992_v7, %v21380_v44  ;;  %15555 = vmatpush3.bf16.msra.mxu0 %v15554_v36 }
 0x1c2   :  { %v21381_v5 = vand.u32 4294901760, %v19015_v18  ;;  %v21382_v43 = vand.u32 4294901760, %v19036_v38  ;;  %v15518_v28 = vpack.c.bf16 %v3805_v35, %v3798_v39  ;;  %v15558_v57 = vpack.c.bf16 %v19012_v33, %v19002_v60  ;;  %15557 = vmatprep.subr.bf16.mxu0 %v15556_v27  ;;  %15515 = vmatpush3.bf16.msra.mxu1 %v15514_v26 }
 0x1c3   :  { %v19163_v6 = vadd.f32 %v12501_v46, %v12500_v40  ;;  %v15520_v0 = vpack.c.bf16 %v3931_v15, %v3924_v63  ;;  %v3812_v19 = vand.u32 4294901760, %v3811_v20  ;;  %v3819_v29 = vand.u32 4294901760, %v3818_v53  ;;  %15517 = vmatprep.subr.bf16.mxu1 %v15516_v41 }
 0x1c4   :  { %v15560_v50 = vpack.c.bf16 %v19036_v38, %v19015_v18  ;;  %v3825_v44 = vsub.f32 %v19002_v60, %v3824_v24  ;;  %v3832_v35 = vsub.f32 %v19012_v33, %v3831_v34  ;;  %v21383_v39 = vand.u32 4294901760, %v19064_v22  ;;  %v19283_v33 = vld [vmem:[%s21086_s1 + $0x108] sm:$0xff]  ;;  %v21987_v60 = vld [vmem:[#allocation89_spill] sm:$0xff] }
 0x1c5   :  { %v3845_v36 = vand.u32 4294901760, %v19137_v11  ;;  %v3938_v20 = vand.u32 4294901760, %v3937_v25  ;;  %v3945_v63 = vand.u32 4294901760, %v3944_v17  ;;  %v3951_v15 = vsub.f32 %v19015_v18, %v21381_v5  ;;  %15559 = vmatpush3.bf16.msra.mxu0 %v15558_v57 }
 0x1c6   :  { %v3958_v53 = vsub.f32 %v19036_v38, %v21382_v43  ;;  %v15562_v27 = vpack.c.bf16 %v19137_v11, %v19064_v22  ;;  %v15522_v26 = vpack.c.bf16 %v3819_v29, %v3812_v19  ;;  %15561 = vmatprep.subr.bf16.mxu0 %v15560_v50  ;;  %v21952_v40 = vand.u32 4294901760, %v18800_v23  ;;  %15519 = vmatpush3.bf16.msra.mxu1 %v15518_v28  ;;  %v12465_v50 = vpop.f32.mrb[12].mxu1 }
 0x1c7   :  { %v21953_v41 = vand.u32 4294901760, %v18805_v55  ;;  %v3826_v17 = vand.u32 4294901760, %v3825_v44  ;;  %v3833_v46 = vand.u32 4294901760, %v3832_v35  ;;  %v3839_v5 = vsub.f32 %v19064_v22, %v21383_v39  ;;  %15521 = vmatprep.subr.bf16.mxu1 %v15520_v0  ;;  %v12466_v28 = vpop.f32.mrb[13].mxu1 }
 0x1c8   :  { %v3846_v57 = vsub.f32 %v19137_v11, %v3845_v36  ;;  %v15524_v43 = vpack.c.bf16 %v3945_v63, %v3938_v20  ;;  %v3952_v19 = vand.u32 4294901760, %v3951_v15  ;;  %v3959_v29 = vand.u32 4294901760, %v3958_v53  ;;  %v21958_v53 = vld [vmem:[#allocation19_spill] sm:$0xff]  ;;  %v19319_v11 = vld [vmem:[%s21086_s1 + $0x118] sm:$0xff] }
 0x1c9   :  { %v15596_v25 = vpack.c.bf16 %v21953_v41, %v21952_v40  ;;  %15563 = vmatpush3.bf16.msra.mxu0 %v15562_v27  ;;  %v21954_v23 = vand.u32 4294901760, %v18810_v13  ;;  %v21955_v55 = vand.u32 4294901760, %v18816_v31  ;;  %v21956_v35 = vand.u32 4294901760, %v18830_v47 }
 0x1ca   :  { %v21957_v40 = vand.u32 4294901760, %v18854_v2  ;;  %v12467_v39 = vadd.f32 %v12466_v28, %v12465_v50  ;;  %15523 = vmatpush3.bf16.msra.mxu1 %v15522_v26  ;;  %v15526_v0 = vpack.c.bf16 %v3833_v46, %v3826_v17  ;;  %v3840_v20 = vand.u32 4294901760, %v3839_v5 }
 0x1cb   :  { %v15598_v44 = vpack.c.bf16 %v21955_v55, %v21954_v23  ;;  %15597 = vmatprep.subr.bf16.mxu0 %v15596_v25  ;;  %v3847_v63 = vand.u32 4294901760, %v3846_v57  ;;  %15525 = vmatprep.subr.bf16.mxu1 %v15524_v43  ;;  %v15528_v15 = vpack.c.bf16 %v3959_v29, %v3952_v19  ;;  %v21960_v31 = vand.u32 4294901760, %v18859_v8  ;;  %v21970_v57 = vld [vmem:[#allocation16_spill] sm:$0xff]  ;;  %v21979_v23 = vld [vmem:[#allocation86_spill] sm:$0xff] }
 0x1cc   :  { %v15600_v41 = vpack.c.bf16 %v21957_v40, %v21956_v35  ;;  %4102 = vmatmul.mubr.f32.vlgmr.msra.gmra.mrb[24].mxu0 %v21958_v53  ;;  %v19203_v13 = vadd.f32 %v12467_v39, %v19058_v48  ;;  %v21961_v47 = vand.u32 4294901760, %v18864_v51  ;;  %v21962_v2 = vand.u32 4294901760, %v18870_v37  ;;  %v19257_v35 = vld [vmem:[%s21086_s1 + $0x180] sm:$0xff] }
 0x1cd   :  { %15599 = vmatpush3.bf16.msra.mxu0 %v15598_v44  ;;  %4376 = vmatprep.mubr.f32.mxu0 %v21948_v45  ;;  %v21963_v5 = vand.u32 4294901760, %v18878_v58  ;;  %v15530_v26 = vpack.c.bf16 %v3847_v63, %v3840_v20  ;;  %v21964_v48 = vand.u32 4294901760, %v18883_v49  ;;  %v21965_v39 = vand.u32 4294901760, %v18888_v32 }
 0x1ce   :  { %21959 = vst [vmem:[#allocation9_spill] sm:$0xff] %v19203_v13  ;;  %v15602_v27 = vpack.c.bf16 %v21961_v47, %v21960_v31  ;;  %15601 = vmatprep.subr.bf16.mxu0 %v15600_v41  ;;  %15527 = vmatpush3.bf16.msra.mxu1 %v15526_v0  ;;  %v21966_v51 = vand.u32 4294901760, %v18894_v56  ;;  %v21967_v25 = vand.u32 4294901760, %v18908_v54  ;;  %v21968_v37 = vand.u32 4294901760, %v18913_v10  ;;  %v21973_v54 = vld [vmem:[#allocation24_spill] sm:$0xff] }
 0x1cf   :  { %v15604_v43 = vpack.c.bf16 %v21963_v5, %v21962_v2  ;;  %15529 = vmatprep.subr.bf16.mxu1 %v15528_v15  ;;  %v15606_v8 = vpack.c.bf16 %v21965_v39, %v21964_v48  ;;  %v21969_v58 = vand.u32 4294901760, %v18918_v1  ;;  %v21971_v49 = vand.u32 4294901760, %v18929_v9  ;;  %v19278_v15 = vld [vmem:[%s21086_s1 + $0x100] sm:$0xff]  ;;  %v21991_v48 = vld [vmem:[#allocation4_spill] sm:$0xff] }
 0x1d0   :  { %v15608_v17 = vpack.c.bf16 %v21967_v25, %v21966_v51  ;;  %v21972_v32 = vand.u32 4294901760, %v18934_v4  ;;  %v21974_v10 = vand.u32 4294901760, %v18942_v14  ;;  %v21975_v1 = vand.u32 4294901760, %v18947_v3  ;;  %v21978_v4 = vld [vmem:[#allocation84_spill] sm:$0xff] }
 0x1d1   :  { %15603 = vmatpush3.bf16.msra.mxu0 %v15602_v27  ;;  %v15610_v46 = vpack.c.bf16 %v21969_v58, %v21968_v37  ;;  %v21976_v29 = vand.u32 4294901760, %v18952_v61  ;;  %v21977_v9 = vand.u32 4294901760, %v18958_v30  ;;  %v21980_v55 = vand.u32 4294901760, %v18963_v12  ;;  %v21983_v61 = vld [vmem:[#allocation87_spill] sm:$0xff] }
 0x1d2   :  { %15605 = vmatprep.subr.bf16.mxu0 %v15604_v43  ;;  %15531 = vmatpush3.bf16.msra.mxu1 %v15530_v26  ;;  %v15612_v56 = vpack.c.bf16 %v21972_v32, %v21971_v49  ;;  %v15614_v19 = vpack.c.bf16 %v21975_v1, %v21974_v10  ;;  %v21981_v44 = vand.u32 4294901760, %v18976_v21  ;;  %v21982_v14 = vand.u32 4294901760, %v18992_v7  ;;  %v19262_v12 = vld [vmem:[%s21086_s1 + $0x188] sm:$0xff]  ;;  %v21984_v21 = vld [vmem:[#allocation2_spill] sm:$0xff]  ;;  %v19364_v10 = vld [vmem:[%s21086_s1 + $0x1b0] sm:$0xff] }
 0x1d3   :  { %15565 = vmatprep.subr.bf16.mxu1 %v18552_v42  ;;  %v15616_v50 = vpack.c.bf16 %v21977_v9, %v21976_v29  ;;  %v15622_v7 = vpack.c.bf16 %v3831_v34, %v3824_v24  ;;  %v21986_v41 = vand.u32 4294901760, %v19036_v38  ;;  %v4536_v20 = vand.u32 4294901760, %v19257_v35  ;;  %v19294_v38 = vld [vmem:[%s21086_s1 + $0x198] sm:$0xff]  ;;  %v21988_v24 = vld [vmem:[#allocation90_spill] sm:$0xff]  ;;  %v19330_v26 = vld [vmem:[%s21086_s1 + $0x1a8] sm:$0xff] }
 0x1d4   :  { %v15618_v28 = vpack.c.bf16 %v21981_v44, %v21980_v55  ;;  %v15620_v3 = vpack.c.bf16 %v21982_v14, %v3936_v62  ;;  %v21985_v62 = vand.u32 4294901760, %v19015_v18  ;;  %v4539_v63 = vand.u32 4294901760, %v19262_v12  ;;  %v19289_v18 = vld [vmem:[%s21086_s1 + $0x190] sm:$0xff]  ;;  %v19325_v43 = vld [vmem:[%s21086_s1 + $0x1a0] sm:$0xff]  ;;  %v19358_v32 = vld [vmem:[%s21086_s1 + $0x128] sm:$0xff] }
 0x1d5   :  { %15607 = vmatpush3.bf16.msra.mxu0 %v15606_v8  ;;  %3964 = vmatmul.mubr.f32.vlgmr.msra.gmra.mrb[26].mxu1 %v21970_v57  ;;  %v21989_v34 = vand.u32 4294901760, %v19064_v22  ;;  %v4488_v31 = vand.u32 4294901760, %v19278_v15  ;;  %v21398_v47 = vand.u32 4294901760, %v19283_v33  ;;  %v21397_v2 = vand.u32 4294901760, %v19289_v18  ;;  %v19314_v22 = vld [vmem:[%s21086_s1 + $0x110] sm:$0xff]  ;;  %v19353_v49 = vld [vmem:[%s21086_s1 + $0x120] sm:$0xff] }
 0x1d6   :  { %15609 = vmatprep.subr.bf16.mxu0 %v15608_v17  ;;  %15567 = vmatpush3.bf16.msra.mxu1 %v18583_v59  ;;  %v15624_v0 = vpack.c.bf16 %v21986_v41, %v21985_v62  ;;  %v19307_v27 = vpack.c.bf16 %v4539_v63, %v4536_v20  ;;  %v21392_v5 = vand.u32 4294901760, %v19294_v38  ;;  %v21391_v51 = vand.u32 4294901760, %v19314_v22  ;;  %v19369_v1 = vld [vmem:[%s21086_s1 + $0x1b8] sm:$0xff]  ;;  %v21995_v44 = vld [vmem:[#allocation79_spill] sm:$0xff]  ;;  %v19409_v62 = vld [vmem:[%s21086_s1 + $0x1c0] sm:$0xff] }
 0x1d7   :  { %4206 = vmatprep.mubr.f32.mxu1 %v21973_v54  ;;  %15569 = vmatprep.subr.bf16.mxu1 %v18592_v52  ;;  %v15626_v53 = vpack.c.bf16 %v3845_v36, %v21989_v34  ;;  %v21990_v36 = vld [vmem:[#allocation3_spill] sm:$0xff]  ;;  %v19337_v8 = vpack.c.bf16 %v21398_v47, %v4488_v31  ;;  %v21390_v25 = vand.u32 4294901760, %v19319_v11  ;;  %v21389_v58 = vand.u32 4294901760, %v19325_v43  ;;  %v21992_v54 = vld [vmem:[#allocation92_spill] sm:$0xff] }
 0x1d8   :  { %v19346_v37 = vpack.c.bf16 %v21392_v5, %v21397_v2  ;;  %v21384_v55 = vand.u32 4294901760, %v19358_v32  ;;  %v21385_v14 = vand.u32 4294901760, %v19369_v1  ;;  %v19414_v41 = vld [vmem:[%s21086_s1 + $0x1c8] sm:$0xff]  ;;  %v19541_v47 = vsub.f32 %v19257_v35, %v4536_v20 }
 0x1d9   :  { %15611 = vmatpush3.bf16.msra.mxu0 %v15610_v46  ;;  %v21388_v46 = vand.u32 4294901760, %v19330_v26  ;;  %v19379_v9 = vpack.c.bf16 %v21390_v25, %v21391_v51  ;;  %v22003_v25 = vld [vmem:[#allocation22_spill] sm:$0xff]  ;;  %v22007_v2 = vand.u32 4294901760, %v19283_v33 }
 0x1da   :  { %15613 = vmatprep.subr.bf16.mxu0 %v15612_v56  ;;  %15571 = vmatpush3.bf16.msra.mxu1 %v21978_v4 }
 0x1db   :  { %15573 = vmatprep.subr.bf16.mxu1 %v21979_v23  ;;  %21994 = vst [vmem:[#allocation10_spill] sm:$0xff] %v19379_v9  ;;  %v19557_v13 = vsub.f32 %v19283_v33, %v22007_v2 }
 0x1dd   :  { %15615 = vmatpush3.bf16.msra.mxu0 %v15614_v19  ;;  %v12570_v30 = vpop.f32.mrb[12].mxu0  ;;  %v21993_v19 = vld [vmem:[#allocation5_spill] sm:$0xff] }
 0x1de   :  { %15617 = vmatprep.subr.bf16.mxu0 %v15616_v50  ;;  %15575 = vmatpush3.bf16.msra.mxu1 %v21983_v61  ;;  %v12571_v40 = vpop.f32.mrb[13].mxu0  ;;  %v21387_v50 = vand.u32 4294901760, %v19353_v49 }
 0x1df   :  { %15577 = vmatprep.subr.bf16.mxu1 %v21984_v21  ;;  %v12572_v16 = vadd.f32 %v12571_v40, %v12570_v30  ;;  %v19401_v30 = vld [vmem:[%s21086_s1 + $0x138] sm:$0xff] }
 0x1e1   :  { %15619 = vmatpush3.bf16.msra.mxu0 %v15618_v28  ;;  %v21386_v28 = vand.u32 4294901760, %v19364_v10 }
 0x1e2   :  { %15621 = vmatprep.subr.bf16.mxu0 %v15620_v3  ;;  %15579 = vmatpush3.bf16.msra.mxu1 %v21987_v60  ;;  %v19396_v3 = vld [vmem:[%s21086_s1 + $0x130] sm:$0xff] }
 0x1e3   :  { %15581 = vmatprep.subr.bf16.mxu1 %v21988_v24  ;;  %v12535_v39 = vpop.f32.mrb[14].mxu1  ;;  %v21396_v34 = vand.u32 4294901760, %v19396_v3 }
 0x1e4   :  { %v12536_v17 = vpop.f32.mrb[15].mxu1 }
 0x1e5   :  { %15623 = vmatpush3.bf16.msra.mxu0 %v15622_v7  ;;  %v12537_v56 = vadd.f32 %v12536_v17, %v12535_v39  ;;  %v21997_v7 = vld [vmem:[#allocation6_spill] sm:$0xff]  ;;  %v19431_v39 = vpack.c.bf16 %v21385_v14, %v21386_v28  ;;  %v21395_v17 = vand.u32 4294901760, %v19409_v62  ;;  %v19449_v14 = vld [vmem:[%s21086_s1 + $0x1d0] sm:$0xff]  ;;  %v19454_v28 = vld [vmem:[%s21086_s1 + $0x1d8] sm:$0xff] }
 0x1e6   :  { %15625 = vmatprep.subr.bf16.mxu0 %v15624_v0  ;;  %15583 = vmatpush3.bf16.msra.mxu1 %v21990_v36  ;;  %v21998_v0 = vld [vmem:[#allocation7_spill] sm:$0xff]  ;;  %v21402_v51 = vand.u32 4294901760, %v19449_v14  ;;  %v21401_v5 = vand.u32 4294901760, %v19454_v28 }
 0x1e7   :  { %15585 = vmatprep.subr.bf16.mxu1 %v21991_v48  ;;  %v2224_v29 = vadd.f32 %v12537_v56, %v19163_v6  ;;  %v19389_v6 = vpack.c.bf16 %v21388_v46, %v21389_v58  ;;  %22000 = vst [vmem:[#allocation14_spill] sm:$0xff] %v19431_v39  ;;  %v21394_v56 = vand.u32 4294901760, %v19414_v41 }
 0x1e9   :  { %15627 = vmatpush3.bf16.msra.mxu0 %v15626_v53  ;;  %21996 = vst [vmem:[#allocation11_spill] sm:$0xff] %v19389_v6  ;;  %v19403_v40 = vadd.f32 %v12572_v16, %v2224_v29  ;;  %v19422_v16 = vpack.c.bf16 %v21384_v55, %v21387_v50  ;;  %v21393_v53 = vand.u32 4294901760, %v19401_v30  ;;  %v19438_v29 = vld [vmem:[%s21086_s1 + $0x140] sm:$0xff]  ;;  %v22001_v55 = vld [vmem:[#allocation8_spill] sm:$0xff] }
 0x1ea   :  { %15661 = vmatprep.subr.bf16.mxu0 %v19307_v27  ;;  %15587 = vmatpush3.bf16.msra.mxu1 %v21992_v54  ;;  %v21400_v46 = vand.u32 4294901760, %v19438_v29 }
 0x1eb   :  { %15589 = vmatprep.subr.bf16.mxu1 %v21993_v19  ;;  %21999 = vst [vmem:[#allocation12_spill] sm:$0xff] %v19422_v16  ;;  %v19462_v50 = vpack.c.bf16 %v21393_v53, %v21396_v34  ;;  %v19479_v53 = vld [vmem:[%s21086_s1 + $0x150] sm:$0xff] }
 0x1ec   :  { %4378 = vmatmul.mubr.f32.vlgmr.msra.gmra.mrb[26].mxu0 %v21970_v57  ;;  %v4518_v34 = vand.u32 4294901760, %v19479_v53 }
 0x1ed   :  { %15663 = vmatpush3.bf16.msra.mxu0 %v19337_v8  ;;  %4588 = vmatprep.mubr.f32.mxu0 %v21995_v44  ;;  %v19443_v44 = vld [vmem:[%s21086_s1 + $0x148] sm:$0xff]  ;;  %22002 = vst [vmem:[#allocation15_spill] sm:$0xff] %v19462_v50 }
 0x1ee   :  { %15665 = vmatprep.subr.bf16.mxu0 %v19346_v37  ;;  %15591 = vmatpush3.bf16.msra.mxu1 %v21997_v7  ;;  %v21399_v58 = vand.u32 4294901760, %v19443_v44 }
 0x1ef   :  { %15593 = vmatprep.subr.bf16.mxu1 %v21998_v0 }
 0x1f1   :  { %15667 = vmatpush3.bf16.msra.mxu0 %v19379_v9 }
 0x1f2   :  { %15669 = vmatprep.subr.bf16.mxu0 %v19389_v6  ;;  %15595 = vmatpush3.bf16.msra.mxu1 %v22001_v55 }
 0x1f3   :  { %15629 = vmatprep.subr.bf16.mxu1 %v18552_v42  ;;  %v19472_v42 = vpack.c.bf16 %v21394_v56, %v21395_v17  ;;  %v19490_v56 = vld [vmem:[%s21086_s1 + $0x1e0] sm:$0xff]  ;;  %v19495_v17 = vld [vmem:[%s21086_s1 + $0x1e8] sm:$0xff] }
 0x1f4   :  { %v22012_v33 = vand.u32 4294901760, %v19495_v17 }
 0x1f5   :  { %15671 = vmatpush3.bf16.msra.mxu0 %v19422_v16  ;;  %4210 = vmatmul.mubr.f32.vlgmr.msra.gmra.mrb[28].mxu1 %v22003_v25  ;;  %22004 = vst [vmem:[#allocation17_spill] sm:$0xff] %v19472_v42  ;;  %v19484_v25 = vld [vmem:[%s21086_s1 + $0x158] sm:$0xff] }
 0x1f6   :  { %15673 = vmatprep.subr.bf16.mxu0 %v19431_v39  ;;  %15631 = vmatpush3.bf16.msra.mxu1 %v18583_v59  ;;  %v19504_v59 = vpack.c.bf16 %v21399_v58, %v21400_v46  ;;  %v19520_v58 = vld [vmem:[%s21086_s1 + $0x160] sm:$0xff]  ;;  %v19525_v46 = vld [vmem:[%s21086_s1 + $0x168] sm:$0xff]  ;;  %v22008_v35 = vand.u32 4294901760, %v19484_v25  ;;  %v22017_v39 = vand.u32 4294901760, %v19325_v43 }
 0x1f7   :  { %4480 = vmatprep.mubr.f32.mxu1 %v21948_v45  ;;  %15633 = vmatprep.subr.bf16.mxu1 %v18592_v52  ;;  %v19513_v45 = vpack.c.bf16 %v21401_v5, %v21402_v51  ;;  %v19531_v5 = vld [vmem:[%s21086_s1 + $0x1f0] sm:$0xff]  ;;  %v19536_v51 = vld [vmem:[%s21086_s1 + $0x1f8] sm:$0xff]  ;;  %v19546_v52 = vsub.f32 %v19262_v12, %v4539_v63  ;;  %v4524_v12 = vand.u32 4294901760, %v19520_v58  ;;  %v4527_v63 = vand.u32 4294901760, %v19525_v46 }
 0x1f8   :  { %22005 = vst [vmem:[#allocation21_spill] sm:$0xff] %v19504_v59  ;;  %v19562_v20 = vpack.c.bf16 %v22008_v35, %v4518_v34  ;;  %v4578_v35 = vand.u32 4294901760, %v19531_v5  ;;  %v19609_v16 = vsub.f32 %v19325_v43, %v22017_v39  ;;  %v22021_v43 = vand.u32 4294901760, %v19364_v10 }
 0x1f9   :  { %15675 = vmatpush3.bf16.msra.mxu0 %v19462_v50  ;;  %22006 = vst [vmem:[#allocation23_spill] sm:$0xff] %v19513_v45 }
 0x1fa   :  { %15677 = vmatprep.subr.bf16.mxu0 %v19472_v42  ;;  %15635 = vmatpush3.bf16.msra.mxu1 %v21978_v4  ;;  %v19551_v4 = vsub.f32 %v19278_v15, %v4488_v31  ;;  %22009 = vst [vmem:[#allocation29_spill] sm:$0xff] %v19562_v20  ;;  %v22010_v15 = vand.u32 4294901760, %v19289_v18  ;;  %v19583_v42 = vld [vmem:[%s21086_s1 + $0x170] sm:$0xff]  ;;  %v19630_v39 = vsub.f32 %v19364_v10, %v22021_v43 }
 0x1fb   :  { %15637 = vmatprep.subr.bf16.mxu1 %v21979_v23  ;;  %v22011_v23 = vand.u32 4294901760, %v19490_v56 }
 0x1fc   :  { %v19569_v31 = vsub.f32 %v19289_v18, %v22010_v15  ;;  %v19588_v18 = vld [vmem:[%s21086_s1 + $0x178] sm:$0xff]  ;;  %v22014_v15 = vand.u32 4294901760, %v19294_v38 }
 0x1fd   :  { %15679 = vmatpush3.bf16.msra.mxu0 %v19504_v59  ;;  %v19576_v2 = vpack.c.bf16 %v22012_v33, %v22011_v23  ;;  %v22015_v23 = vand.u32 4294901760, %v19314_v22  ;;  %v22016_v59 = vand.u32 4294901760, %v19319_v11  ;;  %v12640_v6 = vpop.f32.mrb[14].mxu0 }
 0x1fe   :  { %15681 = vmatprep.subr.bf16.mxu0 %v19513_v45  ;;  %v19593_v45 = vsub.f32 %v19294_v38, %v22014_v15  ;;  %15639 = vmatpush3.bf16.msra.mxu1 %v21983_v61  ;;  %v22018_v38 = vand.u32 4294901760, %v19330_v26 }
 0x1ff   :  { %22013 = vst [vmem:[#allocation30_spill] sm:$0xff] %v19576_v2  ;;  %v19598_v33 = vsub.f32 %v19314_v22, %v22015_v23  ;;  %v19603_v50 = vsub.f32 %v19319_v11, %v22016_v59  ;;  %v22019_v22 = vand.u32 4294901760, %v19353_v49  ;;  %v22020_v11 = vand.u32 4294901760, %v19358_v32  ;;  %15641 = vmatprep.subr.bf16.mxu1 %v21984_v21  ;;  %v12641_v59 = vpop.f32.mrb[15].mxu0 }
 0x200   :  { %v19614_v15 = vsub.f32 %v19330_v26, %v22018_v38  ;;  %v19632_v26 = vadd.f32 %v12641_v59, %v12640_v6  ;;  %v19635_v38 = vpack.c.bf16 %v4527_v63, %v4524_v12  ;;  %v22025_v6 = vand.u32 4294901760, %v19401_v30 }
 0x201   :  { %v19619_v23 = vsub.f32 %v19353_v49, %v22019_v22  ;;  %v19624_v61 = vsub.f32 %v19358_v32, %v22020_v11  ;;  %15683 = vmatpush3.bf16.msra.mxu0 %v19562_v20  ;;  %v22023_v32 = vand.u32 4294901760, %v19369_v1  ;;  %v22024_v11 = vand.u32 4294901760, %v19396_v3 }
 0x202   :  { %22022 = vst [vmem:[#allocation31_spill] sm:$0xff] %v19635_v38  ;;  %v19652_v43 = vsub.f32 %v19401_v30, %v22025_v6  ;;  %15685 = vmatprep.subr.bf16.mxu0 %v19576_v2  ;;  %v22026_v59 = vand.u32 4294901760, %v19536_v51  ;;  %15643 = vmatpush3.bf16.msra.mxu1 %v21987_v60  ;;  %v21417_v30 = vand.u32 4294901760, %v19541_v47  ;;  %v22031_v49 = vand.u32 4294901760, %v19443_v44  ;;  %v22046_v2 = vld [vmem:[#allocation94_spill] sm:$0xff] }
 0x203   :  { %v19642_v21 = vsub.f32 %v19369_v1, %v22023_v32  ;;  %v19647_v10 = vsub.f32 %v19396_v3, %v22024_v11  ;;  %v22028_v1 = vand.u32 4294901760, %v19409_v62  ;;  %v22029_v3 = vand.u32 4294901760, %v19414_v41  ;;  %15645 = vmatprep.subr.bf16.mxu1 %v21988_v24 }
 0x204   :  { %v19657_v22 = vpack.c.bf16 %v22026_v59, %v4578_v35  ;;  %v22030_v59 = vand.u32 4294901760, %v19438_v29  ;;  %v22033_v6 = vand.u32 4294901760, %v19454_v28 }
 0x205   :  { %v19663_v32 = vsub.f32 %v19409_v62, %v22028_v1  ;;  %v19668_v11 = vsub.f32 %v19414_v41, %v22029_v3  ;;  %v19681_v62 = vsub.f32 %v19443_v44, %v22031_v49  ;;  %v22032_v1 = vand.u32 4294901760, %v19449_v14  ;;  %15687 = vmatpush3.bf16.msra.mxu0 %v19635_v38 }
 0x206   :  { %22027 = vst [vmem:[#allocation28_spill] sm:$0xff] %v19657_v22  ;;  %v19676_v60 = vsub.f32 %v19438_v29, %v22030_v59  ;;  %v19692_v24 = vsub.f32 %v19454_v28, %v22033_v6  ;;  %v19695_v29 = vsub.f32 %v19479_v53, %v4518_v34  ;;  %v22034_v44 = vand.u32 4294901760, %v19583_v42  ;;  %15689 = vmatprep.subr.bf16.mxu0 %v19657_v22 }
 0x207   :  { %v19686_v41 = vsub.f32 %v19449_v14, %v22032_v1  ;;  %v22035_v49 = vand.u32 4294901760, %v19588_v18  ;;  %v22037_v1 = vand.u32 4294901760, %v19484_v25  ;;  %v15724_v28 = vpack.c.bf16 %v19546_v52, %v19541_v47  ;;  %15647 = vmatpush3.bf16.msra.mxu1 %v21990_v36  ;;  %v12605_v14 = vpop.f32.mrb[16].mxu1 }
 0x208   :  { %v22038_v6 = vand.u32 4294901760, %v19490_v56  ;;  %v22040_v34 = vand.u32 4294901760, %v19546_v52  ;;  %15649 = vmatprep.subr.bf16.mxu1 %v21991_v48  ;;  %v19734_v36 = vsub.f32 %v19520_v58, %v4524_v12  ;;  %v19745_v22 = vsub.f32 %v19531_v5, %v4578_v35 }
 0x209   :  { %v19702_v59 = vpack.c.bf16 %v22035_v49, %v22034_v44  ;;  %v19708_v3 = vsub.f32 %v19484_v25, %v22037_v1  ;;  %v22039_v49 = vand.u32 4294901760, %v19495_v17  ;;  %v4715_v1 = vsub.f32 %v19541_v47, %v21417_v30 }
 0x20a   :  { %v19719_v44 = vsub.f32 %v19490_v56, %v22038_v6  ;;  %v4722_v53 = vsub.f32 %v19546_v52, %v22040_v34  ;;  %v22041_v56 = vand.u32 4294901760, %v19551_v4  ;;  %v19742_v30 = vsub.f32 %v19525_v46, %v4527_v63  ;;  %v12606_v34 = vpop.f32.mrb[17].mxu1 }
 0x20b   :  { %22036 = vst [vmem:[#allocation33_spill] sm:$0xff] %v19702_v59  ;;  %v19724_v25 = vsub.f32 %v19495_v17, %v22039_v49  ;;  %15691 = vmatpush3.bf16.msra.mxu0 %v19702_v59  ;;  %v22042_v48 = vand.u32 4294901760, %v19557_v13  ;;  %v15726_v12 = vpack.c.bf16 %v19557_v13, %v19551_v4  ;;  %v22044_v46 = vand.u32 4294901760, %v19593_v45  ;;  %15651 = vmatpush3.bf16.msra.mxu1 %v21992_v54 }
 0x20c   :  { %v4603_v6 = vsub.f32 %v19551_v4, %v22041_v56  ;;  %15725 = vmatprep.subr.bf16.mxu0 %v15724_v28  ;;  %v22043_v56 = vand.u32 4294901760, %v19569_v31  ;;  %v15728_v63 = vpack.c.bf16 %v19593_v45, %v19569_v31  ;;  %v21428_v35 = vand.u32 4294901760, %v19609_v16  ;;  %15653 = vmatprep.subr.bf16.mxu1 %v21993_v19 }
 0x20d   :  { %v4610_v58 = vsub.f32 %v19557_v13, %v22042_v48  ;;  %v4736_v5 = vsub.f32 %v19593_v45, %v22044_v46  ;;  %v12607_v17 = vadd.f32 %v12606_v34, %v12605_v14  ;;  %v22045_v48 = vand.u32 4294901760, %v19536_v51 }
 0x20e   :  { %v4729_v49 = vsub.f32 %v19569_v31, %v22043_v56  ;;  %v4716_v59 = vand.u32 4294901760, %v4715_v1  ;;  %v4723_v38 = vand.u32 4294901760, %v4722_v53  ;;  %v4604_v56 = vand.u32 4294901760, %v4603_v6  ;;  %4594 = vmatmul.mubr.f32.vlgmr.msra.gmra.mrb[28].mxu0 %v22046_v2  ;;  %v22049_v2 = vld [vmem:[#allocation72_spill] sm:$0xff] }
 0x20f   :  { %v19766_v28 = vsub.f32 %v19536_v51, %v22045_v48  ;;  %v22047_v46 = vand.u32 4294901760, %v19598_v33  ;;  %v22048_v14 = vand.u32 4294901760, %v19603_v50  ;;  %v21434_v34 = vand.u32 4294901760, %v19614_v15  ;;  %15727 = vmatpush3.bf16.msra.mxu0 %v15726_v12  ;;  %4961 = vmatprep.mubr.f32.mxu0 %v22049_v2 }
 0x210   :  { %v2470_v51 = vadd.f32 %v12607_v17, %v19403_v40  ;;  %v4611_v48 = vand.u32 4294901760, %v4610_v58  ;;  %v15730_v19 = vpack.c.bf16 %v19603_v50, %v19598_v33  ;;  %v21433_v53 = vand.u32 4294901760, %v19619_v23  ;;  %15729 = vmatprep.subr.bf16.mxu0 %v15728_v63  ;;  %15655 = vmatpush3.bf16.msra.mxu1 %v21997_v7 }
 0x211   :  { %v4617_v20 = vsub.f32 %v19598_v33, %v22047_v46  ;;  %v4624_v54 = vsub.f32 %v19603_v50, %v22048_v14  ;;  %v4730_v1 = vand.u32 4294901760, %v4729_v49  ;;  %v4737_v6 = vand.u32 4294901760, %v4736_v5  ;;  %15657 = vmatprep.subr.bf16.mxu1 %v21998_v0 }
 0x212   :  { %v4743_v46 = vsub.f32 %v19609_v16, %v21428_v35  ;;  %v15732_v14 = vpack.c.bf16 %v19614_v15, %v19609_v16  ;;  %v19788_v40 = vadd.f32 %v19632_v26, %v2470_v51  ;;  %v22050_v17 = vand.u32 4294901760, %v19583_v42 }
 0x213   :  { %v15692_v49 = vpack.c.bf16 %v4723_v38, %v4716_v59  ;;  %v21431_v12 = vand.u32 4294901760, %v19624_v61  ;;  %v4750_v5 = vsub.f32 %v19614_v15, %v21434_v34  ;;  %v21429_v63 = vand.u32 4294901760, %v19630_v39  ;;  %15731 = vmatpush3.bf16.msra.mxu0 %v15730_v19 }
 0x214   :  { %v19794_v58 = vsub.f32 %v19583_v42, %v22050_v17  ;;  %v21430_v26 = vand.u32 4294901760, %v19642_v21  ;;  %v21432_v7 = vand.u32 4294901760, %v19647_v10  ;;  %v15694_v51 = vpack.c.bf16 %v4611_v48, %v4604_v56  ;;  %15733 = vmatprep.subr.bf16.mxu0 %v15732_v14  ;;  %15659 = vmatpush3.bf16.msra.mxu1 %v22001_v55 }
 0x215   :  { %v4618_v2 = vand.u32 4294901760, %v4617_v20  ;;  %v4625_v35 = vand.u32 4294901760, %v4624_v54  ;;  %v15734_v42 = vpack.c.bf16 %v19624_v61, %v19619_v23  ;;  %v15696_v38 = vpack.c.bf16 %v4737_v6, %v4730_v1  ;;  %15693 = vmatprep.subr.bf16.mxu1 %v15692_v49 }
 0x216   :  { %v4744_v59 = vand.u32 4294901760, %v4743_v46  ;;  %v4631_v0 = vsub.f32 %v19619_v23, %v21433_v53  ;;  %v15736_v17 = vpack.c.bf16 %v19642_v21, %v19630_v39  ;;  %v4638_v20 = vsub.f32 %v19624_v61, %v21431_v12 }
 0x217   :  { %v21436_v56 = vand.u32 4294901760, %v19652_v43  ;;  %v21435_v54 = vand.u32 4294901760, %v19663_v32  ;;  %v21437_v48 = vand.u32 4294901760, %v19668_v11  ;;  %v4751_v19 = vand.u32 4294901760, %v4750_v5  ;;  %15735 = vmatpush3.bf16.msra.mxu0 %v15734_v42  ;;  %4482 = vmatmul.mubr.f32.vlgmr.msra.gmra.mrb[30].mxu1 %v21970_v57 }
 0x218   :  { %v4757_v1 = vsub.f32 %v19630_v39, %v21429_v63  ;;  %v4764_v55 = vsub.f32 %v19642_v21, %v21430_v26  ;;  %v4645_v6 = vsub.f32 %v19647_v10, %v21432_v7  ;;  %v15698_v46 = vpack.c.bf16 %v4625_v35, %v4618_v2  ;;  %15737 = vmatprep.subr.bf16.mxu0 %v15736_v17 }
 0x219   :  { %v15738_v14 = vpack.c.bf16 %v19652_v43, %v19647_v10  ;;  %v21439_v49 = vand.u32 4294901760, %v19676_v60  ;;  %v21438_v5 = vand.u32 4294901760, %v19681_v62  ;;  %v4632_v63 = vand.u32 4294901760, %v4631_v0  ;;  %15695 = vmatpush3.bf16.msra.mxu1 %v15694_v51  ;;  %v22051_v0 = vld [vmem:[#allocation70_spill] sm:$0xff] }
 0x21a   :  { %v15740_v26 = vpack.c.bf16 %v19668_v11, %v19663_v32  ;;  %v21440_v12 = vand.u32 4294901760, %v19686_v41  ;;  %v21441_v7 = vand.u32 4294901760, %v19692_v24  ;;  %v4639_v35 = vand.u32 4294901760, %v4638_v20  ;;  %4824 = vmatprep.mubr.f32.mxu1 %v22051_v0  ;;  %15697 = vmatprep.subr.bf16.mxu1 %v15696_v38 }
 0x21b   :  { %v4652_v2 = vsub.f32 %v19652_v43, %v21436_v56  ;;  %v4771_v42 = vsub.f32 %v19663_v32, %v21435_v54  ;;  %v4778_v57 = vsub.f32 %v19668_v11, %v21437_v48  ;;  %v15700_v17 = vpack.c.bf16 %v4751_v19, %v4744_v59  ;;  %15739 = vmatpush3.bf16.msra.mxu0 %v15738_v14 }
 0x21c   :  { %v4758_v53 = vand.u32 4294901760, %v4757_v1  ;;  %v4765_v34 = vand.u32 4294901760, %v4764_v55  ;;  %v4646_v51 = vand.u32 4294901760, %v4645_v6  ;;  %v4659_v20 = vsub.f32 %v19676_v60, %v21439_v49  ;;  %15741 = vmatprep.subr.bf16.mxu0 %v15740_v26 }
 0x21d   :  { %v4666_v54 = vsub.f32 %v19681_v62, %v21438_v5  ;;  %v15742_v56 = vpack.c.bf16 %v19681_v62, %v19676_v60  ;;  %v4785_v38 = vsub.f32 %v19686_v41, %v21440_v12  ;;  %v4792_v59 = vsub.f32 %v19692_v24, %v21441_v7  ;;  %15699 = vmatpush3.bf16.msra.mxu1 %v15698_v46 }
 0x21e   :  { %v15744_v1 = vpack.c.bf16 %v19692_v24, %v19686_v41  ;;  %v15702_v55 = vpack.c.bf16 %v4639_v35, %v4632_v63  ;;  %v4653_v6 = vand.u32 4294901760, %v4652_v2  ;;  %v4772_v14 = vand.u32 4294901760, %v4771_v42  ;;  %15701 = vmatprep.subr.bf16.mxu1 %v15700_v17 }
 0x21f   :  { %v4779_v5 = vand.u32 4294901760, %v4778_v57  ;;  %v22052_v26 = vand.u32 4294901760, %v19588_v18  ;;  %v15704_v12 = vpack.c.bf16 %v4765_v34, %v4758_v53  ;;  %v4798_v48 = vand.u32 4294901760, %v19719_v44  ;;  %15743 = vmatpush3.bf16.msra.mxu0 %v15742_v56  ;;  %v12710_v57 = vpop.f32.mrb[16].mxu0 }
 0x220   :  { %v21444_v7 = vand.u32 4294901760, %v19724_v25  ;;  %v4660_v19 = vand.u32 4294901760, %v4659_v20  ;;  %v4667_v9 = vand.u32 4294901760, %v4666_v54  ;;  %v22053_v46 = vand.u32 4294901760, %v19695_v29  ;;  %15745 = vmatprep.subr.bf16.mxu0 %v15744_v1 }
 0x221   :  { %v19867_v49 = vsub.f32 %v19588_v18, %v22052_v26  ;;  %v15746_v35 = vpack.c.bf16 %v19708_v3, %v19695_v29  ;;  %v4786_v2 = vand.u32 4294901760, %v4785_v38  ;;  %v4793_v42 = vand.u32 4294901760, %v4792_v59  ;;  %15703 = vmatpush3.bf16.msra.mxu1 %v15702_v55  ;;  %v12711_v26 = vpop.f32.mrb[17].mxu0 }
 0x222   :  { %v4673_v63 = vsub.f32 %v19695_v29, %v22053_v46  ;;  %v22054_v18 = vand.u32 4294901760, %v19708_v3  ;;  %v15748_v53 = vpack.c.bf16 %v19724_v25, %v19719_v44  ;;  %v15706_v54 = vpack.c.bf16 %v4653_v6, %v4646_v51  ;;  %15705 = vmatprep.subr.bf16.mxu1 %v15704_v12 }
 0x223   :  { %v15708_v56 = vpack.c.bf16 %v4779_v5, %v4772_v14  ;;  %v4686_v17 = vand.u32 4294901760, %v19734_v36  ;;  %v4693_v20 = vand.u32 4294901760, %v19742_v30  ;;  %v4799_v38 = vsub.f32 %v19719_v44, %v4798_v48  ;;  %15747 = vmatpush3.bf16.msra.mxu0 %v15746_v35 }
 0x224   :  { %v4680_v34 = vsub.f32 %v19708_v3, %v22054_v18  ;;  %v4806_v59 = vsub.f32 %v19724_v25, %v21444_v7  ;;  %v21445_v1 = vand.u32 4294901760, %v19745_v22  ;;  %v21446_v51 = vand.u32 4294901760, %v19766_v28  ;;  %15749 = vmatprep.subr.bf16.mxu0 %v15748_v53 }
 0x225   :  { %v15710_v5 = vpack.c.bf16 %v4667_v9, %v4660_v19  ;;  %v12712_v55 = vadd.f32 %v12711_v26, %v12710_v57  ;;  %v15750_v6 = vpack.c.bf16 %v19742_v30, %v19734_v36  ;;  %v15712_v12 = vpack.c.bf16 %v4793_v42, %v4786_v2  ;;  %15707 = vmatpush3.bf16.msra.mxu1 %v15706_v54 }
 0x226   :  { %v4674_v14 = vand.u32 4294901760, %v4673_v63  ;;  %v4681_v46 = vand.u32 4294901760, %v4680_v34  ;;  %v15752_v18 = vpack.c.bf16 %v19766_v28, %v19745_v22  ;;  %v4687_v7 = vsub.f32 %v19734_v36, %v4686_v17  ;;  %15709 = vmatprep.subr.bf16.mxu1 %v15708_v56  ;;  %v22093_v36 = vld [vmem:[#allocation23_spill] sm:$0xff] }
 0x227   :  { %v4694_v9 = vsub.f32 %v19742_v30, %v4693_v20  ;;  %v21447_v19 = vand.u32 4294901760, %v19794_v58  ;;  %v4707_v35 = vand.u32 4294901760, %v19867_v49  ;;  %v4800_v63 = vand.u32 4294901760, %v4799_v38  ;;  %15751 = vmatpush3.bf16.msra.mxu0 %v15750_v6  ;;  %v141_v30 = vld [vmem:[%s21086_s1 + $0x400] sm:$0x3] }
 0x228   :  { %v4807_v2 = vand.u32 4294901760, %v4806_v59  ;;  %v4813_v42 = vsub.f32 %v19745_v22, %v21445_v1  ;;  %v4820_v34 = vsub.f32 %v19766_v28, %v21446_v51  ;;  %v15754_v53 = vpack.c.bf16 %v19867_v49, %v19794_v58  ;;  %15753 = vmatprep.subr.bf16.mxu0 %v15752_v18  ;;  %v12675_v18 = vpop.f32.mrb[18].mxu1 }
 0x229   :  { %v15714_v54 = vpack.c.bf16 %v4681_v46, %v4674_v14  ;;  %v22055_v57 = vand.u32 4294901760, %v19541_v47  ;;  %v22056_v56 = vand.u32 4294901760, %v19546_v52  ;;  %15711 = vmatpush3.bf16.msra.mxu1 %v15710_v5  ;;  %v4688_v38 = vand.u32 4294901760, %v4687_v7  ;;  %v12676_v5 = vpop.f32.mrb[19].mxu1 }
 0x22a   :  { %v4695_v59 = vand.u32 4294901760, %v4694_v9  ;;  %v4701_v1 = vsub.f32 %v19794_v58, %v21447_v19  ;;  %v4708_v6 = vsub.f32 %v19867_v49, %v4707_v35  ;;  %15713 = vmatprep.subr.bf16.mxu1 %v15712_v12  ;;  %v15716_v51 = vpack.c.bf16 %v4807_v2, %v4800_v63  ;;  %v22094_v49 = vld [vmem:[#allocation29_spill] sm:$0xff] }
 0x22b   :  { %v15788_v26 = vpack.c.bf16 %v22056_v56, %v22055_v57  ;;  %v4814_v14 = vand.u32 4294901760, %v4813_v42  ;;  %v4821_v46 = vand.u32 4294901760, %v4820_v34  ;;  %15755 = vmatpush3.bf16.msra.mxu0 %v15754_v53  ;;  %v22057_v47 = vand.u32 4294901760, %v19551_v4  ;;  %v22061_v34 = vld [vmem:[#allocation88_spill] sm:$0xff] }
 0x22c   :  { %v22058_v52 = vand.u32 4294901760, %v19557_v13  ;;  %v22059_v9 = vand.u32 4294901760, %v19569_v31  ;;  %v22060_v57 = vand.u32 4294901760, %v19593_v45  ;;  %v12677_v19 = vadd.f32 %v12676_v5, %v12675_v18 }
 0x22d   :  { %15789 = vmatprep.subr.bf16.mxu0 %v15788_v26  ;;  %15715 = vmatpush3.bf16.msra.mxu1 %v15714_v54  ;;  %v15718_v12 = vpack.c.bf16 %v4695_v59, %v4688_v38  ;;  %v4702_v63 = vand.u32 4294901760, %v4701_v1  ;;  %v4709_v2 = vand.u32 4294901760, %v4708_v6  ;;  %v15720_v42 = vpack.c.bf16 %v4821_v46, %v4814_v14  ;;  %v22072_v6 = vld [vmem:[#allocation85_spill] sm:$0xff] }
 0x22e   :  { %v15790_v7 = vpack.c.bf16 %v22058_v52, %v22057_v47  ;;  %v15792_v56 = vpack.c.bf16 %v22060_v57, %v22059_v9  ;;  %15717 = vmatprep.subr.bf16.mxu1 %v15716_v51  ;;  %4964 = vmatmul.mubr.f32.vlgmr.msra.gmra.mrb[30].mxu0 %v22061_v34  ;;  %v2742_v4 = vadd.f32 %v12677_v19, %v19788_v40  ;;  %v22062_v13 = vand.u32 4294901760, %v19598_v33  ;;  %v22081_v47 = vld [vmem:[#allocation11_spill] sm:$0xff]  ;;  %v22086_v9 = vld [vmem:[#allocation14_spill] sm:$0xff] }
 0x22f   :  { %v22063_v53 = vand.u32 4294901760, %v19603_v50  ;;  %5238 = vmatprep.mubr.f32.mxu0 %v22051_v0  ;;  %v22064_v45 = vand.u32 4294901760, %v19609_v16  ;;  %v22065_v1 = vand.u32 4294901760, %v19614_v15  ;;  %v15722_v26 = vpack.c.bf16 %v4709_v2, %v4702_v63  ;;  %v22095_v34 = vld [vmem:[#allocation30_spill] sm:$0xff] }
 0x230   :  { %15791 = vmatpush3.bf16.msra.mxu0 %v15790_v7  ;;  %v2854_v51 = vadd.f32 %v12712_v55, %v2742_v4  ;;  %v22066_v40 = vand.u32 4294901760, %v19619_v23  ;;  %v22067_v33 = vand.u32 4294901760, %v19624_v61  ;;  %v22068_v50 = vand.u32 4294901760, %v19630_v39 }
 0x231   :  { %v15794_v31 = vpack.c.bf16 %v22063_v53, %v22062_v13  ;;  %15793 = vmatprep.subr.bf16.mxu0 %v15792_v56  ;;  %v15796_v54 = vpack.c.bf16 %v22065_v1, %v22064_v45  ;;  %15719 = vmatpush3.bf16.msra.mxu1 %v15718_v12  ;;  %v22069_v38 = vand.u32 4294901760, %v19642_v21  ;;  %v22070_v16 = vand.u32 4294901760, %v19647_v10  ;;  %v22075_v21 = vld [vmem:[#allocation75_spill] sm:$0xff]  ;;  %v22090_v12 = vld [vmem:[#allocation17_spill] sm:$0xff] }
 0x232   :  { %15721 = vmatprep.subr.bf16.mxu1 %v15720_v42  ;;  %v15798_v19 = vpack.c.bf16 %v22067_v33, %v22066_v40  ;;  %v22071_v15 = vand.u32 4294901760, %v19652_v43  ;;  %v22073_v23 = vand.u32 4294901760, %v19663_v32  ;;  %v22074_v61 = vand.u32 4294901760, %v19668_v11  ;;  %v22080_v11 = vld [vmem:[#allocation10_spill] sm:$0xff]  ;;  %v22096_v53 = vld [vmem:[#allocation31_spill] sm:$0xff]  ;;  %v22098_v45 = vld [vmem:[#allocation33_spill] sm:$0xff] }
 0x233   :  { %v15800_v59 = vpack.c.bf16 %v22069_v38, %v22068_v50  ;;  %v22076_v10 = vand.u32 4294901760, %v19676_v60  ;;  %v22077_v43 = vand.u32 4294901760, %v19681_v62  ;;  %v22078_v46 = vand.u32 4294901760, %v19686_v41  ;;  %v22085_v41 = vld [vmem:[#allocation12_spill] sm:$0xff]  ;;  %v22099_v1 = vld [vmem:[#allocation91_spill] sm:$0xff] }
 0x234   :  { %15795 = vmatpush3.bf16.msra.mxu0 %v15794_v31  ;;  %v15802_v55 = vpack.c.bf16 %v22071_v15, %v22070_v16  ;;  %v15804_v39 = vpack.c.bf16 %v22074_v61, %v22073_v23  ;;  %v22079_v32 = vand.u32 4294901760, %v19692_v24  ;;  %v22082_v52 = vand.u32 4294901760, %v19695_v29  ;;  %v22097_v31 = vld [vmem:[#allocation28_spill] sm:$0xff]  ;;  %v22100_v15 = vld [vmem:[#allocation9_spill] sm:$0xff] }
 0x235   :  { %15797 = vmatprep.subr.bf16.mxu0 %v15796_v54  ;;  %15723 = vmatpush3.bf16.msra.mxu1 %v15722_v26  ;;  %v15806_v14 = vpack.c.bf16 %v22077_v43, %v22076_v10  ;;  %v22083_v7 = vand.u32 4294901760, %v19708_v3  ;;  %v22084_v60 = vand.u32 4294901760, %v19724_v25  ;;  %v15814_v3 = vpack.c.bf16 %v4693_v20, %v4686_v17  ;;  %v3615_v43 = vpop.permute.xlu0 %3614 }
 0x236   :  { %15757 = vmatprep.subr.bf16.mxu1 %v19307_v27  ;;  %v15808_v18 = vpack.c.bf16 %v22079_v32, %v22078_v46  ;;  %v22087_v29 = vand.u32 4294901760, %v19745_v22  ;;  %v22088_v44 = vand.u32 4294901760, %v19766_v28  ;;  %v22091_v63 = vand.u32 4294901760, %v19794_v58  ;;  %v22092_v22 = vld [vmem:[#allocation21_spill] sm:$0xff] }
 0x237   :  { %v15810_v5 = vpack.c.bf16 %v22083_v7, %v22082_v52  ;;  %v15812_v62 = vpack.c.bf16 %v22084_v60, %v4798_v48  ;;  %v22089_v48 = vld [vmem:[#allocation15_spill] sm:$0xff]  ;;  %v5355_v28 = vsel %vm5353_vm0, %v141_v30, 0  ;;  %v16442_v42 = vmov 0.0  }
 0x238   :  { %15799 = vmatpush3.bf16.msra.mxu0 %v15798_v19  ;;  %4826 = vmatmul.mubr.f32.vlgmr.msra.gmra.mrb[32].mxu1 %v22072_v6  ;;  %v15816_v25 = vpack.c.bf16 %v22088_v44, %v22087_v29  ;;  %v15818_v2 = vpack.c.bf16 %v4707_v35, %v22091_v63  ;;  %v20003_v35 = vand.u32 4294901760, %v5355_v28 }
 0x239   :  { %15801 = vmatprep.subr.bf16.mxu0 %v15800_v59  ;;  %15759 = vmatpush3.bf16.msra.mxu1 %v19337_v8  ;;  %v3622_v60 = vpop.permute.xlu0 %3621 }
 0x23a   :  { %5068 = vmatprep.mubr.f32.mxu1 %v22075_v21  ;;  %15761 = vmatprep.subr.bf16.mxu1 %v19346_v37  ;;  %v20033_v33 = vsub.f32 %v5355_v28, %v20003_v35 }
 0x23c   :  { %15803 = vmatpush3.bf16.msra.mxu0 %v15802_v55  ;;  %v1874_v55 = vmul.f32 0.00390625, %v22100_v15  ;;  %v5436_v7 = vand.u32 4294901760, %v20033_v33 }
 0x23d   :  { %15805 = vmatprep.subr.bf16.mxu0 %v15804_v39  ;;  %15763 = vmatpush3.bf16.msra.mxu1 %v22080_v11  ;;  %v12780_v24 = vpop.f32.mrb[18].mxu0 }
 0x23e   :  { %15765 = vmatprep.subr.bf16.mxu1 %v22081_v47  ;;  %v12781_v57 = vpop.f32.mrb[19].mxu0  ;;  %v3608_v39 = vmul.f32 %v1874_v55, %v1874_v55 }
 0x23f   :  { %v12782_v56 = vadd.f32 %v12781_v57, %v12780_v24 }
 0x240   :  { %15807 = vmatpush3.bf16.msra.mxu0 %v15806_v14 }
 0x241   :  { %15809 = vmatprep.subr.bf16.mxu0 %v15808_v18  ;;  %15767 = vmatpush3.bf16.msra.mxu1 %v22085_v41 }
 0x242   :  { %15769 = vmatprep.subr.bf16.mxu1 %v22086_v9 }
 0x243   :  { %v12745_v17 = vpop.f32.mrb[20].mxu1 }
 0x244   :  { %15811 = vmatpush3.bf16.msra.mxu0 %v15810_v5  ;;  %v12746_v20 = vpop.f32.mrb[21].mxu1 }
 0x245   :  { %15813 = vmatprep.subr.bf16.mxu0 %v15812_v62  ;;  %15771 = vmatpush3.bf16.msra.mxu1 %v22089_v48  ;;  %v12747_v58 = vadd.f32 %v12746_v20, %v12745_v17 }
 0x246   :  { %15773 = vmatprep.subr.bf16.mxu1 %v22090_v12 }
 0x247   :  { %v3086_v4 = vadd.f32 %v12747_v58, %v2854_v51 }
 0x248   :  { %15815 = vmatpush3.bf16.msra.mxu0 %v15814_v3 }
 0x249   :  { %15817 = vmatprep.subr.bf16.mxu0 %v15816_v25  ;;  %15775 = vmatpush3.bf16.msra.mxu1 %v22092_v22  ;;  %v3224_v13 = vadd.f32 %v12782_v56, %v3086_v4 }
 0x24a   :  { %15777 = vmatprep.subr.bf16.mxu1 %v22093_v36 }
 0x24c   :  { %15819 = vmatpush3.bf16.msra.mxu0 %v15818_v2 }
 0x24d   :  { %13758 = vmatprep.subr.mxu0 %v16442_v42  ;;  %15779 = vmatpush3.bf16.msra.mxu1 %v22094_v49 }
 0x24e   :  { %15781 = vmatprep.subr.bf16.mxu1 %v22095_v34 }
 0x24f   :  { %5240 = vmatmul.mubr.f32.vlgmr.msra.gmra.mrb[32].mxu0 %v22072_v6 }
 0x250   :  { %13759 = vmatpush3.msra.mxu0 %v20003_v35  ;;  %13760 = vmatprep.mubr.msk.f32.mxu0 %vm16443_vm1, %v16442_v42 }
 0x251   :  { %13763 = vmatprep.subr.mxu0 %v16442_v42  ;;  %15783 = vmatpush3.bf16.msra.mxu1 %v22096_v53 }
 0x252   :  { %15785 = vmatprep.subr.bf16.mxu1 %v22097_v31 }
 0x255   :  { %15787 = vmatpush3.bf16.msra.mxu1 %v22098_v45 }
 0x256   :  { %15821 = vmatprep.subr.bf16.mxu1 %v19307_v27 }
 0x258   :  { %5072 = vmatmul.mubr.f32.vlgmr.msra.gmra.mrb[34].mxu1 %v22099_v1 }
 0x259   :  { %15823 = vmatpush3.bf16.msra.mxu1 %v19337_v8  ;;  %5342 = vmatprep.mubr.f32.mxu1 %v22051_v0 }
 0x25a   :  { %15825 = vmatprep.subr.bf16.mxu1 %v19346_v37 }
 0x25d   :  { %15827 = vmatpush3.bf16.msra.mxu1 %v22080_v11  ;;  %v12850_v54 = vpop.f32.mrb[20].mxu0 }
 0x25e   :  { %15829 = vmatprep.subr.bf16.mxu1 %v22081_v47  ;;  %v12851_v51 = vpop.f32.mrb[21].mxu0 }
 0x25f   :  { %v12852_v26 = vadd.f32 %v12851_v51, %v12850_v54 }
 0x261   :  { %15831 = vmatpush3.bf16.msra.mxu1 %v22085_v41 }
 0x262   :  { %15833 = vmatprep.subr.bf16.mxu1 %v22086_v9  ;;  %v5437_v9 = vsub.f32 %v20033_v33, %v5436_v7 }
 0x264   :  { %v12815_v27 = vpop.f32.mrb[22].mxu1  ;;  %v5438_v25 = vand.u32 4294901760, %v5437_v9 }
 0x265   :  { %15835 = vmatpush3.bf16.msra.mxu1 %v22089_v48  ;;  %v12816_v8 = vpop.f32.mrb[23].mxu1 }
 0x266   :  { %15837 = vmatprep.subr.bf16.mxu1 %v22090_v12  ;;  %v12817_v37 = vadd.f32 %v12816_v8, %v12815_v27 }
 0x268   :  { %v3332_v0 = vadd.f32 %v12817_v37, %v3224_v13 }
 0x269   :  { %15839 = vmatpush3.bf16.msra.mxu1 %v22092_v22 }
 0x26a   :  { %15841 = vmatprep.subr.bf16.mxu1 %v22093_v36  ;;  %v3500_v40 = vadd.f32 %v12852_v26, %v3332_v0 }
 0x26d   :  { %15843 = vmatpush3.bf16.msra.mxu1 %v22094_v49 }
 0x26e   :  { %15845 = vmatprep.subr.bf16.mxu1 %v22095_v34 }
 0x271   :  { %15847 = vmatpush3.bf16.msra.mxu1 %v22096_v53 }
 0x272   :  { %15849 = vmatprep.subr.bf16.mxu1 %v22097_v31 }
 0x275   :  { %15851 = vmatpush3.bf16.msra.mxu1 %v22098_v45 }
 0x276   :  { %13798 = vmatprep.subr.mxu1 %v16442_v42 }
 0x278   :  { %5344 = vmatmul.mubr.f32.vlgmr.msra.gmra.mrb[36].mxu1 %v22072_v6 }
 0x279   :  { %13799 = vmatpush3.msra.mxu1 %v20033_v33  ;;  %13800 = vmatprep.mubr.msk.f32.mxu1 %vm16443_vm1, %v16442_v42 }
 0x27a   :  { %13803 = vmatprep.subr.mxu1 %v16442_v42 }
 0x27e   :  { %v12920_v19 = vpop.f32.mrb[22].mxu0 }
 0x27f   :  { %v12921_v50 = vpop.f32.mrb[23].mxu0 }
 0x280   :  { %v12922_v38 = vadd.f32 %v12921_v50, %v12920_v19 }
 0x284   :  { %v12885_v59 = vpop.f32.mrb[24].mxu1 }
 0x285   :  { %v12886_v16 = vpop.f32.mrb[25].mxu1 }
 0x286   :  { %v12887_v23 = vadd.f32 %v12886_v16, %v12885_v59 }
 0x288   :  { %v3604_v61 = vadd.f32 %v12887_v23, %v3500_v40 }
 0x28a   :  { %v3607_v21 = vmul.f32 0.00390625, %v3604_v61 }
 0x28c   :  { %v3609_v10 = vsub.f32 %v3607_v21, %v3608_v39 }
 0x28e   :  { %v3610_v6 = vadd.f32 1e-05, %v3609_v10 }
 0x290   :  { %16436 = vrsqrt.f32 %v3610_v6 }
 0x29a   :  { %v16437_v14 = vpop.eup %16436 }
 0x29b   :  { %v3617_v32 = vmul.f32 %v16437_v14, %v3615_v43 }
 0x29d   :  { %v5351_v47 = vsel %vm5349_vm2, %v3617_v32, 0  ;;  %v3618_v52 = vmul.f32 %v3617_v32, %v1874_v55  ;;  %v6717_v32 = vld [vmem:[%s21086_s1 + $0x438] sm:$0xff] }
 0x29e   :  { %v5423_v5 = vand.u32 4294901760, %v5351_v47 }
 0x29f   :  { %v12990_v46 = vpop.f32.mrb[24].mxu0  ;;  %v3624_v62 = vsub.f32 %v3622_v60, %v3618_v52 }
 0x2a0   :  { %v12991_v18 = vpop.f32.mrb[25].mxu0  ;;  %v5424_v41 = vsub.f32 %v5351_v47, %v5423_v5  ;;  %v11022_v47 = vld [vmem:[%s21086_s1 + $0x5a0] sm:$0xff] }
 0x2a1   :  { %v12992_v11 = vadd.f32 %v12991_v18, %v12990_v46  ;;  %v5805_v24 = vsel %vm5349_vm2, %v3624_v62, 0  ;;  %v6255_v46 = vld [vmem:[%s21086_s1 + $0x428] sm:$0xff]  ;;  %v7661_v18 = vld [vmem:[%s21086_s1 + $0x550] sm:$0xff] }
 0x2a2   :  { %v5425_v57 = vand.u32 4294901760, %v5424_v41  ;;  %v5873_v56 = vand.u32 4294901760, %v5805_v24  ;;  %6258 = vperm.xlu1 %16433, %v6255_v46   ;;  %v6716_v46 = vld [vmem:[%s21086_s1 + $0x430] sm:$0xff] }
 0x2a4   :  { %v5874_v3 = vsub.f32 %v5805_v24, %v5873_v56  ;;  %v5426_v29 = vsub.f32 %v5424_v41, %v5425_v57 }
 0x2a6   :  { %13801 = vmatmul.mubr.f32.vlgmr.msra.gmra.mrb[38].mxu1 %v5874_v3  ;;  %v5427_v12 = vand.u32 4294901760, %v5426_v29  ;;  %v5875_v2 = vand.u32 4294901760, %v5874_v3  ;;  %6720 = vperm.xlu1 %16433, %v6717_v32  }
 0x2a7   :  { %13804 = vmatpush3.msra.mxu1 %v20003_v35  ;;  %13805 = vmatprep.mubr.msk.f32.mxu1 %vm16443_vm1, %v16442_v42 }
 0x2a8   :  { %v12955_v44 = vpop.f32.mrb[26].mxu1  ;;  %13761 = vmatmul.mubr.f32.vlgmr.msra.gmra.mrb[34].mxu0 %v5427_v12  ;;  %13808 = vmatprep.subr.mxu1 %v16442_v42  ;;  %v5876_v13 = vsub.f32 %v5874_v3, %v5875_v2 }
 0x2a9   :  { %v12956_v48 = vpop.f32.mrb[27].mxu1  ;;  %13764 = vmatpush3.msra.mxu0 %v5438_v25  ;;  %13765 = vmatprep.mubr.msk.f32.mxu0 %vm16443_vm1, %v16442_v42 }
 0x2aa   :  { %v12957_v63 = vadd.f32 %v12956_v48, %v12955_v44  ;;  %13806 = vmatmul.mubr.f32.vlgmr.msra.gmra.mrb[40].mxu1 %v5875_v2  ;;  %13768 = vmatprep.subr.mxu0 %v16442_v42  ;;  %v5877_v53 = vand.u32 4294901760, %v5876_v13 }
 0x2ab   :  { %13809 = vmatpush3.msra.mxu1 %v5436_v7  ;;  %13810 = vmatprep.mubr.msk.f32.mxu1 %vm16443_vm1, %v16442_v42 }
 0x2ac   :  { %v3966_v30 = vadd.f32 %v12957_v63, %v12922_v38  ;;  %13813 = vmatprep.subr.mxu1 %v16442_v42  ;;  %8960 = vperm.xlu1 %16433, %v7661_v18  }
 0x2ae   :  { %v4104_v22 = vadd.f32 %v12992_v11, %v3966_v30  ;;  %13811 = vmatmul.mubr.f32.vlgmr.msra.gmra.mrb[42].mxu1 %v5873_v56  ;;  %v10511_v11 = vld [vmem:[%s21086_s1 + $0x580] sm:$0xff] }
 0x2af   :  { %13814 = vmatpush3.msra.mxu1 %v20003_v35  ;;  %13815 = vmatprep.mubr.msk.f32.mxu1 %vm16443_vm1, %v16442_v42 }
 0x2b0   :  { %13766 = vmatmul.mubr.f32.vlgmr.msra.gmra.mrb[34].mxu0 %v5423_v5  ;;  %13848 = vmatprep.subr.mxu1 %v16442_v42 }
 0x2b1   :  { %13769 = vmatpush3.msra.mxu0 %v20033_v33  ;;  %13770 = vmatprep.mubr.msk.f32.mxu0 %vm16443_vm1, %v16442_v42 }
 0x2b2   :  { %13816 = vmatmul.mubr.f32.vlgmr.msra.gmra.mrb[44].mxu1 %v5873_v56  ;;  %13773 = vmatprep.subr.mxu0 %v16442_v42 }
 0x2b3   :  { %13850 = vmatprep.mubr.msk.f32.mxu1 %vm16443_vm1, %v16442_v42  ;;  %10519 = vperm.xlu1 %16433, %v10511_v11   ;;  %v6725_v11 = vsel %vm6723_vm5, %v6716_v46, 0 }
 0x2b7   :  { %11030 = vperm.xlu1 %16433, %v11022_v47  }
 0x2b8   :  { %13771 = vmatmul.mubr.f32.vlgmr.msra.gmra.mrb[34].mxu0 %v5424_v41 }
 0x2b9   :  { %13774 = vmatpush3.msra.mxu0 %v20003_v35  ;;  %13775 = vmatprep.mubr.msk.f32.mxu0 %vm16443_vm1, %v16442_v42 }
 0x2ba   :  { %13778 = vmatprep.subr.mxu0 %v16442_v42 }
 0x2bf   :  { %v13060_v36 = vpop.f32.mrb[26].mxu0 }
 0x2c0   :  { %v13061_v28 = vpop.f32.mrb[27].mxu0  ;;  %13776 = vmatmul.mubr.f32.vlgmr.msra.gmra.mrb[34].mxu0 %v5425_v57  ;;  %v6254_v57 = vld [vmem:[%s21086_s1 + $0x420] sm:$0xff] }
 0x2c1   :  { %v13062_v17 = vadd.f32 %v13061_v28, %v13060_v36  ;;  %13779 = vmatpush3.msra.mxu0 %v5436_v7  ;;  %13780 = vmatprep.mubr.msk.f32.mxu0 %vm16443_vm1, %v16442_v42  ;;  %v6263_v29 = vsel %vm6261_vm3, %v6254_v57, 0 }
 0x2c2   :  { %13783 = vmatprep.subr.mxu0 %v16442_v42  ;;  %v6335_v48 = vand.u32 4294901760, %v6263_v29 }
 0x2c4   :  { %v6336_v30 = vsub.f32 %v6263_v29, %v6335_v48 }
 0x2c6   :  { %v6337_v28 = vand.u32 4294901760, %v6336_v30 }
 0x2c8   :  { %v13025_v20 = vpop.f32.mrb[28].mxu1  ;;  %13781 = vmatmul.mubr.f32.vlgmr.msra.gmra.mrb[34].mxu0 %v5423_v5 }
 0x2c9   :  { %v13026_v58 = vpop.f32.mrb[29].mxu1  ;;  %13784 = vmatpush3.msra.mxu0 %v20003_v35  ;;  %13785 = vmatprep.mubr.msk.f32.mxu0 %vm16443_vm1, %v16442_v42 }
 0x2ca   :  { %v13027_v49 = vadd.f32 %v13026_v58, %v13025_v20  ;;  %13788 = vmatprep.subr.mxu0 %v16442_v42 }
 0x2cc   :  { %v4212_v34 = vadd.f32 %v13027_v49, %v4104_v22  ;;  %v6338_v49 = vsub.f32 %v6336_v30, %v6337_v28 }
 0x2ce   :  { %v4380_v4 = vadd.f32 %v13062_v17, %v4212_v34  ;;  %v6339_v13 = vand.u32 4294901760, %v6338_v49 }
 0x2d0   :  { %13786 = vmatmul.mubr.f32.vlgmr.msra.gmra.mrb[34].mxu0 %v5423_v5 }
 0x2d1   :  { %13789 = vmatpush3.msra.mxu0 %v20003_v35  ;;  %13790 = vmatprep.mubr.msk.f32.mxu0 %vm16443_vm1, %v16442_v42 }
 0x2d2   :  { %13793 = vmatprep.subr.mxu0 %v16442_v42 }
 0x2d4   :  { %13791 = vmatmul.mubr.f32.vlgmr.msra.gmra.mrb[36].mxu0 %v5877_v53 }
 0x2d5   :  { %13794 = vmatpush3.msra.mxu0 %v5438_v25  ;;  %13795 = vmatprep.mubr.msk.f32.mxu0 %vm16443_vm1, %v16442_v42 }
 0x2d6   :  { %13818 = vmatprep.subr.mxu0 %v16442_v42 }
 0x2d8   :  { %13796 = vmatmul.mubr.f32.vlgmr.msra.gmra.mrb[38].mxu0 %v5873_v56 }
 0x2d9   :  { %13820 = vmatprep.mubr.msk.f32.mxu0 %vm16443_vm1, %v16442_v42 }
 0x2e1   :  { %v13130_v31 = vpop.f32.mrb[28].mxu0 }
 0x2e2   :  { %v13131_v45 = vpop.f32.mrb[29].mxu0 }
 0x2e3   :  { %v13132_v35 = vadd.f32 %v13131_v45, %v13130_v31 }
 0x2ea   :  { %v13095_v1 = vpop.f32.mrb[30].mxu1 }
 0x2eb   :  { %v13096_v54 = vpop.f32.mrb[31].mxu1 }
 0x2ec   :  { %v13097_v51 = vadd.f32 %v13096_v54, %v13095_v1  ;;  %v20129_v54 = vld [vmem:[%s21086_s1 + $0x4c0] sm:$0xff] }
 0x2ee   :  { %v4484_v26 = vadd.f32 %v13097_v51, %v4380_v4  ;;  %v20134_v51 = vld [vmem:[%s21086_s1 + $0x4c8] sm:$0xff] }
 0x2f0   :  { %v4596_v27 = vadd.f32 %v13132_v35, %v4484_v26  ;;  %v16444_v26 = vmov 0.0|0.0  }
 0x301   :  { %v13200_v8 = vpop.f32.mrb[30].mxu0 }
 0x302   :  { %v13201_v37 = vpop.f32.mrb[31].mxu0 }
 0x303   :  { %v13202_v0 = vadd.f32 %v13201_v37, %v13200_v8  ;;  %v7666_v8 = vand.u32 4294901760, %v20134_v51  ;;  %v20142_v37 = vld [vmem:[%s21086_s1 + $0x4d0] sm:$0xff] }
 0x30b   :  { %v13165_v40 = vpop.f32.mrb[32].mxu1 }
 0x30c   :  { %v13166_v33 = vpop.f32.mrb[33].mxu1 }
 0x30d   :  { %v13167_v19 = vadd.f32 %v13166_v33, %v13165_v40  ;;  %v7669_v40 = vand.u32 4294901760, %v20142_v37 }
 0x30f   :  { %v4828_v50 = vadd.f32 %v13167_v19, %v4596_v27  ;;  %v7663_v27 = vand.u32 4294901760, %v20129_v54 }
 0x311   :  { %v4966_v38 = vadd.f32 %v13202_v0, %v4828_v50  ;;  %v20147_v0 = vld [vmem:[%s21086_s1 + $0x4d8] sm:$0xff]  ;;  %v20155_v19 = vpack.c.bf16 %v7666_v8, %v7663_v27 }
 0x312   :  { %v7672_v33 = vand.u32 4294901760, %v20147_v0 }
 0x314   :  { %v20162_v50 = vpack.c.bf16 %v7672_v33, %v7669_v40 }
 0x322   :  { %v13270_v59 = vpop.f32.mrb[32].mxu0 }
 0x323   :  { %v13271_v16 = vpop.f32.mrb[33].mxu0 }
 0x324   :  { %v13272_v15 = vadd.f32 %v13271_v16, %v13270_v59  ;;  %v20172_v59 = vld [vmem:[%s21086_s1 + $0x4e8] sm:$0xff] }
 0x32b   :  { %v13235_v55 = vpop.f32.mrb[34].mxu1 }
 0x32c   :  { %v13236_v23 = vpop.f32.mrb[35].mxu1 }
 0x32d   :  { %v13237_v61 = vadd.f32 %v13236_v23, %v13235_v55  ;;  %v20187_v23 = vld [vmem:[%s21086_s1 + $0x4f0] sm:$0xff] }
 0x32f   :  { %v5074_v39 = vadd.f32 %v13237_v61, %v4966_v38  ;;  %v20167_v38 = vld [vmem:[%s21086_s1 + $0x4e0] sm:$0xff]  ;;  %v20192_v61 = vld [vmem:[%s21086_s1 + $0x4f8] sm:$0xff] }
 0x330   :  { %v7675_v16 = vand.u32 4294901760, %v20167_v38 }
 0x331   :  { %v5242_v21 = vadd.f32 %v13272_v15, %v5074_v39  ;;  %v7678_v15 = vand.u32 4294901760, %v20172_v59  ;;  %v7681_v39 = vand.u32 4294901760, %v20187_v23 }
 0x333   :  { %v20182_v55 = vpack.c.bf16 %v7678_v15, %v7675_v16 }
 0x34b   :  { %v13305_v10 = vpop.f32.mrb[36].mxu1 }
 0x34c   :  { %v13306_v6 = vpop.f32.mrb[37].mxu1 }
 0x34d   :  { %v13307_v43 = vadd.f32 %v13306_v6, %v13305_v10  ;;  %v20207_v6 = vld [vmem:[%s21086_s1 + $0x500] sm:$0xff] }
 0x34e   :  { %v7687_v32 = vand.u32 4294901760, %v20207_v6 }
 0x34f   :  { %v20086_v14 = vadd.f32 %v13307_v43, %v5242_v21  ;;  %v7684_v21 = vand.u32 4294901760, %v20192_v61  ;;  %v20212_v43 = vld [vmem:[%s21086_s1 + $0x508] sm:$0xff] }
 0x350   :  { %v7690_v18 = vand.u32 4294901760, %v20212_v43 }
 0x351   :  { %v20202_v10 = vpack.c.bf16 %v7684_v21, %v7681_v39 }
 0x352   :  { %v20226_v47 = vpack.c.bf16 %v7690_v18, %v7687_v32 }
 0x379   :  { %v6029_v52 = vpop.f32.mrb[38].mxu1 }
 0x37a   :  { %v13802_v7 = vpop.f32.mrb[39].mxu1 }
 0x37d   :  { %v6103_v5 = vpop.f32.mrb[40].mxu1 }
 0x37e   :  { %v13807_v60 = vpop.f32.mrb[41].mxu1 }
 0x37f   :  { %v6259_v60 = vpop.permute.xlu1 %6258 }
 0x381   :  { %v6177_v62 = vpop.f32.mrb[42].mxu1 }
 0x382   :  { %v13812_v41 = vpop.f32.mrb[43].mxu1 }
 0x385   :  { %v6249_v24 = vpop.f32.mrb[44].mxu1 }
 0x386   :  { %v13817_v9 = vpop.f32.mrb[45].mxu1 }
 0x3a3   :  { %v5799_v56 = vpop.f32.mrb[34].mxu0 }
 0x3a4   :  { %v13787_v3 = vpop.f32.mrb[35].mxu0  ;;  %v5803_v20 = vmul.f32 %v5799_v56, %v20086_v14 }
 0x3a7   :  { %v5879_v44 = vpop.f32.mrb[36].mxu0 }
 0x3a8   :  { %v13792_v25 = vpop.f32.mrb[37].mxu0 }
 0x3ab   :  { %v5955_v12 = vpop.f32.mrb[38].mxu0 }
 0x3ac   :  { %v5956_v63 = vadd.f32 %v5955_v12, %v5879_v44  ;;  %v13797_v2 = vpop.f32.mrb[39].mxu0  ;;  %v7173_v12 = vld [vmem:[%s21086_s1 + $0x418] sm:$0xff] }
 0x3ad   :  { %v7178_v2 = vsel %vm6265_vm4, %v20086_v14, 0 }
 0x3ae   :  { %v6030_v22 = vadd.f32 %v6029_v52, %v5956_v63  ;;  %v6793_v52 = vand.u32 4294901760, %v6725_v11  ;;  %v7175_v63 = vsel %vm6261_vm3, %v7173_v12, 0 }
 0x3b0   :  { %v6104_v36 = vadd.f32 %v6103_v5, %v6030_v22  ;;  %v6794_v7 = vsub.f32 %v6725_v11, %v6793_v52  ;;  %v7181_v22 = vand.u32 4294901760, %v7178_v2 }
 0x3b2   :  { %v6178_v17 = vadd.f32 %v6177_v62, %v6104_v36  ;;  %v6795_v5 = vand.u32 4294901760, %v6794_v7 }
 0x3b4   :  { %v6250_v58 = vadd.f32 %v6249_v24, %v6178_v17  ;;  %v6796_v41 = vsub.f32 %v6794_v7, %v6795_v5 }
 0x3b6   :  { %v6253_v34 = vadd.f32 %v6250_v58, %v5803_v20  ;;  %v6797_v56 = vand.u32 4294901760, %v6796_v41 }
 0x3b8   :  { %v6267_v4 = vsel %vm6265_vm4, %v6253_v34, 0 }
 0x3b9   :  { %v6270_v53 = vand.u32 4294901760, %v6267_v4 }
 0x3bb   :  { %13819 = vmatpush3.msra.mxu0 %v6270_v53  ;;  %v6347_v31 = vsub.f32 %v6267_v4, %v6270_v53  ;;  %v7637_v4 = vld [vmem:[%s21086_s1 + $0x510] sm:$0xff] }
 0x3bc   :  { %13821 = vmatmul.mubr.f32.vlgmr.msra.gmra.mrb[40].mxu0 %v6339_v13  ;;  %13823 = vmatprep.subr.mxu0 %v16442_v42  ;;  %v7638_v13 = vld [vmem:[%s21086_s1 + $0x518] sm:$0xff] }
 0x3bd   :  { %v6348_v45 = vand.u32 4294901760, %v6347_v31  ;;  %13825 = vmatprep.mubr.msk.f32.mxu0 %vm16443_vm1, %v16442_v42 }
 0x3bf   :  { %v6349_v35 = vsub.f32 %v6347_v31, %v6348_v45 }
 0x3c1   :  { %v6350_v1 = vand.u32 4294901760, %v6349_v35  ;;  %v7639_v35 = vld [vmem:[%s21086_s1 + $0x520] sm:$0xff] }
 0x3c2   :  { %v7699_v46 = vand.u32 4294901760, %v7639_v35 }
 0x3c3   :  { %13824 = vmatpush3.msra.mxu0 %v6350_v1  ;;  %v7640_v1 = vld [vmem:[%s21086_s1 + $0x528] sm:$0xff] }
 0x3c4   :  { %13826 = vmatmul.mubr.f32.vlgmr.msra.gmra.mrb[40].mxu0 %v6335_v48  ;;  %13828 = vmatprep.subr.mxu0 %v16442_v42  ;;  %v7702_v11 = vand.u32 4294901760, %v7640_v1 }
 0x3c5   :  { %13829 = vmatpush3.msra.mxu0 %v6347_v31  ;;  %13830 = vmatprep.mubr.msk.f32.mxu0 %vm16443_vm1, %v16442_v42  ;;  %v7696_v31 = vand.u32 4294901760, %v7638_v13 }
 0x3c6   :  { %13833 = vmatprep.subr.mxu0 %v16442_v42 }
 0x3cc   :  { %13831 = vmatmul.mubr.f32.vlgmr.msra.gmra.mrb[40].mxu0 %v6336_v30  ;;  %v7246_v30 = vand.u32 4294901760, %v7175_v63 }
 0x3cd   :  { %13834 = vmatpush3.msra.mxu0 %v6270_v53  ;;  %13835 = vmatprep.mubr.msk.f32.mxu0 %vm16443_vm1, %v16442_v42 }
 0x3ce   :  { %13838 = vmatprep.subr.mxu0 %v16442_v42  ;;  %v7247_v36 = vsub.f32 %v7175_v63, %v7246_v30 }
 0x3d0   :  { %v7248_v17 = vand.u32 4294901760, %v7247_v36 }
 0x3d2   :  { %v7249_v58 = vsub.f32 %v7247_v36, %v7248_v17 }
 0x3d4   :  { %13836 = vmatmul.mubr.f32.vlgmr.msra.gmra.mrb[40].mxu0 %v6337_v28  ;;  %v7258_v28 = vsub.f32 %v7178_v2, %v7181_v22  ;;  %v7250_v49 = vand.u32 4294901760, %v7249_v58 }
 0x3d5   :  { %13839 = vmatpush3.msra.mxu0 %v6348_v45  ;;  %13840 = vmatprep.mubr.msk.f32.mxu0 %vm16443_vm1, %v16442_v42 }
 0x3d6   :  { %13843 = vmatprep.subr.mxu0 %v16442_v42  ;;  %v7259_v20 = vand.u32 4294901760, %v7258_v28 }
 0x3d8   :  { %v7260_v14 = vsub.f32 %v7258_v28, %v7259_v20 }
 0x3da   :  { %v7261_v34 = vand.u32 4294901760, %v7260_v14 }
 0x3dc   :  { %13841 = vmatmul.mubr.f32.vlgmr.msra.gmra.mrb[40].mxu0 %v6335_v48 }
 0x3dd   :  { %13844 = vmatpush3.msra.mxu0 %v6270_v53  ;;  %13845 = vmatprep.mubr.msk.f32.mxu0 %vm16443_vm1, %v16442_v42  ;;  %v7693_v53 = vand.u32 4294901760, %v7637_v4 }
 0x3de   :  { %15852 = vmatprep.subr.bf16.mxu0 %v16444_v26 }
 0x3df   :  { %v20289_v45 = vpack.c.bf16 %v7696_v31, %v7693_v53 }
 0x3e4   :  { %13846 = vmatmul.mubr.f32.vlgmr.msra.gmra.mrb[40].mxu0 %v6335_v48 }
 0x3e5   :  { %13940 = vmatprep.mubr.msk.f32.mxu0 %vm16443_vm1, %v16442_v42  ;;  %15854 = vmatpush3.bf16.msra.mxu0 %v20155_v19 }
 0x3e6   :  { %15855 = vmatprep.subr.bf16.mxu0 %v16444_v26 }
 0x3e9   :  { %15857 = vmatpush3.bf16.msra.mxu0 %v20162_v50 }
 0x3ea   :  { %15858 = vmatprep.subr.bf16.mxu0 %v16444_v26 }
 0x3ed   :  { %15860 = vmatpush3.bf16.msra.mxu0 %v20182_v55 }
 0x3ee   :  { %15861 = vmatprep.subr.bf16.mxu0 %v16444_v26 }
 0x3f1   :  { %15863 = vmatpush3.bf16.msra.mxu0 %v20202_v10 }
 0x3f2   :  { %15864 = vmatprep.subr.bf16.mxu0 %v16444_v26 }
 0x3f5   :  { %15866 = vmatpush3.bf16.msra.mxu0 %v20226_v47 }
 0x3f6   :  { %15867 = vmatprep.subr.bf16.mxu0 %v16444_v26 }
 0x3f9   :  { %15869 = vmatpush3.bf16.msra.mxu0 %v20289_v45 }
 0x3fa   :  { %15870 = vmatprep.subr.bf16.mxu0 %v16444_v26 }
 0x4b7   :  { %v6711_v62 = vpop.f32.mrb[40].mxu0 }
 0x4b8   :  { %v16308_v24 = vadd.f32 %v6711_v62, %v6259_v60  ;;  %v13847_v9 = vpop.f32.mrb[41].mxu0 }
 0x4b9   :  { %v20321_v9 = vsub.f32 %v7638_v13, %v7696_v31 }
 0x4ba   :  { %v6715_v57 = vmax.f32 %v16308_v24, 0.0  ;;  %v20319_v24 = vsub.f32 %v7637_v4, %v7693_v53 }
 0x4bc   :  { %v6728_v3 = vand.u32 4294901760, %v6715_v57 }
 0x4be   :  { %v6805_v29 = vsub.f32 %v6715_v57, %v6728_v3  ;;  %13849 = vmatpush3.msra.mxu1 %v6728_v3  ;;  %v7826_v57 = vand.u32 4294901760, %v20319_v24 }
 0x4bf   :  { %13851 = vmatmul.mubr.f32.vlgmr.msra.gmra.mrb[46].mxu1 %v6797_v56  ;;  %13853 = vmatprep.subr.mxu1 %v16442_v42  ;;  %v7833_v56 = vand.u32 4294901760, %v20321_v9 }
 0x4c0   :  { %v6806_v44 = vand.u32 4294901760, %v6805_v29  ;;  %13855 = vmatprep.mubr.msk.f32.mxu1 %vm16443_vm1, %v16442_v42 }
 0x4c2   :  { %v6807_v25 = vsub.f32 %v6805_v29, %v6806_v44 }
 0x4c4   :  { %v6808_v48 = vand.u32 4294901760, %v6807_v25  ;;  %v20333_v25 = vsub.f32 %v7640_v1, %v7702_v11  ;;  %v20363_v1 = vpack.c.bf16 %v20321_v9, %v20319_v24 }
 0x4c6   :  { %13854 = vmatpush3.msra.mxu1 %v6808_v48  ;;  %v21450_v2 = vand.u32 4294901760, %v20333_v25 }
 0x4c7   :  { %13856 = vmatmul.mubr.f32.vlgmr.msra.gmra.mrb[46].mxu1 %v6793_v52  ;;  %13858 = vmatprep.subr.mxu1 %v16442_v42 }
 0x4c8   :  { %13859 = vmatpush3.msra.mxu1 %v6805_v29  ;;  %13860 = vmatprep.mubr.msk.f32.mxu1 %vm16443_vm1, %v16442_v42  ;;  %v7834_v29 = vsub.f32 %v20321_v9, %v7833_v56 }
 0x4c9   :  { %13863 = vmatprep.subr.mxu1 %v16442_v42 }
 0x4ca   :  { %v7835_v12 = vand.u32 4294901760, %v7834_v29  ;;  %v20393_v29 = vsub.f32 %v20147_v0, %v7672_v33  ;;  %v20406_v0 = vsub.f32 %v20167_v38, %v7675_v16  ;;  %v20411_v33 = vsub.f32 %v20172_v59, %v7678_v15 }
 0x4cc   :  { %v7784_v59 = vand.u32 4294901760, %v20406_v0  ;;  %v7791_v15 = vand.u32 4294901760, %v20411_v33 }
 0x4cf   :  { %13861 = vmatmul.mubr.f32.vlgmr.msra.gmra.mrb[46].mxu1 %v6794_v7  ;;  %v7641_v7 = vld [vmem:[%s21086_s1 + $0x530] sm:$0xff] }
 0x4d0   :  { %13864 = vmatpush3.msra.mxu1 %v6728_v3  ;;  %13865 = vmatprep.mubr.msk.f32.mxu1 %vm16443_vm1, %v16442_v42  ;;  %v7705_v60 = vand.u32 4294901760, %v7641_v7 }
 0x4d1   :  { %13868 = vmatprep.subr.mxu1 %v16442_v42 }
 0x4d7   :  { %13866 = vmatmul.mubr.f32.vlgmr.msra.gmra.mrb[46].mxu1 %v6795_v5  ;;  %v7642_v5 = vld [vmem:[%s21086_s1 + $0x538] sm:$0xff] }
 0x4d8   :  { %13869 = vmatpush3.msra.mxu1 %v6806_v44  ;;  %13870 = vmatprep.mubr.msk.f32.mxu1 %vm16443_vm1, %v16442_v42  ;;  %v7708_v62 = vand.u32 4294901760, %v7642_v5  ;;  %v20331_v44 = vsub.f32 %v7639_v35, %v7699_v46 }
 0x4d9   :  { %13873 = vmatprep.subr.mxu1 %v16442_v42 }
 0x4da   :  { %v20313_v41 = vpack.c.bf16 %v7708_v62, %v7705_v60  ;;  %v21451_v63 = vand.u32 4294901760, %v20331_v44 }
 0x4df   :  { %13871 = vmatmul.mubr.f32.vlgmr.msra.gmra.mrb[46].mxu1 %v6793_v52 }
 0x4e0   :  { %13874 = vmatpush3.msra.mxu1 %v6728_v3  ;;  %13875 = vmatprep.mubr.msk.f32.mxu1 %vm16443_vm1, %v16442_v42  ;;  %v7827_v3 = vsub.f32 %v20319_v24, %v7826_v57 }
 0x4e1   :  { %13878 = vmatprep.subr.mxu1 %v16442_v42 }
 0x4e2   :  { %v7828_v48 = vand.u32 4294901760, %v7827_v3  ;;  %v20388_v3 = vsub.f32 %v20142_v37, %v7669_v40  ;;  %v7777_v37 = vand.u32 4294901760, %v20393_v29 }
 0x4e7   :  { %13876 = vmatmul.mubr.f32.vlgmr.msra.gmra.mrb[46].mxu1 %v6793_v52  ;;  %v20301_v52 = vpack.c.bf16 %v7702_v11, %v7699_v46  ;;  %v20367_v46 = vpack.c.bf16 %v20333_v25, %v20331_v44 }
 0x4e8   :  { %13879 = vmatpush3.msra.mxu1 %v7181_v22  ;;  %13880 = vmatprep.mubr.msk.f32.mxu1 %vm16443_vm1, %v16442_v42 }
 0x4e9   :  { %13883 = vmatprep.subr.mxu1 %v16442_v42  ;;  %15872 = vmatpush3.bf16.msra.mxu0 %v20301_v52 }
 0x4ea   :  { %15873 = vmatprep.subr.bf16.mxu0 %v16444_v26 }
 0x4ed   :  { %15875 = vmatpush3.bf16.msra.mxu0 %v20313_v41 }
 0x4ee   :  { %15876 = vmatprep.subr.bf16.mxu0 %v16444_v26 }
 0x4ef   :  { %13881 = vmatmul.mubr.f32.vlgmr.msra.gmra.mrb[46].mxu1 %v7250_v49 }
 0x4f0   :  { %13884 = vmatpush3.msra.mxu1 %v7261_v34  ;;  %13885 = vmatprep.mubr.msk.f32.mxu1 %vm16443_vm1, %v16442_v42 }
 0x4f1   :  { %13888 = vmatprep.subr.mxu1 %v16442_v42 }
 0x4f7   :  { %13886 = vmatmul.mubr.f32.vlgmr.msra.gmra.mrb[46].mxu1 %v7246_v30 }
 0x4f8   :  { %13889 = vmatpush3.msra.mxu1 %v7258_v28  ;;  %13890 = vmatprep.mubr.msk.f32.mxu1 %vm16443_vm1, %v16442_v42  ;;  %v20345_v28 = vsub.f32 %v7641_v7, %v7705_v60  ;;  %v20376_v7 = vsub.f32 %v20129_v54, %v7663_v27  ;;  %v6721_v54 = vpop.permute.xlu1 %6720 }
 0x4f9   :  { %13893 = vmatprep.subr.mxu1 %v16442_v42 }
 0x4fa   :  { %v21449_v14 = vand.u32 4294901760, %v20345_v28  ;;  %v7756_v60 = vand.u32 4294901760, %v20376_v7  ;;  %v22103_v24 = vand.u32 4294901760, %v20345_v28 }
 0x4fc   :  { %v7855_v4 = vsub.f32 %v20345_v28, %v21449_v14 }
 0x4fe   :  { %v7856_v53 = vand.u32 4294901760, %v7855_v4 }
 0x4ff   :  { %13891 = vmatmul.mubr.f32.vlgmr.msra.gmra.mrb[46].mxu1 %v7247_v36  ;;  %v7848_v36 = vsub.f32 %v20333_v25, %v21450_v2 }
 0x500   :  { %13894 = vmatpush3.msra.mxu1 %v7181_v22  ;;  %13895 = vmatprep.mubr.msk.f32.mxu1 %vm16443_vm1, %v16442_v42 }
 0x501   :  { %13898 = vmatprep.subr.mxu1 %v16442_v42  ;;  %v7849_v58 = vand.u32 4294901760, %v7848_v36 }
 0x507   :  { %13896 = vmatmul.mubr.f32.vlgmr.msra.gmra.mrb[46].mxu1 %v7248_v17  ;;  %v20347_v17 = vsub.f32 %v7642_v5, %v7708_v62  ;;  %v20381_v5 = vsub.f32 %v20134_v51, %v7666_v8  ;;  %v7757_v51 = vsub.f32 %v20376_v7, %v7756_v60 }
 0x508   :  { %13899 = vmatpush3.msra.mxu1 %v7259_v20  ;;  %13900 = vmatprep.mubr.msk.f32.mxu1 %vm16443_vm1, %v16442_v42 }
 0x509   :  { %13903 = vmatprep.subr.mxu1 %v16442_v42  ;;  %v21448_v49 = vand.u32 4294901760, %v20347_v17  ;;  %v20371_v11 = vpack.c.bf16 %v20347_v17, %v20345_v28  ;;  %v7763_v62 = vand.u32 4294901760, %v20381_v5  ;;  %v22104_v9 = vand.u32 4294901760, %v20347_v17 }
 0x50b   :  { %v7862_v13 = vsub.f32 %v20347_v17, %v21448_v49  ;;  %v7764_v8 = vsub.f32 %v20381_v5, %v7763_v62 }
 0x50d   :  { %v7863_v31 = vand.u32 4294901760, %v7862_v13  ;;  %v7778_v13 = vsub.f32 %v20393_v29, %v7777_v37 }
 0x50f   :  { %13901 = vmatmul.mubr.f32.vlgmr.msra.gmra.mrb[46].mxu1 %v7246_v30  ;;  %v20359_v35 = vpack.c.bf16 %v7863_v31, %v7856_v53  ;;  %v20431_v53 = vsub.f32 %v20187_v23, %v7681_v39  ;;  %v20436_v31 = vsub.f32 %v20192_v61, %v7684_v21  ;;  %v7785_v39 = vsub.f32 %v20406_v0, %v7784_v59 }
 0x510   :  { %13904 = vmatpush3.msra.mxu1 %v7181_v22  ;;  %13905 = vmatprep.mubr.msk.f32.mxu1 %vm16443_vm1, %v16442_v42  ;;  %v7841_v22 = vsub.f32 %v20331_v44, %v21451_v63  ;;  %v7792_v61 = vsub.f32 %v20411_v33, %v7791_v15 }
 0x511   :  { %15996 = vmatprep.subr.bf16.mxu1 %v16444_v26  ;;  %v7798_v21 = vand.u32 4294901760, %v20431_v53  ;;  %v7786_v2 = vand.u32 4294901760, %v7785_v39 }
 0x512   :  { %v7842_v20 = vand.u32 4294901760, %v7841_v22  ;;  %v7793_v63 = vand.u32 4294901760, %v7792_v61 }
 0x514   :  { %v20351_v34 = vpack.c.bf16 %v7849_v58, %v7842_v20  ;;  %v7758_v20 = vand.u32 4294901760, %v7757_v51  ;;  %v7765_v58 = vand.u32 4294901760, %v7764_v8 }
 0x516   :  { %v15877_v51 = vpack.c.bf16 %v7765_v58, %v7758_v20  ;;  %v20458_v20 = vsub.f32 %v20207_v6, %v7687_v32  ;;  %v20463_v58 = vsub.f32 %v20212_v43, %v7690_v18  ;;  %v7799_v6 = vsub.f32 %v20431_v53, %v7798_v21 }
 0x517   :  { %13906 = vmatmul.mubr.f32.vlgmr.msra.gmra.mrb[46].mxu1 %v7246_v30  ;;  %v20337_v30 = vpack.c.bf16 %v7835_v12, %v7828_v48  ;;  %v7770_v48 = vand.u32 4294901760, %v20388_v3 }
 0x518   :  { %15998 = vmatpush3.bf16.msra.mxu1 %v20155_v19  ;;  %14150 = vmatprep.mubr.msk.f32.mxu1 %vm16443_vm1, %v16442_v42  ;;  %v7812_v32 = vand.u32 4294901760, %v20458_v20  ;;  %v7819_v18 = vand.u32 4294901760, %v20463_v58 }
 0x519   :  { %15999 = vmatprep.subr.bf16.mxu1 %v16444_v26  ;;  %v7771_v4 = vsub.f32 %v20388_v3, %v7770_v48 }
 0x51a   :  { %v7813_v39 = vsub.f32 %v20458_v20, %v7812_v32 }
 0x51b   :  { %v7772_v8 = vand.u32 4294901760, %v7771_v4 }
 0x51c   :  { %16001 = vmatpush3.bf16.msra.mxu1 %v20162_v50  ;;  %v7814_v61 = vand.u32 4294901760, %v7813_v39  ;;  %v20761_v39 = vld [vmem:[%s21086_s1 + $0x4a8] sm:$0xff] }
 0x51d   :  { %16002 = vmatprep.subr.bf16.mxu1 %v16444_v26 }
 0x520   :  { %16004 = vmatpush3.bf16.msra.mxu1 %v20182_v55 }
 0x521   :  { %16005 = vmatprep.subr.bf16.mxu1 %v16444_v26 }
 0x524   :  { %16007 = vmatpush3.bf16.msra.mxu1 %v20202_v10 }
 0x525   :  { %16008 = vmatprep.subr.bf16.mxu1 %v16444_v26 }
 0x528   :  { %16010 = vmatpush3.bf16.msra.mxu1 %v20226_v47 }
 0x529   :  { %16011 = vmatprep.subr.bf16.mxu1 %v16444_v26 }
 0x52c   :  { %16013 = vmatpush3.bf16.msra.mxu1 %v20289_v45 }
 0x52d   :  { %16014 = vmatprep.subr.bf16.mxu1 %v16444_v26 }
 0x530   :  { %16016 = vmatpush3.bf16.msra.mxu1 %v20301_v52 }
 0x531   :  { %16017 = vmatprep.subr.bf16.mxu1 %v16444_v26 }
 0x534   :  { %16019 = vmatpush3.bf16.msra.mxu1 %v20313_v41 }
 0x535   :  { %16020 = vmatprep.subr.bf16.mxu1 %v16444_v26 }
 0x5ea   :  { %v7622_v27 = vpop.f32.mrb[46].mxu1 }
 0x5eb   :  { %v16309_v40 = vadd.f32 %v7622_v27, %v6721_v54  ;;  %v13907_v12 = vpop.f32.mrb[47].mxu1 }
 0x5ed   :  { %v20413_v22 = vand.u32 4294901760, %v16309_v40  ;;  %v8304_v36 = vmul.f32 %v16309_v40, %v16309_v40 }
 0x5ef   :  { %v20422_v38 = vsub.f32 %v16309_v40, %v20413_v22  ;;  %v20424_v16 = vand.u32 4294901760, %v8304_v36  ;;  %v7779_v40 = vand.u32 4294901760, %v7778_v13 }
 0x5f1   :  { %v20439_v54 = vsub.f32 %v8304_v36, %v20424_v16  ;;  %v20442_v27 = vand.u32 4294901760, %v20422_v38  ;;  %v7805_v36 = vand.u32 4294901760, %v20436_v31  ;;  %v15880_v14 = vpack.c.bf16 %v7779_v40, %v7772_v8 }
 0x5f2   :  { %v15883_v8 = vpack.c.bf16 %v7793_v63, %v7786_v2  ;;  %v7800_v40 = vand.u32 4294901760, %v7799_v6  ;;  %v7654_v6 = vld [vmem:[%s21086_s1 + $0x498] sm:$0xff] }
 0x5f3   :  { %v7746_v12 = vsub.f32 %v20422_v38, %v20442_v27  ;;  %v8388_v23 = vand.u32 4294901760, %v20439_v54  ;;  %v7806_v43 = vsub.f32 %v20436_v31, %v7805_v36 }
 0x5f5   :  { %v20465_v4 = vand.u32 4294901760, %v7746_v12  ;;  %v8389_v13 = vsub.f32 %v20439_v54, %v8388_v23  ;;  %v7807_v12 = vand.u32 4294901760, %v7806_v43 }
 0x5f7   :  { %13941 = vmatmul.mubr.f32.vlgmr.msra.gmra.mrb[42].mxu0 %v20465_v4  ;;  %v8390_v49 = vand.u32 4294901760, %v8389_v13  ;;  %v15913_v13 = vpack.c.bf16 %v20463_v58, %v20458_v20 }
 0x5f8   :  { %15878 = vmatpush3.bf16.msra.mxu0 %v15877_v51  ;;  %13975 = vmatprep.mubr.msk.f32.mxu0 %vm16443_vm1, %v16442_v42 }
 0x5f9   :  { %14151 = vmatmul.mubr.f32.vlgmr.msra.gmra.mrb[48].mxu1 %v8390_v49  ;;  %15879 = vmatprep.subr.bf16.mxu0 %v16444_v26  ;;  %v7820_v49 = vsub.f32 %v20463_v58, %v7819_v18  ;;  %v7653_v58 = vld [vmem:[%s21086_s1 + $0x490] sm:$0xff] }
 0x5fa   :  { %16022 = vmatpush3.bf16.msra.mxu1 %v15877_v51  ;;  %14185 = vmatprep.mubr.msk.f32.mxu1 %vm16443_vm1, %v16442_v42  ;;  %v15886_v51 = vpack.c.bf16 %v7807_v12, %v7800_v40  ;;  %v8998_v40 = vand.u32 4294901760, %v7654_v6  ;;  %v7655_v12 = vld [vmem:[%s21086_s1 + $0x4a0] sm:$0xff] }
 0x5fb   :  { %16023 = vmatprep.subr.bf16.mxu1 %v16444_v26  ;;  %v7821_v63 = vand.u32 4294901760, %v7820_v49 }
 0x5fc   :  { %15881 = vmatpush3.bf16.msra.mxu0 %v15880_v14 }
 0x5fd   :  { %15882 = vmatprep.subr.bf16.mxu0 %v16444_v26  ;;  %v15889_v2 = vpack.c.bf16 %v7821_v63, %v7814_v61 }
 0x5fe   :  { %16025 = vmatpush3.bf16.msra.mxu1 %v15880_v14  ;;  %v15901_v14 = vpack.c.bf16 %v20381_v5, %v20376_v7  ;;  %v15958_v7 = vpack.c.bf16 %v7805_v36, %v7798_v21  ;;  %v15961_v5 = vpack.c.bf16 %v7819_v18, %v7812_v32 }
 0x5ff   :  { %16026 = vmatprep.subr.bf16.mxu1 %v16444_v26 }
 0x600   :  { %15884 = vmatpush3.bf16.msra.mxu0 %v15883_v8 }
 0x601   :  { %15885 = vmatprep.subr.bf16.mxu0 %v16444_v26 }
 0x602   :  { %16028 = vmatpush3.bf16.msra.mxu1 %v15883_v8  ;;  %v8995_v8 = vand.u32 4294901760, %v7653_v58 }
 0x603   :  { %16029 = vmatprep.subr.bf16.mxu1 %v16444_v26 }
 0x604   :  { %15887 = vmatpush3.bf16.msra.mxu0 %v15886_v51 }
 0x605   :  { %15888 = vmatprep.subr.bf16.mxu0 %v16444_v26 }
 0x606   :  { %16031 = vmatpush3.bf16.msra.mxu1 %v15886_v51 }
 0x607   :  { %16032 = vmatprep.subr.bf16.mxu1 %v16444_v26 }
 0x608   :  { %15890 = vmatpush3.bf16.msra.mxu0 %v15889_v2 }
 0x609   :  { %15891 = vmatprep.subr.bf16.mxu0 %v16444_v26 }
 0x60a   :  { %16034 = vmatpush3.bf16.msra.mxu1 %v15889_v2  ;;  %v20770_v2 = vpack.c.bf16 %v8998_v40, %v8995_v8 }
 0x60b   :  { %16035 = vmatprep.subr.bf16.mxu1 %v16444_v26 }
 0x60c   :  { %15893 = vmatpush3.bf16.msra.mxu0 %v20337_v30 }
 0x60d   :  { %15894 = vmatprep.subr.bf16.mxu0 %v16444_v26 }
 0x60e   :  { %16037 = vmatpush3.bf16.msra.mxu1 %v20337_v30  ;;  %v15904_v30 = vpack.c.bf16 %v20393_v29, %v20388_v3  ;;  %v22102_v3 = vand.u32 4294901760, %v20333_v25 }
 0x60f   :  { %16038 = vmatprep.subr.bf16.mxu1 %v16444_v26 }
 0x610   :  { %15896 = vmatpush3.bf16.msra.mxu0 %v20351_v34 }
 0x611   :  { %15897 = vmatprep.subr.bf16.mxu0 %v16444_v26 }
 0x612   :  { %16040 = vmatpush3.bf16.msra.mxu1 %v20351_v34  ;;  %v15907_v34 = vpack.c.bf16 %v20411_v33, %v20406_v0 }
 0x613   :  { %16041 = vmatprep.subr.bf16.mxu1 %v16444_v26 }
 0x614   :  { %15899 = vmatpush3.bf16.msra.mxu0 %v20359_v35 }
 0x615   :  { %15900 = vmatprep.subr.bf16.mxu0 %v16444_v26 }
 0x616   :  { %16043 = vmatpush3.bf16.msra.mxu1 %v20359_v35  ;;  %v15910_v35 = vpack.c.bf16 %v20436_v31, %v20431_v53 }
 0x617   :  { %13976 = vmatmul.mubr.f32.vlgmr.msra.gmra.mrb[42].mxu0 %v20413_v22  ;;  %16044 = vmatprep.subr.bf16.mxu1 %v16444_v26 }
 0x618   :  { %15902 = vmatpush3.bf16.msra.mxu0 %v15901_v14  ;;  %14010 = vmatprep.mubr.msk.f32.mxu0 %vm16443_vm1, %v16442_v42 }
 0x619   :  { %14186 = vmatmul.mubr.f32.vlgmr.msra.gmra.mrb[48].mxu1 %v20424_v16  ;;  %15903 = vmatprep.subr.bf16.mxu0 %v16444_v26 }
 0x61a   :  { %16046 = vmatpush3.bf16.msra.mxu1 %v15901_v14  ;;  %14220 = vmatprep.mubr.msk.f32.mxu1 %vm16443_vm1, %v16442_v42  ;;  %v9001_v14 = vand.u32 4294901760, %v7655_v12 }
 0x61b   :  { %16047 = vmatprep.subr.bf16.mxu1 %v16444_v26 }
 0x61c   :  { %15905 = vmatpush3.bf16.msra.mxu0 %v15904_v30 }
 0x61d   :  { %15906 = vmatprep.subr.bf16.mxu0 %v16444_v26 }
 0x61e   :  { %16049 = vmatpush3.bf16.msra.mxu1 %v15904_v30  ;;  %v9004_v30 = vand.u32 4294901760, %v20761_v39 }
 0x61f   :  { %16050 = vmatprep.subr.bf16.mxu1 %v16444_v26 }
 0x620   :  { %15908 = vmatpush3.bf16.msra.mxu0 %v15907_v34 }
 0x621   :  { %15909 = vmatprep.subr.bf16.mxu0 %v16444_v26 }
 0x622   :  { %16052 = vmatpush3.bf16.msra.mxu1 %v15907_v34  ;;  %v7657_v34 = vld [vmem:[%s21086_s1 + $0x4b0] sm:$0xff] }
 0x623   :  { %16053 = vmatprep.subr.bf16.mxu1 %v16444_v26 }
 0x624   :  { %15911 = vmatpush3.bf16.msra.mxu0 %v15910_v35 }
 0x625   :  { %15912 = vmatprep.subr.bf16.mxu0 %v16444_v26 }
 0x626   :  { %16055 = vmatpush3.bf16.msra.mxu1 %v15910_v35  ;;  %v20780_v35 = vld [vmem:[%s21086_s1 + $0x4b8] sm:$0xff] }
 0x627   :  { %16056 = vmatprep.subr.bf16.mxu1 %v16444_v26 }
 0x628   :  { %15914 = vmatpush3.bf16.msra.mxu0 %v15913_v13 }
 0x629   :  { %15915 = vmatprep.subr.bf16.mxu0 %v16444_v26 }
 0x62a   :  { %16058 = vmatpush3.bf16.msra.mxu1 %v15913_v13 }
 0x62b   :  { %16059 = vmatprep.subr.bf16.mxu1 %v16444_v26 }
 0x62c   :  { %15917 = vmatpush3.bf16.msra.mxu0 %v20363_v1 }
 0x62d   :  { %15918 = vmatprep.subr.bf16.mxu0 %v16444_v26 }
 0x62e   :  { %16061 = vmatpush3.bf16.msra.mxu1 %v20363_v1  ;;  %v15949_v1 = vpack.c.bf16 %v7763_v62, %v7756_v60  ;;  %v15964_v60 = vpack.c.bf16 %v7833_v56, %v7826_v57  ;;  %v22101_v62 = vand.u32 4294901760, %v20331_v44  ;;  %v15970_v57 = vpack.c.bf16 %v22104_v9, %v22103_v24  ;;  %v7645_v56 = vld [vmem:[%s21086_s1 + $0x450] sm:$0xff] }
 0x62f   :  { %16062 = vmatprep.subr.bf16.mxu1 %v16444_v26  ;;  %v8971_v28 = vand.u32 4294901760, %v7645_v56 }
 0x630   :  { %15920 = vmatpush3.bf16.msra.mxu0 %v20367_v46  ;;  %v15967_v29 = vpack.c.bf16 %v22102_v3, %v22101_v62  ;;  %v9007_v62 = vand.u32 4294901760, %v7657_v34  ;;  %v9010_v3 = vand.u32 4294901760, %v20780_v35 }
 0x631   :  { %15921 = vmatprep.subr.bf16.mxu0 %v16444_v26  ;;  %v20763_v49 = vsub.f32 %v7645_v56, %v8971_v28 }
 0x632   :  { %16064 = vmatpush3.bf16.msra.mxu1 %v20367_v46  ;;  %v15952_v46 = vpack.c.bf16 %v7777_v37, %v7770_v48  ;;  %v7647_v48 = vld [vmem:[%s21086_s1 + $0x460] sm:$0xff] }
 0x633   :  { %16065 = vmatprep.subr.bf16.mxu1 %v16444_v26  ;;  %v8977_v33 = vand.u32 4294901760, %v7647_v48 }
 0x634   :  { %15923 = vmatpush3.bf16.msra.mxu0 %v20371_v11 }
 0x635   :  { %15924 = vmatprep.subr.bf16.mxu0 %v16444_v26  ;;  %v20782_v13 = vsub.f32 %v7647_v48, %v8977_v33 }
 0x636   :  { %16067 = vmatpush3.bf16.msra.mxu1 %v20371_v11  ;;  %v15955_v11 = vpack.c.bf16 %v7791_v15, %v7784_v59  ;;  %v7650_v15 = vld [vmem:[%s21086_s1 + $0x478] sm:$0xff] }
 0x637   :  { %14011 = vmatmul.mubr.f32.vlgmr.msra.gmra.mrb[42].mxu0 %v20422_v38  ;;  %16068 = vmatprep.subr.bf16.mxu1 %v16444_v26  ;;  %v8986_v31 = vand.u32 4294901760, %v7650_v15 }
 0x638   :  { %15926 = vmatpush3.bf16.msra.mxu0 %v20155_v19  ;;  %14045 = vmatprep.mubr.msk.f32.mxu0 %vm16443_vm1, %v16442_v42 }
 0x639   :  { %14221 = vmatmul.mubr.f32.vlgmr.msra.gmra.mrb[48].mxu1 %v20439_v54  ;;  %15927 = vmatprep.subr.bf16.mxu0 %v16444_v26  ;;  %v7651_v54 = vld [vmem:[%s21086_s1 + $0x480] sm:$0xff] }
 0x63a   :  { %16070 = vmatpush3.bf16.msra.mxu1 %v20155_v19  ;;  %14255 = vmatprep.mubr.msk.f32.mxu1 %vm16443_vm1, %v16442_v42  ;;  %v8989_v36 = vand.u32 4294901760, %v7651_v54 }
 0x63b   :  { %16071 = vmatprep.subr.bf16.mxu1 %v16444_v26 }
 0x63c   :  { %15929 = vmatpush3.bf16.msra.mxu0 %v20162_v50  ;;  %v20815_v56 = vsub.f32 %v7651_v54, %v8989_v36 }
 0x63d   :  { %15930 = vmatprep.subr.bf16.mxu0 %v16444_v26 }
 0x63e   :  { %16073 = vmatpush3.bf16.msra.mxu1 %v20162_v50  ;;  %v9114_v54 = vand.u32 4294901760, %v20815_v56 }
 0x63f   :  { %16074 = vmatprep.subr.bf16.mxu1 %v16444_v26 }
 0x640   :  { %15932 = vmatpush3.bf16.msra.mxu0 %v20182_v55 }
 0x641   :  { %15933 = vmatprep.subr.bf16.mxu0 %v16444_v26 }
 0x642   :  { %16076 = vmatpush3.bf16.msra.mxu1 %v20182_v55 }
 0x643   :  { %16077 = vmatprep.subr.bf16.mxu1 %v16444_v26 }
 0x644   :  { %15935 = vmatpush3.bf16.msra.mxu0 %v20202_v10 }
 0x645   :  { %15936 = vmatprep.subr.bf16.mxu0 %v16444_v26 }
 0x646   :  { %16079 = vmatpush3.bf16.msra.mxu1 %v20202_v10 }
 0x647   :  { %16080 = vmatprep.subr.bf16.mxu1 %v16444_v26 }
 0x648   :  { %15938 = vmatpush3.bf16.msra.mxu0 %v20226_v47 }
 0x649   :  { %15939 = vmatprep.subr.bf16.mxu0 %v16444_v26 }
 0x64a   :  { %16082 = vmatpush3.bf16.msra.mxu1 %v20226_v47 }
 0x64b   :  { %16083 = vmatprep.subr.bf16.mxu1 %v16444_v26 }
 0x64c   :  { %15941 = vmatpush3.bf16.msra.mxu0 %v20289_v45 }
 0x64d   :  { %15942 = vmatprep.subr.bf16.mxu0 %v16444_v26 }
 0x64e   :  { %16085 = vmatpush3.bf16.msra.mxu1 %v20289_v45 }
 0x64f   :  { %16086 = vmatprep.subr.bf16.mxu1 %v16444_v26 }
 0x650   :  { %15944 = vmatpush3.bf16.msra.mxu0 %v20301_v52 }
 0x651   :  { %15945 = vmatprep.subr.bf16.mxu0 %v16444_v26 }
 0x652   :  { %16088 = vmatpush3.bf16.msra.mxu1 %v20301_v52 }
 0x653   :  { %16089 = vmatprep.subr.bf16.mxu1 %v16444_v26 }
 0x654   :  { %15947 = vmatpush3.bf16.msra.mxu0 %v20313_v41 }
 0x655   :  { %15948 = vmatprep.subr.bf16.mxu0 %v16444_v26 }
 0x656   :  { %16091 = vmatpush3.bf16.msra.mxu1 %v20313_v41 }
 0x657   :  { %14046 = vmatmul.mubr.f32.vlgmr.msra.gmra.mrb[42].mxu0 %v20442_v27  ;;  %16092 = vmatprep.subr.bf16.mxu1 %v16444_v26 }
 0x658   :  { %15950 = vmatpush3.bf16.msra.mxu0 %v15949_v1  ;;  %14080 = vmatprep.mubr.msk.f32.mxu0 %vm16443_vm1, %v16442_v42 }
 0x659   :  { %14256 = vmatmul.mubr.f32.vlgmr.msra.gmra.mrb[48].mxu1 %v8388_v23  ;;  %15951 = vmatprep.subr.bf16.mxu0 %v16444_v26  ;;  %v7652_v23 = vld [vmem:[%s21086_s1 + $0x488] sm:$0xff] }
 0x65a   :  { %16094 = vmatpush3.bf16.msra.mxu1 %v15949_v1  ;;  %14290 = vmatprep.mubr.msk.f32.mxu1 %vm16443_vm1, %v16442_v42  ;;  %v8992_v20 = vand.u32 4294901760, %v7652_v23 }
 0x65b   :  { %16095 = vmatprep.subr.bf16.mxu1 %v16444_v26 }
 0x65c   :  { %15953 = vmatpush3.bf16.msra.mxu0 %v15952_v46  ;;  %v20752_v18 = vpack.c.bf16 %v8992_v20, %v8989_v36 }
 0x65d   :  { %15954 = vmatprep.subr.bf16.mxu0 %v16444_v26 }
 0x65e   :  { %16097 = vmatpush3.bf16.msra.mxu1 %v15952_v46 }
 0x65f   :  { %16098 = vmatprep.subr.bf16.mxu1 %v16444_v26 }
 0x660   :  { %15956 = vmatpush3.bf16.msra.mxu0 %v15955_v11 }
 0x661   :  { %15957 = vmatprep.subr.bf16.mxu0 %v16444_v26 }
 0x662   :  { %16100 = vmatpush3.bf16.msra.mxu1 %v15955_v11  ;;  %v9072_v11 = vand.u32 4294901760, %v20763_v49 }
 0x663   :  { %16101 = vmatprep.subr.bf16.mxu1 %v16444_v26 }
 0x664   :  { %15959 = vmatpush3.bf16.msra.mxu0 %v15958_v7 }
 0x665   :  { %15960 = vmatprep.subr.bf16.mxu0 %v16444_v26 }
 0x666   :  { %16103 = vmatpush3.bf16.msra.mxu1 %v15958_v7 }
 0x667   :  { %16104 = vmatprep.subr.bf16.mxu1 %v16444_v26 }
 0x668   :  { %15962 = vmatpush3.bf16.msra.mxu0 %v15961_v5 }
 0x669   :  { %15963 = vmatprep.subr.bf16.mxu0 %v16444_v26 }
 0x66a   :  { %16106 = vmatpush3.bf16.msra.mxu1 %v15961_v5 }
 0x66b   :  { %16107 = vmatprep.subr.bf16.mxu1 %v16444_v26 }
 0x66c   :  { %15965 = vmatpush3.bf16.msra.mxu0 %v15964_v60 }
 0x66d   :  { %15966 = vmatprep.subr.bf16.mxu0 %v16444_v26 }
 0x66e   :  { %16109 = vmatpush3.bf16.msra.mxu1 %v15964_v60  ;;  %v20795_v60 = vpack.c.bf16 %v9004_v30, %v9001_v14 }
 0x66f   :  { %16110 = vmatprep.subr.bf16.mxu1 %v16444_v26 }
 0x670   :  { %15968 = vmatpush3.bf16.msra.mxu0 %v15967_v29 }
 0x671   :  { %15969 = vmatprep.subr.bf16.mxu0 %v16444_v26 }
 0x672   :  { %16112 = vmatpush3.bf16.msra.mxu1 %v15967_v29 }
 0x673   :  { %16113 = vmatprep.subr.bf16.mxu1 %v16444_v26 }
 0x674   :  { %15971 = vmatpush3.bf16.msra.mxu0 %v15970_v57 }
 0x675   :  { %15972 = vmatprep.subr.bf16.mxu0 %v16444_v26 }
 0x676   :  { %16115 = vmatpush3.bf16.msra.mxu1 %v15970_v57  ;;  %v9073_v57 = vsub.f32 %v20763_v49, %v9072_v11 }
 0x677   :  { %14081 = vmatmul.mubr.f32.vlgmr.msra.gmra.mrb[42].mxu0 %v20413_v22  ;;  %16116 = vmatprep.subr.bf16.mxu1 %v16444_v26 }
 0x678   :  { %15974 = vmatpush3.bf16.msra.mxu0 %v20155_v19  ;;  %14115 = vmatprep.mubr.msk.f32.mxu0 %vm16443_vm1, %v16442_v42 }
 0x679   :  { %14291 = vmatmul.mubr.f32.vlgmr.msra.gmra.mrb[48].mxu1 %v20424_v16  ;;  %15975 = vmatprep.subr.bf16.mxu0 %v16444_v26 }
 0x67a   :  { %16118 = vmatpush3.bf16.msra.mxu1 %v20155_v19  ;;  %14325 = vmatprep.mubr.msk.f32.mxu1 %vm16443_vm1, %v16442_v42  ;;  %v7643_v19 = vld [vmem:[%s21086_s1 + $0x440] sm:$0xff] }
 0x67b   :  { %16119 = vmatprep.subr.bf16.mxu1 %v16444_v26 }
 0x67c   :  { %15977 = vmatpush3.bf16.msra.mxu0 %v20162_v50 }
 0x67d   :  { %15978 = vmatprep.subr.bf16.mxu0 %v16444_v26 }
 0x67e   :  { %16121 = vmatpush3.bf16.msra.mxu1 %v20162_v50  ;;  %v7644_v50 = vld [vmem:[%s21086_s1 + $0x448] sm:$0xff] }
 0x67f   :  { %16122 = vmatprep.subr.bf16.mxu1 %v16444_v26 }
 0x680   :  { %15980 = vmatpush3.bf16.msra.mxu0 %v20182_v55 }
 0x681   :  { %15981 = vmatprep.subr.bf16.mxu0 %v16444_v26 }
 0x682   :  { %16124 = vmatpush3.bf16.msra.mxu1 %v20182_v55  ;;  %v7659_v55 = vld [vmem:[%s21086_s1 + $0x540] sm:$0x3] }
 0x683   :  { %16125 = vmatprep.subr.bf16.mxu1 %v16444_v26  ;;  %v20691_v44 = vsel %vm5353_vm0, %v7659_v55, 0  ;;  %v20810_v55 = vpack.c.bf16 %v9010_v3, %v9007_v62 }
 0x684   :  { %15983 = vmatpush3.bf16.msra.mxu0 %v20202_v10  ;;  %v20705_v37 = vand.u32 4294901760, %v20691_v44 }
 0x685   :  { %15984 = vmatprep.subr.bf16.mxu0 %v16444_v26 }
 0x686   :  { %16127 = vmatpush3.bf16.msra.mxu1 %v20202_v10  ;;  %v8965_v10 = vand.u32 4294901760, %v7643_v19 }
 0x687   :  { %16128 = vmatprep.subr.bf16.mxu1 %v16444_v26 }
 0x688   :  { %15986 = vmatpush3.bf16.msra.mxu0 %v20226_v47  ;;  %v20747_v43 = vsub.f32 %v7643_v19, %v8965_v10 }
 0x689   :  { %15987 = vmatprep.subr.bf16.mxu0 %v16444_v26 }
 0x68a   :  { %16130 = vmatpush3.bf16.msra.mxu1 %v20226_v47  ;;  %v8968_v47 = vand.u32 4294901760, %v7644_v50  ;;  %v9058_v61 = vand.u32 4294901760, %v20747_v43 }
 0x68b   :  { %16131 = vmatprep.subr.bf16.mxu1 %v16444_v26 }
 0x68c   :  { %15989 = vmatpush3.bf16.msra.mxu0 %v20289_v45  ;;  %v20695_v25 = vpack.c.bf16 %v8968_v47, %v8965_v10  ;;  %v20749_v32 = vsub.f32 %v7644_v50, %v8968_v47  ;;  %v9059_v1 = vsub.f32 %v20747_v43, %v9058_v61  ;;  %v20807_v50 = vsub.f32 %v7650_v15, %v8986_v31 }
 0x68d   :  { %15990 = vmatprep.subr.bf16.mxu0 %v16444_v26  ;;  %v9086_v10 = vand.u32 4294901760, %v20782_v13  ;;  %v20829_v15 = vsub.f32 %v7653_v58, %v8995_v8 }
 0x68e   :  { %16133 = vmatpush3.bf16.msra.mxu1 %v20289_v45  ;;  %v7646_v45 = vld [vmem:[%s21086_s1 + $0x458] sm:$0xff]  ;;  %v9065_v63 = vand.u32 4294901760, %v20749_v32  ;;  %v9060_v24 = vand.u32 4294901760, %v9059_v1 }
 0x68f   :  { %16134 = vmatprep.subr.bf16.mxu1 %v16444_v26  ;;  %v8974_v17 = vand.u32 4294901760, %v7646_v45 }
 0x690   :  { %15992 = vmatpush3.bf16.msra.mxu0 %v20301_v52  ;;  %v9066_v46 = vsub.f32 %v20749_v32, %v9065_v63 }
 0x691   :  { %15993 = vmatprep.subr.bf16.mxu0 %v16444_v26  ;;  %v20711_v0 = vpack.c.bf16 %v8974_v17, %v8971_v28  ;;  %v20765_v51 = vsub.f32 %v7646_v45, %v8974_v17  ;;  %v20817_v45 = vsub.f32 %v7652_v23, %v8992_v20  ;;  %v9074_v17 = vand.u32 4294901760, %v9073_v57 }
 0x692   :  { %16136 = vmatpush3.bf16.msra.mxu1 %v20301_v52  ;;  %v7648_v52 = vld [vmem:[%s21086_s1 + $0x468] sm:$0xff]  ;;  %v9067_v9 = vand.u32 4294901760, %v9066_v46 }
 0x693   :  { %16137 = vmatprep.subr.bf16.mxu1 %v16444_v26  ;;  %v8980_v59 = vand.u32 4294901760, %v7648_v52  ;;  %v9079_v7 = vand.u32 4294901760, %v20765_v51  ;;  %v9121_v23 = vand.u32 4294901760, %v20817_v45 }
 0x694   :  { %15995 = vmatpush3.bf16.msra.mxu0 %v20313_v41  ;;  %v16165_v28 = vpack.c.bf16 %v9067_v9, %v9060_v24  ;;  %v20856_v24 = vsub.f32 %v20761_v39, %v9004_v30  ;;  %v20868_v39 = vsub.f32 %v20780_v35, %v9010_v3 }
 0x695   :  { %16140 = vmatprep.subr.bf16.mxu0 %v16444_v26  ;;  %v20792_v5 = vsub.f32 %v7648_v52, %v8980_v59  ;;  %v9080_v19 = vsub.f32 %v20765_v51, %v9079_v7  ;;  %v9087_v52 = vsub.f32 %v20782_v13, %v9086_v10  ;;  %v9122_v8 = vsub.f32 %v20817_v45, %v9121_v23 }
 0x696   :  { %16139 = vmatpush3.bf16.msra.mxu1 %v20313_v41  ;;  %v7649_v41 = vld [vmem:[%s21086_s1 + $0x470] sm:$0xff] }
 0x697   :  { %14116 = vmatmul.mubr.f32.vlgmr.msra.gmra.mrb[42].mxu0 %v20413_v22  ;;  %14538 = vmatprep.subr.mxu1 %v16442_v42  ;;  %v8983_v53 = vand.u32 4294901760, %v7649_v41  ;;  %v9093_v47 = vand.u32 4294901760, %v20792_v5  ;;  %v9081_v48 = vand.u32 4294901760, %v9080_v19  ;;  %v9088_v36 = vand.u32 4294901760, %v9087_v52 }
 0x698   :  { %16142 = vmatpush3.bf16.msra.mxu0 %v20695_v25  ;;  %14360 = vmatprep.mubr.msk.f32.mxu0 %vm16443_vm1, %v16442_v42 }
 0x699   :  { %14326 = vmatmul.mubr.f32.vlgmr.msra.gmra.mrb[48].mxu1 %v20424_v16  ;;  %16143 = vmatprep.subr.bf16.mxu0 %v16444_v26  ;;  %v20728_v16 = vpack.c.bf16 %v8980_v59, %v8977_v33  ;;  %v20738_v21 = vpack.c.bf16 %v8986_v31, %v8983_v53  ;;  %v20799_v29 = vsub.f32 %v7649_v41, %v8983_v53  ;;  %v9107_v41 = vand.u32 4294901760, %v20807_v50 }
 0x69a   :  { %14539 = vmatpush3.msra.mxu1 %v20705_v37  ;;  %14540 = vmatprep.mubr.msk.f32.mxu1 %vm16443_vm1, %v16442_v42  ;;  %v9094_v33 = vsub.f32 %v20792_v5, %v9093_v47  ;;  %v20831_v53 = vsub.f32 %v7654_v6, %v8998_v40  ;;  %v16168_v31 = vpack.c.bf16 %v9081_v48, %v9074_v17  ;;  %v9128_v40 = vand.u32 4294901760, %v20829_v15 }
 0x69b   :  { %14543 = vmatprep.subr.mxu1 %v16442_v42  ;;  %v9100_v59 = vand.u32 4294901760, %v20799_v29  ;;  %v9108_v58 = vsub.f32 %v20807_v50, %v9107_v41  ;;  %v9115_v6 = vsub.f32 %v20815_v56, %v9114_v54 }
 0x69c   :  { %16145 = vmatpush3.bf16.msra.mxu0 %v20711_v0  ;;  %v9095_v20 = vand.u32 4294901760, %v9094_v33  ;;  %v9135_v46 = vand.u32 4294901760, %v20831_v53  ;;  %v9129_v17 = vsub.f32 %v20829_v15, %v9128_v40 }
 0x69d   :  { %16146 = vmatprep.subr.bf16.mxu0 %v16444_v26  ;;  %v9101_v1 = vsub.f32 %v20799_v29, %v9100_v59  ;;  %v9116_v19 = vand.u32 4294901760, %v9115_v6 }
 0x69e   :  { %v16171_v9 = vpack.c.bf16 %v9095_v20, %v9088_v36  ;;  %v9136_v48 = vsub.f32 %v20831_v53, %v9135_v46  ;;  %v9130_v33 = vand.u32 4294901760, %v9129_v17  ;;  %v9163_v20 = vand.u32 4294901760, %v20868_v39 }
 0x69f   :  { %v9102_v57 = vand.u32 4294901760, %v9101_v1  ;;  %v16189_v17 = vpack.c.bf16 %v20749_v32, %v20747_v43  ;;  %v16243_v43 = vpack.c.bf16 %v9093_v47, %v9086_v10  ;;  %v16249_v32 = vpack.c.bf16 %v9121_v23, %v9114_v54 }
 0x6a0   :  { %16148 = vmatpush3.bf16.msra.mxu0 %v20728_v16 }
 0x6a1   :  { %16149 = vmatprep.subr.bf16.mxu0 %v16444_v26 }
 0x6a4   :  { %16151 = vmatpush3.bf16.msra.mxu0 %v20738_v21 }
 0x6a5   :  { %16152 = vmatprep.subr.bf16.mxu0 %v16444_v26 }
 0x6a8   :  { %16154 = vmatpush3.bf16.msra.mxu0 %v20752_v18 }
 0x6a9   :  { %16155 = vmatprep.subr.bf16.mxu0 %v16444_v26 }
 0x6ac   :  { %16157 = vmatpush3.bf16.msra.mxu0 %v20770_v2 }
 0x6ad   :  { %16158 = vmatprep.subr.bf16.mxu0 %v16444_v26 }
 0x6b0   :  { %16160 = vmatpush3.bf16.msra.mxu0 %v20795_v60 }
 0x6b1   :  { %16161 = vmatprep.subr.bf16.mxu0 %v16444_v26 }
 0x6b4   :  { %16163 = vmatpush3.bf16.msra.mxu0 %v20810_v55 }
 0x6b5   :  { %16164 = vmatprep.subr.bf16.mxu0 %v16444_v26 }
 0x6b7   :  { %14361 = vmatmul.mubr.f32.vlgmr.msra.gmra.mrb[44].mxu0 %v20465_v4  ;;  %v20845_v4 = vsub.f32 %v7655_v12, %v9001_v14  ;;  %v9109_v12 = vand.u32 4294901760, %v9108_v58  ;;  %v20859_v14 = vsub.f32 %v7657_v34, %v9007_v62  ;;  %v9149_v34 = vand.u32 4294901760, %v20856_v24 }
 0x6b8   :  { %16166 = vmatpush3.bf16.msra.mxu0 %v16165_v28  ;;  %14395 = vmatprep.mubr.msk.f32.mxu0 %vm16443_vm1, %v16442_v42  ;;  %v9123_v28 = vand.u32 4294901760, %v9122_v8 }
 0x6b9   :  { %16167 = vmatprep.subr.bf16.mxu0 %v16444_v26  ;;  %v16174_v30 = vpack.c.bf16 %v9109_v12, %v9102_v57  ;;  %v9142_v52 = vand.u32 4294901760, %v20845_v4  ;;  %v9150_v35 = vsub.f32 %v20856_v24, %v9149_v34  ;;  %v9156_v3 = vand.u32 4294901760, %v20859_v14 }
 0x6ba   :  { %v16177_v62 = vpack.c.bf16 %v9123_v28, %v9116_v19 }
 0x6bb   :  { %v9143_v36 = vsub.f32 %v20845_v4, %v9142_v52  ;;  %v9151_v6 = vand.u32 4294901760, %v9150_v35  ;;  %v9157_v8 = vsub.f32 %v20859_v14, %v9156_v3  ;;  %v16210_v35 = vpack.c.bf16 %v20868_v39, %v20859_v14 }
 0x6bc   :  { %16169 = vmatpush3.bf16.msra.mxu0 %v16168_v31  ;;  %v9137_v31 = vand.u32 4294901760, %v9136_v48  ;;  %v16192_v48 = vpack.c.bf16 %v20765_v51, %v20763_v49  ;;  %v16252_v49 = vpack.c.bf16 %v9135_v46, %v9128_v40  ;;  %v16255_v51 = vpack.c.bf16 %v9149_v34, %v9142_v52 }
 0x6bd   :  { %16170 = vmatprep.subr.bf16.mxu0 %v16444_v26  ;;  %v9144_v58 = vand.u32 4294901760, %v9143_v36  ;;  %v9158_v12 = vand.u32 4294901760, %v9157_v8  ;;  %v16207_v36 = vpack.c.bf16 %v20856_v24, %v20845_v4  ;;  %v10508_v24 = vld [vmem:[%s21086_s1 + $0x568] sm:$0xff] }
 0x6be   :  { %v16180_v1 = vpack.c.bf16 %v9137_v31, %v9130_v33  ;;  %v16201_v33 = vpack.c.bf16 %v20817_v45, %v20815_v56  ;;  %v16204_v31 = vpack.c.bf16 %v20831_v53, %v20829_v15  ;;  %v10523_v14 = vsel %vm6723_vm5, %v10508_v24, 0 }
 0x6bf   :  { %v16183_v57 = vpack.c.bf16 %v9151_v6, %v9144_v58 }
 0x6c0   :  { %16172 = vmatpush3.bf16.msra.mxu0 %v16171_v9  ;;  %v9164_v9 = vsub.f32 %v20868_v39, %v9163_v20  ;;  %v10594_v39 = vand.u32 4294901760, %v10523_v14 }
 0x6c1   :  { %16173 = vmatprep.subr.bf16.mxu0 %v16444_v26 }
 0x6c2   :  { %v9165_v19 = vand.u32 4294901760, %v9164_v9  ;;  %v10595_v52 = vsub.f32 %v10523_v14, %v10594_v39 }
 0x6c4   :  { %16175 = vmatpush3.bf16.msra.mxu0 %v16174_v30  ;;  %v16186_v28 = vpack.c.bf16 %v9165_v19, %v9158_v12  ;;  %v16195_v30 = vpack.c.bf16 %v20792_v5, %v20782_v13  ;;  %v10596_v34 = vand.u32 4294901760, %v10595_v52  ;;  %v10509_v12 = vld [vmem:[%s21086_s1 + $0x570] sm:$0xff] }
 0x6c5   :  { %16176 = vmatprep.subr.bf16.mxu0 %v16444_v26 }
 0x6c8   :  { %16178 = vmatpush3.bf16.msra.mxu0 %v16177_v62  ;;  %v16198_v62 = vpack.c.bf16 %v20807_v50, %v20799_v29 }
 0x6c9   :  { %16179 = vmatprep.subr.bf16.mxu0 %v16444_v26 }
 0x6cc   :  { %16181 = vmatpush3.bf16.msra.mxu0 %v16180_v1  ;;  %v16240_v1 = vpack.c.bf16 %v9079_v7, %v9072_v11 }
 0x6cd   :  { %16182 = vmatprep.subr.bf16.mxu0 %v16444_v26 }
 0x6d0   :  { %16184 = vmatpush3.bf16.msra.mxu0 %v16183_v57 }
 0x6d1   :  { %16185 = vmatprep.subr.bf16.mxu0 %v16444_v26 }
 0x6d4   :  { %16187 = vmatpush3.bf16.msra.mxu0 %v16186_v28 }
 0x6d5   :  { %16188 = vmatprep.subr.bf16.mxu0 %v16444_v26 }
 0x6d7   :  { %14396 = vmatmul.mubr.f32.vlgmr.msra.gmra.mrb[44].mxu0 %v20413_v22 }
 0x6d8   :  { %16190 = vmatpush3.bf16.msra.mxu0 %v16189_v17  ;;  %14430 = vmatprep.mubr.msk.f32.mxu0 %vm16443_vm1, %v16442_v42 }
 0x6d9   :  { %16191 = vmatprep.subr.bf16.mxu0 %v16444_v26 }
 0x6dc   :  { %16193 = vmatpush3.bf16.msra.mxu0 %v16192_v48  ;;  %v10526_v48 = vsel %vm6723_vm5, %v10509_v12, 0 }
 0x6dd   :  { %16194 = vmatprep.subr.bf16.mxu0 %v16444_v26 }
 0x6e0   :  { %16196 = vmatpush3.bf16.msra.mxu0 %v16195_v30 }
 0x6e1   :  { %16197 = vmatprep.subr.bf16.mxu0 %v16444_v26 }
 0x6e4   :  { %16199 = vmatpush3.bf16.msra.mxu0 %v16198_v62 }
 0x6e5   :  { %16200 = vmatprep.subr.bf16.mxu0 %v16444_v26 }
 0x6e8   :  { %16202 = vmatpush3.bf16.msra.mxu0 %v16201_v33 }
 0x6e9   :  { %16203 = vmatprep.subr.bf16.mxu0 %v16444_v26 }
 0x6ec   :  { %16205 = vmatpush3.bf16.msra.mxu0 %v16204_v31  ;;  %v10604_v31 = vand.u32 4294901760, %v10526_v48 }
 0x6ed   :  { %16206 = vmatprep.subr.bf16.mxu0 %v16444_v26 }
 0x6f0   :  { %16208 = vmatpush3.bf16.msra.mxu0 %v16207_v36 }
 0x6f1   :  { %16209 = vmatprep.subr.bf16.mxu0 %v16444_v26 }
 0x6f4   :  { %16211 = vmatpush3.bf16.msra.mxu0 %v16210_v35 }
 0x6f5   :  { %16212 = vmatprep.subr.bf16.mxu0 %v16444_v26 }
 0x6f7   :  { %14431 = vmatmul.mubr.f32.vlgmr.msra.gmra.mrb[44].mxu0 %v20422_v38  ;;  %v16237_v38 = vpack.c.bf16 %v9065_v63, %v9058_v61  ;;  %v16258_v61 = vpack.c.bf16 %v9163_v20, %v9156_v3  ;;  %v10597_v3 = vsub.f32 %v10595_v52, %v10596_v34 }
 0x6f8   :  { %16214 = vmatpush3.bf16.msra.mxu0 %v20695_v25  ;;  %14465 = vmatprep.mubr.msk.f32.mxu0 %vm16443_vm1, %v16442_v42 }
 0x6f9   :  { %16215 = vmatprep.subr.bf16.mxu0 %v16444_v26  ;;  %v10598_v20 = vand.u32 4294901760, %v10597_v3 }
 0x6fc   :  { %16217 = vmatpush3.bf16.msra.mxu0 %v20711_v0 }
 0x6fd   :  { %16218 = vmatprep.subr.bf16.mxu0 %v16444_v26 }
 0x700   :  { %16220 = vmatpush3.bf16.msra.mxu0 %v20728_v16 }
 0x701   :  { %16221 = vmatprep.subr.bf16.mxu0 %v16444_v26 }
 0x704   :  { %16223 = vmatpush3.bf16.msra.mxu0 %v20738_v21 }
 0x705   :  { %16224 = vmatprep.subr.bf16.mxu0 %v16444_v26 }
 0x708   :  { %16226 = vmatpush3.bf16.msra.mxu0 %v20752_v18 }
 0x709   :  { %16227 = vmatprep.subr.bf16.mxu0 %v16444_v26 }
 0x70c   :  { %16229 = vmatpush3.bf16.msra.mxu0 %v20770_v2 }
 0x70d   :  { %16230 = vmatprep.subr.bf16.mxu0 %v16444_v26 }
 0x710   :  { %16232 = vmatpush3.bf16.msra.mxu0 %v20795_v60 }
 0x711   :  { %16233 = vmatprep.subr.bf16.mxu0 %v16444_v26 }
 0x714   :  { %16235 = vmatpush3.bf16.msra.mxu0 %v20810_v55 }
 0x715   :  { %16236 = vmatprep.subr.bf16.mxu0 %v16444_v26 }
 0x717   :  { %14466 = vmatmul.mubr.f32.vlgmr.msra.gmra.mrb[44].mxu0 %v20442_v27  ;;  %v16246_v27 = vpack.c.bf16 %v9107_v41, %v9100_v59 }
 0x718   :  { %16238 = vmatpush3.bf16.msra.mxu0 %v16237_v38  ;;  %14500 = vmatprep.mubr.msk.f32.mxu0 %vm16443_vm1, %v16442_v42 }
 0x719   :  { %16239 = vmatprep.subr.bf16.mxu0 %v16444_v26 }
 0x71c   :  { %16241 = vmatpush3.bf16.msra.mxu0 %v16240_v1  ;;  %v10605_v1 = vsub.f32 %v10526_v48, %v10604_v31  ;;  %v11543_v48 = vld [vmem:[%s21086_s1 + $0x560] sm:$0xff] }
 0x71d   :  { %16242 = vmatprep.subr.bf16.mxu0 %v16444_v26 }
 0x720   :  { %16244 = vmatpush3.bf16.msra.mxu0 %v16243_v43 }
 0x721   :  { %16245 = vmatprep.subr.bf16.mxu0 %v16444_v26 }
 0x724   :  { %16247 = vmatpush3.bf16.msra.mxu0 %v16246_v27 }
 0x725   :  { %16248 = vmatprep.subr.bf16.mxu0 %v16444_v26 }
 0x728   :  { %16250 = vmatpush3.bf16.msra.mxu0 %v16249_v32 }
 0x729   :  { %16251 = vmatprep.subr.bf16.mxu0 %v16444_v26 }
 0x72c   :  { %16253 = vmatpush3.bf16.msra.mxu0 %v16252_v49  ;;  %v10606_v49 = vand.u32 4294901760, %v10605_v1 }
 0x72d   :  { %16254 = vmatprep.subr.bf16.mxu0 %v16444_v26 }
 0x730   :  { %16256 = vmatpush3.bf16.msra.mxu0 %v16255_v51 }
 0x731   :  { %16257 = vmatprep.subr.bf16.mxu0 %v16444_v26 }
 0x734   :  { %16259 = vmatpush3.bf16.msra.mxu0 %v16258_v61 }
 0x735   :  { %16260 = vmatprep.subr.bf16.mxu0 %v16444_v26 }
 0x737   :  { %14501 = vmatmul.mubr.f32.vlgmr.msra.gmra.mrb[44].mxu0 %v20413_v22 }
 0x738   :  { %16262 = vmatpush3.bf16.msra.mxu0 %v20695_v25  ;;  %14535 = vmatprep.mubr.msk.f32.mxu0 %vm16443_vm1, %v16442_v42 }
 0x739   :  { %16263 = vmatprep.subr.bf16.mxu0 %v16444_v26 }
 0x73c   :  { %16265 = vmatpush3.bf16.msra.mxu0 %v20711_v0 }
 0x73d   :  { %16266 = vmatprep.subr.bf16.mxu0 %v16444_v26 }
 0x740   :  { %16268 = vmatpush3.bf16.msra.mxu0 %v20728_v16 }
 0x741   :  { %16269 = vmatprep.subr.bf16.mxu0 %v16444_v26 }
 0x744   :  { %16271 = vmatpush3.bf16.msra.mxu0 %v20738_v21 }
 0x745   :  { %16272 = vmatprep.subr.bf16.mxu0 %v16444_v26 }
 0x748   :  { %16274 = vmatpush3.bf16.msra.mxu0 %v20752_v18 }
 0x749   :  { %16275 = vmatprep.subr.bf16.mxu0 %v16444_v26 }
 0x74c   :  { %16277 = vmatpush3.bf16.msra.mxu0 %v20770_v2  ;;  %v9689_v2 = vsub.f32 %v20691_v44, %v20705_v37  ;;  %v8961_v44 = vpop.permute.xlu1 %8960 }
 0x74d   :  { %16278 = vmatprep.subr.bf16.mxu0 %v16444_v26 }
 0x750   :  { %16280 = vmatpush3.bf16.msra.mxu0 %v20795_v60  ;;  %v8954_v60 = vpop.permute.xlu0 %8953 }
 0x751   :  { %16281 = vmatprep.subr.bf16.mxu0 %v16444_v26 }
 0x754   :  { %16283 = vmatpush3.bf16.msra.mxu0 %v20810_v55 }
 0x757   :  { %14536 = vmatmul.mubr.f32.vlgmr.msra.gmra.mrb[44].mxu0 %v20413_v22  ;;  %v9690_v22 = vand.u32 4294901760, %v9689_v2 }
 0x759   :  { %v9691_v47 = vsub.f32 %v9689_v2, %v9690_v22 }
 0x75b   :  { %v9692_v59 = vand.u32 4294901760, %v9691_v47 }
 0x76a   :  { %v8299_v25 = vpop.f32.mrb[42].mxu0 }
 0x76b   :  { %v8303_v0 = vmul.f32 0.015625, %v8299_v25  ;;  %v14117_v16 = vpop.f32.mrb[43].mxu0 }
 0x76c   :  { %v8942_v21 = vpop.f32.mrb[48].mxu1 }
 0x76d   :  { %v8947_v63 = vmul.f32 %v8303_v0, %v8303_v0  ;;  %v8946_v18 = vmul.f32 0.015625, %v8942_v21  ;;  %v14327_v13 = vpop.f32.mrb[49].mxu1 }
 0x76f   :  { %v8948_v11 = vsub.f32 %v8946_v18, %v8947_v63 }
 0x771   :  { %v8949_v7 = vadd.f32 1e-05, %v8948_v11 }
 0x773   :  { %16438 = vrsqrt.f32 %v8949_v7 }
 0x77d   :  { %v16439_v5 = vpop.eup %16438 }
 0x77e   :  { %v8956_v26 = vmul.f32 %v16439_v5, %v8954_v60 }
 0x780   :  { %v8957_v29 = vmul.f32 %v8956_v26, %v8303_v0  ;;  %v9606_v50 = vsel %vm5349_vm2, %v8956_v26, 0  ;;  %v10607_v0 = vsub.f32 %v10605_v1, %v10606_v49 }
 0x781   :  { %v9677_v55 = vand.u32 4294901760, %v9606_v50 }
 0x782   :  { %v8963_v15 = vsub.f32 %v8961_v44, %v8957_v29  ;;  %v10608_v63 = vand.u32 4294901760, %v10607_v0 }
 0x783   :  { %v9678_v10 = vsub.f32 %v9606_v50, %v9677_v55 }
 0x784   :  { %v10059_v53 = vsel %vm5349_vm2, %v8963_v15, 0 }
 0x785   :  { %v9679_v56 = vand.u32 4294901760, %v9678_v10  ;;  %v10127_v54 = vand.u32 4294901760, %v10059_v53 }
 0x787   :  { %v9680_v45 = vsub.f32 %v9678_v10, %v9679_v56  ;;  %v10128_v23 = vsub.f32 %v10059_v53, %v10127_v54 }
 0x789   :  { %v9681_v41 = vand.u32 4294901760, %v9680_v45  ;;  %v10129_v4 = vand.u32 4294901760, %v10128_v23  ;;  %v10520_v45 = vpop.permute.xlu1 %10519 }
 0x78b   :  { %14541 = vmatmul.mubr.f32.vlgmr.msra.gmra.mrb[50].mxu1 %v9681_v41  ;;  %v10130_v40 = vsub.f32 %v10128_v23, %v10129_v4  ;;  %v10515_v41 = vpop.permute.xlu0 %10514 }
 0x78c   :  { %14544 = vmatpush3.msra.mxu1 %v9692_v59  ;;  %14545 = vmatprep.mubr.msk.f32.mxu1 %vm16443_vm1, %v16442_v42 }
 0x78d   :  { %14548 = vmatprep.subr.mxu1 %v16442_v42  ;;  %v10131_v46 = vand.u32 4294901760, %v10130_v40 }
 0x793   :  { %14546 = vmatmul.mubr.f32.vlgmr.msra.gmra.mrb[50].mxu1 %v9677_v55 }
 0x794   :  { %14549 = vmatpush3.msra.mxu1 %v9689_v2  ;;  %14550 = vmatprep.mubr.msk.f32.mxu1 %vm16443_vm1, %v16442_v42 }
 0x795   :  { %14553 = vmatprep.subr.mxu1 %v16442_v42 }
 0x79b   :  { %14551 = vmatmul.mubr.f32.vlgmr.msra.gmra.mrb[50].mxu1 %v9678_v10 }
 0x79c   :  { %14554 = vmatpush3.msra.mxu1 %v20705_v37  ;;  %14555 = vmatprep.mubr.msk.f32.mxu1 %vm16443_vm1, %v16442_v42 }
 0x79d   :  { %14558 = vmatprep.subr.mxu1 %v16442_v42 }
 0x7a3   :  { %14556 = vmatmul.mubr.f32.vlgmr.msra.gmra.mrb[50].mxu1 %v9679_v56 }
 0x7a4   :  { %14559 = vmatpush3.msra.mxu1 %v9690_v22  ;;  %14560 = vmatprep.mubr.msk.f32.mxu1 %vm16443_vm1, %v16442_v42 }
 0x7a5   :  { %14563 = vmatprep.subr.mxu1 %v16442_v42 }
 0x7ab   :  { %14561 = vmatmul.mubr.f32.vlgmr.msra.gmra.mrb[50].mxu1 %v9677_v55 }
 0x7ac   :  { %14564 = vmatpush3.msra.mxu1 %v20705_v37  ;;  %14565 = vmatprep.mubr.msk.f32.mxu1 %vm16443_vm1, %v16442_v42 }
 0x7ad   :  { %14568 = vmatprep.subr.mxu1 %v16442_v42 }
 0x7b3   :  { %14566 = vmatmul.mubr.f32.vlgmr.msra.gmra.mrb[50].mxu1 %v9677_v55  ;;  %v11020_v55 = vld [vmem:[%s21086_s1 + $0x590] sm:$0xff] }
 0x7b4   :  { %14569 = vmatpush3.msra.mxu1 %v20705_v37  ;;  %14570 = vmatprep.mubr.msk.f32.mxu1 %vm16443_vm1, %v16442_v42  ;;  %v11038_v10 = vsel %vm11033_vm6, %v11020_v55, 0 }
 0x7b5   :  { %14573 = vmatprep.subr.mxu1 %v16442_v42  ;;  %v21061_v47 = vand.u32 4294901760, %v11038_v10 }
 0x7b7   :  { %14571 = vmatmul.mubr.f32.vlgmr.msra.gmra.mrb[52].mxu1 %v10131_v46  ;;  %v11118_v56 = vsub.f32 %v11038_v10, %v21061_v47 }
 0x7b8   :  { %14574 = vmatpush3.msra.mxu1 %v9692_v59  ;;  %14575 = vmatprep.mubr.msk.f32.mxu1 %vm16443_vm1, %v16442_v42 }
 0x7b9   :  { %14578 = vmatprep.subr.mxu1 %v16442_v42 }
 0x7bb   :  { %14576 = vmatmul.mubr.f32.vlgmr.msra.gmra.mrb[54].mxu1 %v10127_v54 }
 0x7bc   :  { %14579 = vmatpush3.msra.mxu1 %v9689_v2  ;;  %14580 = vmatprep.mubr.msk.f32.mxu1 %vm16443_vm1, %v16442_v42  ;;  %v11019_v2 = vld [vmem:[%s21086_s1 + $0x588] sm:$0xff] }
 0x7bd   :  { %14583 = vmatprep.subr.mxu1 %v16442_v42  ;;  %v11035_v5 = vsel %vm11033_vm6, %v11019_v2, 0 }
 0x7be   :  { %v21055_v60 = vand.u32 4294901760, %v11035_v5 }
 0x7bf   :  { %14581 = vmatmul.mubr.f32.vlgmr.msra.gmra.mrb[56].mxu1 %v10128_v23 }
 0x7c0   :  { %14584 = vmatpush3.msra.mxu1 %v20705_v37  ;;  %14585 = vmatprep.mubr.msk.f32.mxu1 %vm16443_vm1, %v16442_v42  ;;  %v11108_v26 = vsub.f32 %v11035_v5, %v21055_v60 }
 0x7c1   :  { %14588 = vmatprep.subr.mxu1 %v16442_v42 }
 0x7c2   :  { %v11109_v29 = vand.u32 4294901760, %v11108_v26 }
 0x7c3   :  { %14586 = vmatmul.mubr.f32.vlgmr.msra.gmra.mrb[58].mxu1 %v10129_v4 }
 0x7c4   :  { %14589 = vmatpush3.msra.mxu1 %v9690_v22  ;;  %14590 = vmatprep.mubr.msk.f32.mxu1 %vm16443_vm1, %v16442_v42  ;;  %v11110_v50 = vsub.f32 %v11108_v26, %v11109_v29 }
 0x7c5   :  { %14593 = vmatprep.subr.mxu1 %v16442_v42 }
 0x7c6   :  { %v11111_v22 = vand.u32 4294901760, %v11110_v50 }
 0x7c7   :  { %14591 = vmatmul.mubr.f32.vlgmr.msra.gmra.mrb[60].mxu1 %v10127_v54 }
 0x7c8   :  { %14594 = vmatpush3.msra.mxu1 %v20705_v37  ;;  %14595 = vmatprep.mubr.msk.f32.mxu1 %vm16443_vm1, %v16442_v42 }
 0x7cb   :  { %14596 = vmatmul.mubr.f32.vlgmr.msra.gmra.mrb[62].mxu1 %v10127_v54  ;;  %v11119_v54 = vand.u32 4294901760, %v11118_v56 }
 0x7cc   :  { %14600 = vmatprep.mubr.f32.mxu1 %v10598_v20 }
 0x7cd   :  { %v11120_v24 = vsub.f32 %v11118_v56, %v11119_v54 }
 0x7cf   :  { %v11121_v20 = vand.u32 4294901760, %v11120_v24 }
 0x82a   :  { %v21045_v58 = vpop.f32.mrb[44].mxu0 }
 0x82b   :  { %v14537_v6 = vpop.f32.mrb[45].mxu0 }
 0x886   :  { %v10053_v37 = vpop.f32.mrb[50].mxu1 }
 0x887   :  { %v10057_v8 = vmul.f32 %v10053_v37, %v21045_v58  ;;  %v14567_v42 = vpop.f32.mrb[51].mxu1 }
 0x88a   :  { %v10133_v9 = vpop.f32.mrb[52].mxu1 }
 0x88b   :  { %v14572_v57 = vpop.f32.mrb[53].mxu1 }
 0x88e   :  { %v10209_v19 = vpop.f32.mrb[54].mxu1 }
 0x88f   :  { %v10210_v28 = vadd.f32 %v10209_v19, %v10133_v9  ;;  %v14577_v17 = vpop.f32.mrb[55].mxu1  ;;  %v11542_v19 = vld [vmem:[%s21086_s1 + $0x558] sm:$0xff] }
 0x892   :  { %v10283_v30 = vpop.f32.mrb[56].mxu1 }
 0x893   :  { %v10284_v62 = vadd.f32 %v10283_v30, %v10210_v28  ;;  %v14582_v33 = vpop.f32.mrb[57].mxu1  ;;  %v11545_v28 = vsel %vm6723_vm5, %v11542_v19, 0  ;;  %v11551_v30 = vand.u32 4294901760, %v21045_v58 }
 0x894   :  { %v11616_v17 = vand.u32 4294901760, %v11545_v28  ;;  %v11548_v33 = vsel %vm6723_vm5, %v11543_v48, 0 }
 0x896   :  { %v10357_v36 = vpop.f32.mrb[58].mxu1 }
 0x897   :  { %v10358_v35 = vadd.f32 %v10357_v36, %v10284_v62  ;;  %v14587_v38 = vpop.f32.mrb[59].mxu1  ;;  %v11617_v62 = vsub.f32 %v11545_v28, %v11616_v17  ;;  %v11626_v36 = vand.u32 4294901760, %v11548_v33 }
 0x89a   :  { %v10431_v43 = vpop.f32.mrb[60].mxu1 }
 0x89b   :  { %v10432_v27 = vadd.f32 %v10431_v43, %v10358_v35  ;;  %v14592_v32 = vpop.f32.mrb[61].mxu1  ;;  %v11618_v35 = vand.u32 4294901760, %v11617_v62 }
 0x89d   :  { %v11619_v43 = vsub.f32 %v11617_v62, %v11618_v35 }
 0x89e   :  { %v10503_v51 = vpop.f32.mrb[62].mxu1 }
 0x89f   :  { %v10504_v61 = vadd.f32 %v10503_v51, %v10432_v27  ;;  %v14597_v25 = vpop.f32.mrb[63].mxu1 }
 0x8a0   :  { %v11031_v25 = vpop.permute.xlu1 %11030 }
 0x8a1   :  { %v10507_v16 = vadd.f32 %v10504_v61, %v10057_v8 }
 0x8a3   :  { %v10529_v21 = vand.u32 4294901760, %v10507_v16 }
 0x8a5   :  { %v10616_v18 = vsub.f32 %v10507_v16, %v10529_v21  ;;  %14598 = vmatprep.subr.mxu1 %v10529_v21  ;;  %v11026_v16 = vpop.permute.xlu0 %11025 }
 0x8a6   :  { %14599 = vmatpush3.msra.mxu1 %v10529_v21 }
 0x8a7   :  { %14601 = vmatmul.mubr.f32.vlgmr.msra.gmra.mrb[64].mxu1 %v10608_v63  ;;  %v10617_v13 = vand.u32 4294901760, %v10616_v18 }
 0x8a8   :  { %14605 = vmatprep.mubr.f32.mxu1 %v10594_v39 }
 0x8a9   :  { %v10618_v11 = vsub.f32 %v10616_v18, %v10617_v13 }
 0x8ab   :  { %v10619_v7 = vand.u32 4294901760, %v10618_v11 }
 0x8ad   :  { %14603 = vmatprep.subr.mxu1 %v10619_v7 }
 0x8ae   :  { %14604 = vmatpush3.msra.mxu1 %v10619_v7 }
 0x8af   :  { %14606 = vmatmul.mubr.f32.vlgmr.msra.gmra.mrb[64].mxu1 %v10604_v31  ;;  %14608 = vmatprep.subr.mxu1 %v10616_v18 }
 0x8b0   :  { %14609 = vmatpush3.msra.mxu1 %v10616_v18  ;;  %14610 = vmatprep.mubr.f32.mxu1 %v10595_v52 }
 0x8b1   :  { %14613 = vmatprep.subr.mxu1 %v10529_v21 }
 0x8b7   :  { %14611 = vmatmul.mubr.f32.vlgmr.msra.gmra.mrb[64].mxu1 %v10605_v1  ;;  %v11627_v1 = vsub.f32 %v11548_v33, %v11626_v36 }
 0x8b8   :  { %14614 = vmatpush3.msra.mxu1 %v10529_v21  ;;  %14615 = vmatprep.mubr.f32.mxu1 %v10596_v34 }
 0x8b9   :  { %14618 = vmatprep.subr.mxu1 %v10617_v13  ;;  %v11628_v32 = vand.u32 4294901760, %v11627_v1 }
 0x8bb   :  { %v11629_v61 = vsub.f32 %v11627_v1, %v11628_v32 }
 0x8bf   :  { %14616 = vmatmul.mubr.f32.vlgmr.msra.gmra.mrb[64].mxu1 %v10606_v49  ;;  %v11620_v49 = vand.u32 4294901760, %v11619_v43 }
 0x8c0   :  { %14619 = vmatpush3.msra.mxu1 %v10617_v13  ;;  %14620 = vmatprep.mubr.f32.mxu1 %v10594_v39 }
 0x8c1   :  { %14623 = vmatprep.subr.mxu1 %v10529_v21 }
 0x8c7   :  { %14621 = vmatmul.mubr.f32.vlgmr.msra.gmra.mrb[64].mxu1 %v10604_v31 }
 0x8c8   :  { %14624 = vmatpush3.msra.mxu1 %v10529_v21  ;;  %14625 = vmatprep.mubr.f32.mxu1 %v10594_v39 }
 0x8cf   :  { %14626 = vmatmul.mubr.f32.vlgmr.msra.gmra.mrb[64].mxu1 %v10604_v31  ;;  %v11638_v31 = vsub.f32 %v21045_v58, %v11551_v30  ;;  %v11630_v58 = vand.u32 4294901760, %v11629_v61 }
 0x8d0   :  { %14632 = vmatprep.mubr.f32.mxu1 %v11111_v22 }
 0x8d1   :  { %v11639_v38 = vand.u32 4294901760, %v11638_v31 }
 0x8d3   :  { %v11640_v27 = vsub.f32 %v11638_v31, %v11639_v38 }
 0x8d5   :  { %v11641_v51 = vand.u32 4294901760, %v11640_v27 }
 0x9a2   :  { %v14627_v59 = vpop.f32.mrb[64].mxu1 }
 0x9a3   :  { %v16310_v44 = vadd.f32 %v14627_v59, %v10520_v45  ;;  %v11007_v15 = vpop.f32.mrb[65].mxu1 }
 0x9a4   :  { %v16311_v53 = vadd.f32 %v11007_v15, %v10515_v41 }
 0x9a5   :  { %v11018_v23 = vmax.f32 %v16310_v44, 0.0 }
 0x9a6   :  { %v11017_v4 = vmax.f32 %v16311_v53, 0.0 }
 0x9a7   :  { %v11044_v40 = vand.u32 4294901760, %v11018_v23 }
 0x9a8   :  { %v11041_v46 = vand.u32 4294901760, %v11017_v4 }
 0x9a9   :  { %v11136_v14 = vsub.f32 %v11018_v23, %v11044_v40 }
 0x9aa   :  { %v16284_v39 = vpack.c.bf16 %v11044_v40, %v11041_v46  ;;  %v11129_v52 = vsub.f32 %v11017_v4, %v11041_v46 }
 0x9ab   :  { %v11137_v34 = vand.u32 4294901760, %v11136_v14 }
 0x9ac   :  { %v11130_v3 = vand.u32 4294901760, %v11129_v52  ;;  %16285 = vmatprep.subr.bf16.mxu1 %v16284_v39  ;;  %v16292_v6 = vpack.c.bf16 %v11136_v14, %v11129_v52 }
 0x9ad   :  { %16287 = vmatpush3.bf16.msra.mxu1 %v16284_v39  ;;  %v11138_v37 = vsub.f32 %v11136_v14, %v11137_v34 }
 0x9ae   :  { %v11131_v8 = vsub.f32 %v11129_v52, %v11130_v3  ;;  %v16300_v42 = vpack.c.bf16 %v11137_v34, %v11130_v3 }
 0x9af   :  { %v11139_v9 = vand.u32 4294901760, %v11138_v37 }
 0x9b0   :  { %14633 = vmatmul.mubr.f32.vlgmr.msra.gmra.mrb[66].mxu1 %v11121_v20  ;;  %v11132_v57 = vand.u32 4294901760, %v11131_v8 }
 0x9b1   :  { %14639 = vmatprep.mubr.f32.mxu1 %v21055_v60 }
 0x9b2   :  { %v16288_v12 = vpack.c.bf16 %v11139_v9, %v11132_v57 }
 0x9b4   :  { %16289 = vmatprep.subr.bf16.mxu1 %v16288_v12 }
 0x9b5   :  { %16291 = vmatpush3.bf16.msra.mxu1 %v16288_v12 }
 0x9b6   :  { %16293 = vmatprep.subr.bf16.mxu1 %v16292_v6 }
 0x9b8   :  { %14640 = vmatmul.mubr.f32.vlgmr.msra.gmra.mrb[66].mxu1 %v21061_v47 }
 0x9b9   :  { %16295 = vmatpush3.bf16.msra.mxu1 %v16292_v6  ;;  %14646 = vmatprep.mubr.f32.mxu1 %v11108_v26 }
 0x9ba   :  { %16297 = vmatprep.subr.bf16.mxu1 %v16284_v39 }
 0x9c0   :  { %14647 = vmatmul.mubr.f32.vlgmr.msra.gmra.mrb[66].mxu1 %v11118_v56 }
 0x9c1   :  { %16299 = vmatpush3.bf16.msra.mxu1 %v16284_v39  ;;  %14653 = vmatprep.mubr.f32.mxu1 %v11109_v29 }
 0x9c2   :  { %16301 = vmatprep.subr.bf16.mxu1 %v16300_v42 }
 0x9c8   :  { %14654 = vmatmul.mubr.f32.vlgmr.msra.gmra.mrb[66].mxu1 %v11119_v54 }
 0x9c9   :  { %16303 = vmatpush3.bf16.msra.mxu1 %v16300_v42  ;;  %14660 = vmatprep.mubr.f32.mxu1 %v21055_v60 }
 0x9ca   :  { %16305 = vmatprep.subr.bf16.mxu1 %v16284_v39 }
 0x9d0   :  { %14661 = vmatmul.mubr.f32.vlgmr.msra.gmra.mrb[66].mxu1 %v21061_v47 }
 0x9d1   :  { %16307 = vmatpush3.bf16.msra.mxu1 %v16284_v39  ;;  %14667 = vmatprep.mubr.f32.mxu1 %v21055_v60 }
 0x9d2   :  { %14670 = vmatprep.subr.mxu1 %v11551_v30 }
 0x9d8   :  { %14668 = vmatmul.mubr.f32.vlgmr.msra.gmra.mrb[66].mxu1 %v21061_v47 }
 0x9d9   :  { %14671 = vmatpush3.msra.mxu1 %v11551_v30  ;;  %14672 = vmatprep.mubr.f32.mxu1 %v11620_v49 }
 0x9da   :  { %14675 = vmatprep.subr.mxu1 %v11641_v51 }
 0x9e0   :  { %14673 = vmatmul.mubr.f32.vlgmr.msra.gmra.mrb[66].mxu1 %v11630_v58 }
 0x9e1   :  { %14676 = vmatpush3.msra.mxu1 %v11641_v51  ;;  %14677 = vmatprep.mubr.f32.mxu1 %v11616_v17 }
 0x9e2   :  { %14680 = vmatprep.subr.mxu1 %v11638_v31 }
 0x9e8   :  { %14678 = vmatmul.mubr.f32.vlgmr.msra.gmra.mrb[66].mxu1 %v11626_v36 }
 0x9e9   :  { %14681 = vmatpush3.msra.mxu1 %v11638_v31  ;;  %14682 = vmatprep.mubr.f32.mxu1 %v11617_v62 }
 0x9ea   :  { %14685 = vmatprep.subr.mxu1 %v11551_v30 }
 0x9f0   :  { %14683 = vmatmul.mubr.f32.vlgmr.msra.gmra.mrb[66].mxu1 %v11627_v1 }
 0x9f1   :  { %14686 = vmatpush3.msra.mxu1 %v11551_v30  ;;  %14687 = vmatprep.mubr.f32.mxu1 %v11618_v35 }
 0x9f2   :  { %14690 = vmatprep.subr.mxu1 %v11639_v38 }
 0x9f8   :  { %14688 = vmatmul.mubr.f32.vlgmr.msra.gmra.mrb[66].mxu1 %v11628_v32 }
 0x9f9   :  { %14691 = vmatpush3.msra.mxu1 %v11639_v38  ;;  %14692 = vmatprep.mubr.f32.mxu1 %v11616_v17 }
 0x9fa   :  { %14695 = vmatprep.subr.mxu1 %v11551_v30 }
 0xa00   :  { %14693 = vmatmul.mubr.f32.vlgmr.msra.gmra.mrb[66].mxu1 %v11626_v36 }
 0xa01   :  { %14696 = vmatpush3.msra.mxu1 %v11551_v30  ;;  %14697 = vmatprep.mubr.f32.mxu1 %v11616_v17 }
 0xa08   :  { %14698 = vmatmul.mubr.f32.vlgmr.msra.gmra.mrb[66].mxu1 %v11626_v36 }
 0xadb   :  { %v14699_v0 = vpop.f32.mrb[66].mxu1 }
 0xadc   :  { %v16312_v21 = vadd.f32 %v14699_v0, %v11031_v25  ;;  %v12029_v63 = vpop.f32.mrb[67].mxu1 }
 0xadd   :  { %v16313_v18 = vadd.f32 %v12029_v63, %v11026_v16 }
 0xade   :  { %12043 = vst.msk [vmem:[%s21088_s2 + $0x8] sm:$0xff] %vm12041_vm7, %v16312_v21 }
 0xadf   :  { %12042 = vst.msk [vmem:[%s21088_s2] sm:$0xff] %vm12041_vm7, %v16313_v18 }

</bundles_post_ra>
